<compile_context>
chip_gen: v7x
topology: tpu7x:2x2x1
jax: 0.10.0
libtpu: 0.0.40
codegen_flags: <defaults>
</compile_context>

<pallas_src>
import math
import functools

import jax
import jax.numpy as jnp
from jax.experimental import pallas as pl
from jax.experimental.pallas import tpu as pltpu

MXU_DTYPE = jnp.bfloat16     # MXU operand dtype (f32 accumulation)
NEG_INF = -1e9               # matches torch masked_fill value


def _dot_f32(a, b):
    return jnp.dot(a, b, preferred_element_type=jnp.float32)


def _dot_nt_f32(a, b):
    # a[M, K] x b[N, K] -> [M, N], contracting dim 1 of both operands
    # (no explicit transpose before the MXU).
    return jax.lax.dot_general(a, b, (((1,), (1,)), ((), ())),
                               preferred_element_type=jnp.float32)


def _layernorm(z, gamma, beta):
    mean = jnp.mean(z, axis=-1, keepdims=True)
    var = jnp.mean((z - mean) ** 2, axis=-1, keepdims=True)   # biased, like torch
    zn = (z - mean) * jax.lax.rsqrt(var + 1e-5)                # torch default eps
    return zn * gamma + beta


# ----------------------------- Pallas kernels -----------------------------

def _mha_addnorm_kernel(*refs, num_heads, scale, causal, has_kv, tiled_q, tq):
    """Fused: QKV proj -> in-kernel mask -> per-head attention -> W_o ->
    +residual -> LayerNorm."""
    if has_kv:
        (qx_ref, kvx_ref, qpad_ref, kpad_ref, wqkv_ref, bqkv_ref,
         wo_ref, bo_ref, g_ref, beta_ref, o_ref, ctx_scr) = refs
    else:
        (qx_ref, qpad_ref, kpad_ref, wqkv_ref, bqkv_ref,
         wo_ref, bo_ref, g_ref, beta_ref, o_ref, ctx_scr) = refs

    x_q = qx_ref[0]                       # (Tq, D) f32, also the residual
    Tq, D = x_q.shape
    wqkv = wqkv_ref[...]                  # (D, 3D) bf16   [W_q | W_k | W_v]
    bqkv = bqkv_ref[...]                  # (1, 3D) f32

    if has_kv:
        x_kv = kvx_ref[0]                 # (Sk, D) f32
        Sk = x_kv.shape[0]
        q = (_dot_f32(x_q.astype(MXU_DTYPE), wqkv[:, :D]) + bqkv[:, :D]) * scale
        kv = _dot_f32(x_kv.astype(MXU_DTYPE), wqkv[:, D:]) + bqkv[:, D:]
        k = kv[:, :D]
        v = kv[:, D:]
    else:
        # self-attention, whole sequence in one block: fused [D,3D] matmul
        Sk = Tq
        qkv = _dot_f32(x_q.astype(MXU_DTYPE), wqkv) + bqkv
        q = qkv[:, :D] * scale            # softmax scale folded into Q once
        k = qkv[:, D:2 * D]
        v = qkv[:, 2 * D:]

    qb = q.astype(MXU_DTYPE)
    kb = k.astype(MXU_DTYPE)
    vb = v.astype(MXU_DTYPE)

    # Build boolean mask in-kernel from tiny pad vectors (no (Sq,Sk) DMA).
    kmask = kpad_ref[0] > 0.5             # (1, Sk)
    qmask = qpad_ref[0] > 0.5             # (Tq, 1)
    mask = jnp.logical_and(qmask, kmask)  # (Tq, Sk)
    if causal:
        q_off = pl.program_id(1) * tq if tiled_q else 0
        row = jax.lax.broadcasted_iota(jnp.int32, (Tq, Sk), 0) + q_off
        col = jax.lax.broadcasted_iota(jnp.int32, (Tq, Sk), 1)
        mask = jnp.logical_and(mask, col <= row)

    dk = D // num_heads
    for h in range(num_heads):            # static unroll over heads
        lo = h * dk
        s = _dot_nt_f32(qb[:, lo:lo + dk], kb[:, lo:lo + dk])   # (Tq, Sk) f32
        s = jnp.where(mask, s, NEG_INF)
        m = jnp.max(s, axis=-1, keepdims=True)
        p = jnp.exp(s - m)
        probs = p * pl.reciprocal(jnp.sum(p, axis=-1, keepdims=True), approx=True)
        ctx_scr[:, lo:lo + dk] = _dot_f32(probs.astype(MXU_DTYPE),
                                          vb[:, lo:lo + dk])

    # combine_heads + W_o as a single full-D contraction (MXU-friendly)
    attn = _dot_f32(ctx_scr[...].astype(MXU_DTYPE), wo_ref[...]) + bo_ref[...]
    z = x_q + attn
    o_ref[0] = _layernorm(z, g_ref[...], beta_ref[...])


def _ffn_addnorm_kernel(x_ref, w1_ref, b1_ref, w2_ref, b2_ref,
                        g_ref, beta_ref, o_ref, acc_ref):
    """Fused: fc1 -> ReLU -> fc2 (d_ff-tiled accumulation) -> +residual -> LN."""
    ki = pl.program_id(1)

    @pl.when(ki == 0)
    def _():
        acc_ref[...] = jnp.zeros_like(acc_ref)

    x = x_ref[...]                                      # (tm, D) f32
    h = jnp.maximum(_dot_f32(x.astype(MXU_DTYPE), w1_ref[...]) + b1_ref[...], 0.0)
    acc_ref[...] += _dot_f32(h.astype(MXU_DTYPE), w2_ref[...])

    @pl.when(ki == pl.num_programs(1) - 1)
    def _():
        z = x + acc_ref[...] + b2_ref[...]
        o_ref[...] = _layernorm(z, g_ref[...], beta_ref[...])


def _linear_kernel(x_ref, w_ref, b_ref, o_ref):
    o_ref[...] = _dot_f32(x_ref[...].astype(MXU_DTYPE), w_ref[...]) + b_ref[...]


# ------------------------------ tiling helpers ------------------------------

def _round_up(n, m):
    return ((n + m - 1) // m) * m


def _row_tile(n, cap=512):
    """Row tile for an n that is already a multiple of 8."""
    if n <= cap:
        return n
    for t in (512, 256, 128, 64, 32, 16, 8):
        if n % t == 0:
            return t
    return n


def _lane_tile(n, cap=512):
    """Lane-dense column tile for an n that is already a multiple of 128."""
    if n <= cap:
        return n
    for t in (512, 384, 256, 128):
        if n % t == 0:
            return t
    return n


def _ff_tile(dff, cap=512):
    if dff <= cap:
        return dff
    for t in (512, 256, 128):
        if dff % t == 0:
            return t
    return dff   # TODO(synk): d_ff not a multiple of 128 falls back to one block


def _seq_tile(s, cap=256):
    if s <= cap:
        return s
    for t in (256, 128, 64, 32, 16, 8):
        if s % t == 0:
            return t
    return s


def _compiler_params(semantics, block_bytes):
    # Double-buffered working set + headroom, clamped to a v7x-safe range.
    need = 2 * int(block_bytes) + (4 << 20)
    limit = int(min(max(need, 16 << 20), 64 << 20))
    return pltpu.CompilerParams(dimension_semantics=semantics,
                                vmem_limit_bytes=limit)


# --------------------------- pallas_call wrappers ---------------------------

_SELF_FULL_MAX = 256   # self-attn handled as a single full-sequence block up to here


def mha_addnorm(attn_p, norm_p, q_in, kv_in, qpad, kpad, num_heads, causal, is_self):
    """norm(q_in + MHA(q_in, kv_in, kv_in, mask)) in a single pallas_call."""
    B, Sq, D = q_in.shape
    Sk = kv_in.shape[1]
    scale = 1.0 / math.sqrt(D // num_heads)
    wqkv, bqkv = attn_p['wqkv'], attn_p['bqkv']
    wo, bo = attn_p['wo'], attn_p['bo']
    g, beta = norm_p['g'], norm_p['b']
    weight_bytes = (wqkv.size * 2 + wo.size * 2
                    + (bqkv.size + bo.size + g.size + beta.size) * 4)

    if is_self and Sq <= _SELF_FULL_MAX:
        # No separate kv input is DMA'd for self-attention.
        kernel = functools.partial(
            _mha_addnorm_kernel, num_heads=num_heads, scale=scale,
            causal=causal, has_kv=False, tiled_q=False, tq=Sq)
        block_bytes = 3 * Sq * D * 4 + (Sq + Sk) * 4 + weight_bytes
        return pl.pallas_call(
            kernel,
            grid=(B,),
            in_specs=[
                pl.BlockSpec((1, Sq, D), lambda b: (b, 0, 0)),   # x (q/kv/residual)
                pl.BlockSpec((1, Sq, 1), lambda b: (b, 0, 0)),   # query pad vector
                pl.BlockSpec((1, 1, Sk), lambda b: (b, 0, 0)),   # key pad vector
                pl.BlockSpec((D, 3 * D), lambda b: (0, 0)),      # W_qkv (bf16)
                pl.BlockSpec((1, 3 * D), lambda b: (0, 0)),      # b_qkv
                pl.BlockSpec((D, D), lambda b: (0, 0)),          # W_o (bf16)
                pl.BlockSpec((1, D), lambda b: (0, 0)),          # b_o
                pl.BlockSpec((1, D), lambda b: (0, 0)),          # ln gamma
                pl.BlockSpec((1, D), lambda b: (0, 0)),          # ln beta
            ],
            out_specs=pl.BlockSpec((1, Sq, D), lambda b: (b, 0, 0)),
            out_shape=jax.ShapeDtypeStruct((B, Sq, D), jnp.float32),
            scratch_shapes=[pltpu.VMEM((Sq, D), jnp.float32)],   # per-head ctx
            compiler_params=_compiler_params(("parallel",), block_bytes),
        )(q_in, qpad, kpad, wqkv, bqkv, wo, bo, g, beta)

    # General path: query dim tiled, keys/values computed from the full kv block.
    tq = _seq_tile(Sq)
    nq = Sq // tq
    kernel = functools.partial(
        _mha_addnorm_kernel, num_heads=num_heads, scale=scale,
        causal=causal, has_kv=True, tiled_q=True, tq=tq)
    block_bytes = (3 * tq * D + Sk * D) * 4 + (tq + Sk) * 4 + weight_bytes
    return pl.pallas_call(
        kernel,
        grid=(B, nq),
        in_specs=[
            pl.BlockSpec((1, tq, D), lambda b, qi: (b, qi, 0)),  # query/residual tile
            pl.BlockSpec((1, Sk, D), lambda b, qi: (b, 0, 0)),   # full kv rows
            pl.BlockSpec((1, tq, 1), lambda b, qi: (b, qi, 0)),  # query pad tile
            pl.BlockSpec((1, 1, Sk), lambda b, qi: (b, 0, 0)),   # key pad vector
            pl.BlockSpec((D, 3 * D), lambda b, qi: (0, 0)),
            pl.BlockSpec((1, 3 * D), lambda b, qi: (0, 0)),
            pl.BlockSpec((D, D), lambda b, qi: (0, 0)),
            pl.BlockSpec((1, D), lambda b, qi: (0, 0)),
            pl.BlockSpec((1, D), lambda b, qi: (0, 0)),
            pl.BlockSpec((1, D), lambda b, qi: (0, 0)),
        ],
        out_specs=pl.BlockSpec((1, tq, D), lambda b, qi: (b, qi, 0)),
        out_shape=jax.ShapeDtypeStruct((B, Sq, D), jnp.float32),
        scratch_shapes=[pltpu.VMEM((tq, D), jnp.float32)],
        compiler_params=_compiler_params(("parallel", "parallel"), block_bytes),
    )(q_in, kv_in, qpad, kpad, wqkv, bqkv, wo, bo, g, beta)


def ffn_addnorm(ff_p, norm_p, x):
    """norm(x + FFN(x)) in a single pallas_call; rows tiled, d_ff tiled."""
    B, S, D = x.shape
    rows = B * S
    x2 = x.reshape(rows, D)
    rows_pad = _round_up(rows, 8)
    if rows_pad != rows:
        x2 = jnp.pad(x2, ((0, rows_pad - rows), (0, 0)))
    dff = ff_p['w1'].shape[1]
    tm = _row_tile(rows_pad)
    tk = _ff_tile(dff)
    block_bytes = (tm * D * 4 + D * tk * 2 + tk * D * 2 + tk * 4
                   + 3 * D * 4 + 2 * tm * D * 4)
    out = pl.pallas_call(
        _ffn_addnorm_kernel,
        grid=(rows_pad // tm, dff // tk),
        in_specs=[pl.BlockSpec((tm, D), lambda i, k: (i, 0)),
                  pl.BlockSpec((D, tk), lambda i, k: (0, k)),    # fc1 w (bf16)
                  pl.BlockSpec((1, tk), lambda i, k: (0, k)),    # fc1 b slice
                  pl.BlockSpec((tk, D), lambda i, k: (k, 0)),    # fc2 w (bf16)
                  pl.BlockSpec((1, D), lambda i, k: (0, 0)),     # fc2 b
                  pl.BlockSpec((1, D), lambda i, k: (0, 0)),     # ln gamma
                  pl.BlockSpec((1, D), lambda i, k: (0, 0))],    # ln beta
        out_specs=pl.BlockSpec((tm, D), lambda i, k: (i, 0)),
        out_shape=jax.ShapeDtypeStruct((rows_pad, D), jnp.float32),
        scratch_shapes=[pltpu.VMEM((tm, D), jnp.float32)],       # f32 accumulator
        compiler_params=_compiler_params(("parallel", "arbitrary"), block_bytes),
    )(x2, ff_p['w1'], ff_p['b1'], ff_p['w2'], ff_p['b2'],
      norm_p['g'], norm_p['b'])
    return out[:rows].reshape(B, S, D)


def linear(x2d, w, b):
    """y = x2d @ w + b; rows padded to x8, cols padded to x128 (lane-dense)."""
    n, din = x2d.shape
    dout = w.shape[1]
    n_pad = _round_up(n, 8)
    dout_pad = _round_up(dout, 128)
    if n_pad != n:
        x2d = jnp.pad(x2d, ((0, n_pad - n), (0, 0)))
    if dout_pad != dout:
        w = jnp.pad(w, ((0, 0), (0, dout_pad - dout)))
        b = jnp.pad(b, ((0, 0), (0, dout_pad - dout)))
    tm = _row_tile(n_pad)
    tn = _lane_tile(dout_pad)
    block_bytes = tm * din * 4 + din * tn * 2 + tn * 4 + tm * tn * 4
    out = pl.pallas_call(
        _linear_kernel,
        grid=(n_pad // tm, dout_pad // tn),
        in_specs=[pl.BlockSpec((tm, din), lambda i, j: (i, 0)),
                  pl.BlockSpec((din, tn), lambda i, j: (0, j)),
                  pl.BlockSpec((1, tn), lambda i, j: (0, j))],
        out_specs=pl.BlockSpec((tm, tn), lambda i, j: (i, j)),
        out_shape=jax.ShapeDtypeStruct((n_pad, dout_pad), jnp.float32),
        compiler_params=_compiler_params(("parallel", "parallel"), block_bytes),
    )(x2d, w, b)
    return out[:n, :dout]


# ------------------------- model glue (plain JAX) --------------------------

def encoder_layer(p, x, q_ones, src_kpad, num_heads):
    x = mha_addnorm(p['self_attn'], p['norm1'], x, x, q_ones, src_kpad,
                    num_heads, causal=False, is_self=True)
    x = ffn_addnorm(p['ff'], p['norm2'], x)
    return x


def decoder_layer(p, x, enc_out, tgt_qpad, tgt_k_ones, q_ones, src_kpad, num_heads):
    x = mha_addnorm(p['self_attn'], p['norm1'], x, x, tgt_qpad, tgt_k_ones,
                    num_heads, causal=True, is_self=True)
    x = mha_addnorm(p['cross_attn'], p['norm2'], x, enc_out, q_ones, src_kpad,
                    num_heads, causal=False, is_self=False)
    x = ffn_addnorm(p['ff'], p['norm3'], x)
    return x


def transformer_forward(params, src, tgt, num_heads):
    B, Ss = src.shape
    St = tgt.shape[1]

    # Pad vectors only (masks are built inside the attention kernels).
    src_pad = (src != 0).astype(jnp.float32)                    # (B, Ss)
    tgt_pad = (tgt != 0).astype(jnp.float32)                    # (B, St)
    src_kpad = src_pad[:, None, :]                              # (B, 1, Ss)
    tgt_qpad = tgt_pad[:, :, None]                              # (B, St, 1)
    ones_q_src = jnp.ones((B, Ss, 1), jnp.float32)
    ones_q_tgt = jnp.ones((B, St, 1), jnp.float32)
    ones_k_tgt = jnp.ones((B, 1, St), jnp.float32)

    # TODO(synk): embedding gather + positional encoding stay in plain JAX
    # (token gather at this scale has no clean Pallas equivalent).
    pe = params['pe']
    enc = params['enc_emb'][src] + pe[:Ss]
    dec = params['dec_emb'][tgt] + pe[:St]

    for lp in params['enc_layers']:
        enc = encoder_layer(lp, enc, ones_q_src, src_kpad, num_heads)
    for lp in params['dec_layers']:
        dec = decoder_layer(lp, dec, enc, tgt_qpad, ones_k_tgt,
                            ones_q_tgt, src_kpad, num_heads)

    D = dec.shape[-1]
    logits = linear(dec.reshape(B * St, D), params['fc']['w'], params['fc']['b'])
    return logits.reshape(B, St, -1)


# --------------------------- parameter creation ----------------------------

def make_pe(max_len, d_model):
    pos = jnp.arange(max_len, dtype=jnp.float32)[:, None]
    div = jnp.exp(jnp.arange(0, d_model, 2, dtype=jnp.float32)
                  * (-math.log(10000.0) / d_model))
    pe = jnp.zeros((max_len, d_model), jnp.float32)
    pe = pe.at[:, 0::2].set(jnp.sin(pos * div))
    pe = pe.at[:, 1::2].set(jnp.cos(pos * div))
    return pe


def init_linear_params(key, din, dout):
    kw, kb = jax.random.split(key)
    bound = 1.0 / math.sqrt(din)
    # stored as [d_in, d_out] (== PyTorch weight transposed); bias as (1, d_out)
    w = jax.random.uniform(kw, (din, dout), jnp.float32, -bound, bound)
    b = jax.random.uniform(kb, (1, dout), jnp.float32, -bound, bound)
    return w, b


def init_params(key, src_vocab, tgt_vocab, d_model, num_layers, d_ff, max_len):
    keys = iter(jax.random.split(key, 256))

    def nk():
        return next(keys)

    def lin(din, dout):
        return init_linear_params(nk(), din, dout)

    def mha_p():
        wq, bq = lin(d_model, d_model)
        wk, bk = lin(d_model, d_model)
        wv, bv = lin(d_model, d_model)
        wo, bo = lin(d_model, d_model)
        return {'wqkv': jnp.concatenate([wq, wk, wv], axis=1).astype(MXU_DTYPE),
                'bqkv': jnp.concatenate([bq, bk, bv], axis=1),   # (1, 3D) f32
                'wo': wo.astype(MXU_DTYPE), 'bo': bo}

    def norm_p():
        return {'g': jnp.ones((1, d_model), jnp.float32),
                'b': jnp.zeros((1, d_model), jnp.float32)}

    def ff_p():
        w1, b1 = lin(d_model, d_ff)
        w2, b2 = lin(d_ff, d_model)
        return {'w1': w1.astype(MXU_DTYPE), 'b1': b1,
                'w2': w2.astype(MXU_DTYPE), 'b2': b2}

    enc_layers = [{'self_attn': mha_p(), 'ff': ff_p(),
                   'norm1': norm_p(), 'norm2': norm_p()}
                  for _ in range(num_layers)]
    dec_layers = [{'self_attn': mha_p(), 'cross_attn': mha_p(), 'ff': ff_p(),
                   'norm1': norm_p(), 'norm2': norm_p(), 'norm3': norm_p()}
                  for _ in range(num_layers)]
    fc_w, fc_b = lin(d_model, tgt_vocab)
    return {
        'enc_emb': 0.1 * jax.random.normal(nk(), (src_vocab, d_model), jnp.float32),
        'dec_emb': 0.1 * jax.random.normal(nk(), (tgt_vocab, d_model), jnp.float32),
        'pe': make_pe(max_len, d_model),
        'enc_layers': enc_layers,
        'dec_layers': dec_layers,
        'fc': {'w': fc_w.astype(MXU_DTYPE), 'b': fc_b},
    }


# ----------------------------------- main -----------------------------------

if __name__ == "__main__":
    src_vocab, tgt_vocab = 16, 16
    d_model, num_heads, num_layers, d_ff, max_len = 32, 4, 2, 64, 16
    B, Ss, St = 2, 8, 8

    key = jax.random.PRNGKey(0)
    kp, ks, kt = jax.random.split(key, 3)
    params = init_params(kp, src_vocab, tgt_vocab, d_model, num_layers, d_ff, max_len)

    src = jax.random.randint(ks, (B, Ss), 1, src_vocab)
    tgt = jax.random.randint(kt, (B, St), 1, tgt_vocab)
    src = src.at[:, -1].set(0)   # add padding so masks are exercised
    tgt = tgt.at[:, -1].set(0)

    fwd = jax.jit(functools.partial(transformer_forward, num_heads=num_heads))
    out = fwd(params, src, tgt)
    out = jax.block_until_ready(out)

    assert out.shape == (B, St, tgt_vocab), out.shape
    assert bool(jnp.all(jnp.isfinite(out)))
    print("KERNEL_OK")
</pallas_src>

<mosaic_0001>
module attributes {stable_mosaic.version = 11 : i64} {
  func.func @_mha_addnorm_kernel(%arg0: i32, %arg1: memref<1x8x32xf32, #tpu.memory_space<vmem>>, %arg2: memref<1x8x1xf32, #tpu.memory_space<vmem>>, %arg3: memref<1x1x8xf32, #tpu.memory_space<vmem>>, %arg4: memref<32x96xbf16, #tpu.memory_space<vmem>>, %arg5: memref<1x96xf32, #tpu.memory_space<vmem>>, %arg6: memref<32x32xbf16, #tpu.memory_space<vmem>>, %arg7: memref<1x32xf32, #tpu.memory_space<vmem>>, %arg8: memref<1x32xf32, #tpu.memory_space<vmem>>, %arg9: memref<1x32xf32, #tpu.memory_space<vmem>>, %arg10: memref<1x8x32xf32, #tpu.memory_space<vmem>>, %arg11: memref<8x32xf32, #tpu.memory_space<vmem>>) attributes {dimension_semantics = [#tpu.dimension_semantics<parallel>], iteration_bounds = array<i64: 2>, scalar_prefetch = 0 : i64, scratch_operands = 1 : i64, tpu.core_type = #tpu.core_type<tc>, window_params = [{transform_indices = @transform_0, window_bounds = array<i64: 1, 8, 32>}, {transform_indices = @transform_1, window_bounds = array<i64: 1, 8, 1>}, {transform_indices = @transform_2, window_bounds = array<i64: 1, 1, 8>}, {pipeline_mode = #tpu.pipeline_mode<synchronous>, transform_indices = @transform_3, window_bounds = array<i64: 32, 96>}, {pipeline_mode = #tpu.pipeline_mode<synchronous>, transform_indices = @transform_4, window_bounds = array<i64: 1, 96>}, {pipeline_mode = #tpu.pipeline_mode<synchronous>, transform_indices = @transform_5, window_bounds = array<i64: 32, 32>}, {pipeline_mode = #tpu.pipeline_mode<synchronous>, transform_indices = @transform_6, window_bounds = array<i64: 1, 32>}, {pipeline_mode = #tpu.pipeline_mode<synchronous>, transform_indices = @transform_7, window_bounds = array<i64: 1, 32>}, {pipeline_mode = #tpu.pipeline_mode<synchronous>, transform_indices = @transform_8, window_bounds = array<i64: 1, 32>}, {transform_indices = @transform_9, window_bounds = array<i64: 1, 8, 32>}]} {
    %c0 = arith.constant 0 : index
    %c0_0 = arith.constant 0 : index
    %c0_1 = arith.constant 0 : index
    %0 = vector.load %arg1[%c0, %c0_0, %c0_1] : memref<1x8x32xf32, #tpu.memory_space<vmem>>, vector<1x8x32xf32>
    %1 = vector.shape_cast %0 : vector<1x8x32xf32> to vector<8x32xf32>
    %c0_2 = arith.constant 0 : index
    %c0_3 = arith.constant 0 : index
    %2 = vector.load %arg4[%c0_2, %c0_3] : memref<32x96xbf16, #tpu.memory_space<vmem>>, vector<32x96xbf16>
    %c0_4 = arith.constant 0 : index
    %c0_5 = arith.constant 0 : index
    %3 = vector.load %arg5[%c0_4, %c0_5] : memref<1x96xf32, #tpu.memory_space<vmem>>, vector<1x96xf32>
    %4 = arith.truncf %1 : vector<8x32xf32> to vector<8x32xbf16>
    %cst = arith.constant dense<0.000000e+00> : vector<8x96xf32>
    %5 = tpu.matmul %4, %2, %cst {dimension_numbers = #tpu.dot_dimension_numbers<[1], [0], [0], [1], [0, 0, 1, 1], [], []>} : vector<8x32xbf16>, vector<32x96xbf16>, vector<8x96xf32> -> vector<8x96xf32>
    %6 = vector.broadcast %3 : vector<1x96xf32> to vector<8x96xf32>
    %7 = arith.addf %5, %6 : vector<8x96xf32>
    %8 = vector.extract_strided_slice %7 {offsets = [0, 0], sizes = [8, 32], strides = [1, 1]} : vector<8x96xf32> to vector<8x32xf32>
    %cst_6 = arith.constant 0.353553385 : f32
    %9 = vector.broadcast %cst_6 : f32 to vector<8x32xf32>
    %10 = arith.mulf %8, %9 : vector<8x32xf32>
    %11 = vector.extract_strided_slice %7 {offsets = [0, 32], sizes = [8, 32], strides = [1, 1]} : vector<8x96xf32> to vector<8x32xf32>
    %12 = vector.extract_strided_slice %7 {offsets = [0, 64], sizes = [8, 32], strides = [1, 1]} : vector<8x96xf32> to vector<8x32xf32>
    %13 = arith.truncf %10 : vector<8x32xf32> to vector<8x32xbf16>
    %14 = arith.truncf %11 : vector<8x32xf32> to vector<8x32xbf16>
    %15 = arith.truncf %12 : vector<8x32xf32> to vector<8x32xbf16>
    %c0_7 = arith.constant 0 : index
    %c0_8 = arith.constant 0 : index
    %c0_9 = arith.constant 0 : index
    %16 = vector.load %arg3[%c0_7, %c0_8, %c0_9] : memref<1x1x8xf32, #tpu.memory_space<vmem>>, vector<1x1x8xf32>
    %17 = vector.shape_cast %16 : vector<1x1x8xf32> to vector<1x8xf32>
    %cst_10 = arith.constant 5.000000e-01 : f32
    %18 = vector.broadcast %cst_10 : f32 to vector<1x8xf32>
    %19 = arith.cmpf ogt, %17, %18 : vector<1x8xf32>
    %c0_11 = arith.constant 0 : index
    %c0_12 = arith.constant 0 : index
    %c0_13 = arith.constant 0 : index
    %20 = vector.load %arg2[%c0_11, %c0_12, %c0_13] : memref<1x8x1xf32, #tpu.memory_space<vmem>>, vector<1x8x1xf32>
    %21 = vector.shape_cast %20 : vector<1x8x1xf32> to vector<8x1xf32>
    %cst_14 = arith.constant 5.000000e-01 : f32
    %22 = vector.broadcast %cst_14 : f32 to vector<8x1xf32>
    %23 = arith.cmpf ogt, %21, %22 : vector<8x1xf32>
    %24 = vector.broadcast %23 : vector<8x1xi1> to vector<8x8xi1>
    %25 = vector.broadcast %19 : vector<1x8xi1> to vector<8x8xi1>
    %26 = arith.andi %24, %25 : vector<8x8xi1>
    %27 = vector.extract_strided_slice %13 {offsets = [0, 0], sizes = [8, 8], strides = [1, 1]} : vector<8x32xbf16> to vector<8x8xbf16>
    %28 = vector.extract_strided_slice %14 {offsets = [0, 0], sizes = [8, 8], strides = [1, 1]} : vector<8x32xbf16> to vector<8x8xbf16>
    %cst_15 = arith.constant dense<0.000000e+00> : vector<8x8xf32>
    %29 = tpu.matmul %27, %28, %cst_15 {dimension_numbers = #tpu.dot_dimension_numbers<[1], [1], [0], [0], [0, 0, 1, 0], [], []>} : vector<8x8xbf16>, vector<8x8xbf16>, vector<8x8xf32> -> vector<8x8xf32>
    %cst_16 = arith.constant -1.000000e+09 : f32
    %30 = vector.broadcast %cst_16 : f32 to vector<8x8xf32>
    %31 = arith.select %26, %29, %30 : vector<8x8xi1>, vector<8x8xf32>
    %cst_17 = arith.constant dense<0xFF800000> : vector<8xf32>
    %32 = vector.multi_reduction <maximumf>, %31, %cst_17 [1] : vector<8x8xf32> to vector<8xf32>
    %33 = vector.shape_cast %32 : vector<8xf32> to vector<8x1xf32>
    %34 = vector.broadcast %33 : vector<8x1xf32> to vector<8x8xf32>
    %35 = arith.subf %31, %34 : vector<8x8xf32>
    %36 = math.exp %35 : vector<8x8xf32>
    %cst_18 = arith.constant dense<0.000000e+00> : vector<8xf32>
    %37 = vector.multi_reduction <add>, %36, %cst_18 [1] : vector<8x8xf32> to vector<8xf32>
    %38 = vector.shape_cast %37 : vector<8xf32> to vector<8x1xf32>
    %39 = tpu.reciprocal %38 {approx = true} : vector<8x1xf32> -> vector<8x1xf32>
    %40 = vector.broadcast %39 : vector<8x1xf32> to vector<8x8xf32>
    %41 = arith.mulf %36, %40 : vector<8x8xf32>
    %42 = arith.truncf %41 : vector<8x8xf32> to vector<8x8xbf16>
    %43 = vector.extract_strided_slice %15 {offsets = [0, 0], sizes = [8, 8], strides = [1, 1]} : vector<8x32xbf16> to vector<8x8xbf16>
    %cst_19 = arith.constant dense<0.000000e+00> : vector<8x8xf32>
    %44 = tpu.matmul %42, %43, %cst_19 {dimension_numbers = #tpu.dot_dimension_numbers<[1], [0], [0], [1], [0, 0, 1, 1], [], []>} : vector<8x8xbf16>, vector<8x8xbf16>, vector<8x8xf32> -> vector<8x8xf32>
    %c0_20 = arith.constant 0 : index
    %c0_21 = arith.constant 0 : index
    %45 = vector.load %arg11[%c0_20, %c0_21] : memref<8x32xf32, #tpu.memory_space<vmem>>, vector<8x8xf32>
    tpu.vector_store %arg11[%c0_20, %c0_21], %44 {strides = array<i32>} : memref<8x32xf32, #tpu.memory_space<vmem>>, vector<8x8xf32>,
    %46 = vector.extract_strided_slice %13 {offsets = [0, 8], sizes = [8, 8], strides = [1, 1]} : vector<8x32xbf16> to vector<8x8xbf16>
    %47 = vector.extract_strided_slice %14 {offsets = [0, 8], sizes = [8, 8], strides = [1, 1]} : vector<8x32xbf16> to vector<8x8xbf16>
    %cst_22 = arith.constant dense<0.000000e+00> : vector<8x8xf32>
    %48 = tpu.matmul %46, %47, %cst_22 {dimension_numbers = #tpu.dot_dimension_numbers<[1], [1], [0], [0], [0, 0, 1, 0], [], []>} : vector<8x8xbf16>, vector<8x8xbf16>, vector<8x8xf32> -> vector<8x8xf32>
    %cst_23 = arith.constant -1.000000e+09 : f32
    %49 = vector.broadcast %cst_23 : f32 to vector<8x8xf32>
    %50 = arith.select %26, %48, %49 : vector<8x8xi1>, vector<8x8xf32>
    %cst_24 = arith.constant dense<0xFF800000> : vector<8xf32>
    %51 = vector.multi_reduction <maximumf>, %50, %cst_24 [1] : vector<8x8xf32> to vector<8xf32>
    %52 = vector.shape_cast %51 : vector<8xf32> to vector<8x1xf32>
    %53 = vector.broadcast %52 : vector<8x1xf32> to vector<8x8xf32>
    %54 = arith.subf %50, %53 : vector<8x8xf32>
    %55 = math.exp %54 : vector<8x8xf32>
    %cst_25 = arith.constant dense<0.000000e+00> : vector<8xf32>
    %56 = vector.multi_reduction <add>, %55, %cst_25 [1] : vector<8x8xf32> to vector<8xf32>
    %57 = vector.shape_cast %56 : vector<8xf32> to vector<8x1xf32>
    %58 = tpu.reciprocal %57 {approx = true} : vector<8x1xf32> -> vector<8x1xf32>
    %59 = vector.broadcast %58 : vector<8x1xf32> to vector<8x8xf32>
    %60 = arith.mulf %55, %59 : vector<8x8xf32>
    %61 = arith.truncf %60 : vector<8x8xf32> to vector<8x8xbf16>
    %62 = vector.extract_strided_slice %15 {offsets = [0, 8], sizes = [8, 8], strides = [1, 1]} : vector<8x32xbf16> to vector<8x8xbf16>
    %cst_26 = arith.constant dense<0.000000e+00> : vector<8x8xf32>
    %63 = tpu.matmul %61, %62, %cst_26 {dimension_numbers = #tpu.dot_dimension_numbers<[1], [0], [0], [1], [0, 0, 1, 1], [], []>} : vector<8x8xbf16>, vector<8x8xbf16>, vector<8x8xf32> -> vector<8x8xf32>
    %c0_27 = arith.constant 0 : index
    %c8 = arith.constant 8 : index
    %64 = vector.load %arg11[%c0_27, %c8] : memref<8x32xf32, #tpu.memory_space<vmem>>, vector<8x8xf32>
    tpu.vector_store %arg11[%c0_27, %c8], %63 {strides = array<i32>} : memref<8x32xf32, #tpu.memory_space<vmem>>, vector<8x8xf32>,
    %65 = vector.extract_strided_slice %13 {offsets = [0, 16], sizes = [8, 8], strides = [1, 1]} : vector<8x32xbf16> to vector<8x8xbf16>
    %66 = vector.extract_strided_slice %14 {offsets = [0, 16], sizes = [8, 8], strides = [1, 1]} : vector<8x32xbf16> to vector<8x8xbf16>
    %cst_28 = arith.constant dense<0.000000e+00> : vector<8x8xf32>
    %67 = tpu.matmul %65, %66, %cst_28 {dimension_numbers = #tpu.dot_dimension_numbers<[1], [1], [0], [0], [0, 0, 1, 0], [], []>} : vector<8x8xbf16>, vector<8x8xbf16>, vector<8x8xf32> -> vector<8x8xf32>
    %cst_29 = arith.constant -1.000000e+09 : f32
    %68 = vector.broadcast %cst_29 : f32 to vector<8x8xf32>
    %69 = arith.select %26, %67, %68 : vector<8x8xi1>, vector<8x8xf32>
    %cst_30 = arith.constant dense<0xFF800000> : vector<8xf32>
    %70 = vector.multi_reduction <maximumf>, %69, %cst_30 [1] : vector<8x8xf32> to vector<8xf32>
    %71 = vector.shape_cast %70 : vector<8xf32> to vector<8x1xf32>
    %72 = vector.broadcast %71 : vector<8x1xf32> to vector<8x8xf32>
    %73 = arith.subf %69, %72 : vector<8x8xf32>
    %74 = math.exp %73 : vector<8x8xf32>
    %cst_31 = arith.constant dense<0.000000e+00> : vector<8xf32>
    %75 = vector.multi_reduction <add>, %74, %cst_31 [1] : vector<8x8xf32> to vector<8xf32>
    %76 = vector.shape_cast %75 : vector<8xf32> to vector<8x1xf32>
    %77 = tpu.reciprocal %76 {approx = true} : vector<8x1xf32> -> vector<8x1xf32>
    %78 = vector.broadcast %77 : vector<8x1xf32> to vector<8x8xf32>
    %79 = arith.mulf %74, %78 : vector<8x8xf32>
    %80 = arith.truncf %79 : vector<8x8xf32> to vector<8x8xbf16>
    %81 = vector.extract_strided_slice %15 {offsets = [0, 16], sizes = [8, 8], strides = [1, 1]} : vector<8x32xbf16> to vector<8x8xbf16>
    %cst_32 = arith.constant dense<0.000000e+00> : vector<8x8xf32>
    %82 = tpu.matmul %80, %81, %cst_32 {dimension_numbers = #tpu.dot_dimension_numbers<[1], [0], [0], [1], [0, 0, 1, 1], [], []>} : vector<8x8xbf16>, vector<8x8xbf16>, vector<8x8xf32> -> vector<8x8xf32>
    %c0_33 = arith.constant 0 : index
    %c16 = arith.constant 16 : index
    %83 = vector.load %arg11[%c0_33, %c16] : memref<8x32xf32, #tpu.memory_space<vmem>>, vector<8x8xf32>
    tpu.vector_store %arg11[%c0_33, %c16], %82 {strides = array<i32>} : memref<8x32xf32, #tpu.memory_space<vmem>>, vector<8x8xf32>,
    %84 = vector.extract_strided_slice %13 {offsets = [0, 24], sizes = [8, 8], strides = [1, 1]} : vector<8x32xbf16> to vector<8x8xbf16>
    %85 = vector.extract_strided_slice %14 {offsets = [0, 24], sizes = [8, 8], strides = [1, 1]} : vector<8x32xbf16> to vector<8x8xbf16>
    %cst_34 = arith.constant dense<0.000000e+00> : vector<8x8xf32>
    %86 = tpu.matmul %84, %85, %cst_34 {dimension_numbers = #tpu.dot_dimension_numbers<[1], [1], [0], [0], [0, 0, 1, 0], [], []>} : vector<8x8xbf16>, vector<8x8xbf16>, vector<8x8xf32> -> vector<8x8xf32>
    %cst_35 = arith.constant -1.000000e+09 : f32
    %87 = vector.broadcast %cst_35 : f32 to vector<8x8xf32>
    %88 = arith.select %26, %86, %87 : vector<8x8xi1>, vector<8x8xf32>
    %cst_36 = arith.constant dense<0xFF800000> : vector<8xf32>
    %89 = vector.multi_reduction <maximumf>, %88, %cst_36 [1] : vector<8x8xf32> to vector<8xf32>
    %90 = vector.shape_cast %89 : vector<8xf32> to vector<8x1xf32>
    %91 = vector.broadcast %90 : vector<8x1xf32> to vector<8x8xf32>
    %92 = arith.subf %88, %91 : vector<8x8xf32>
    %93 = math.exp %92 : vector<8x8xf32>
    %cst_37 = arith.constant dense<0.000000e+00> : vector<8xf32>
    %94 = vector.multi_reduction <add>, %93, %cst_37 [1] : vector<8x8xf32> to vector<8xf32>
    %95 = vector.shape_cast %94 : vector<8xf32> to vector<8x1xf32>
    %96 = tpu.reciprocal %95 {approx = true} : vector<8x1xf32> -> vector<8x1xf32>
    %97 = vector.broadcast %96 : vector<8x1xf32> to vector<8x8xf32>
    %98 = arith.mulf %93, %97 : vector<8x8xf32>
    %99 = arith.truncf %98 : vector<8x8xf32> to vector<8x8xbf16>
    %100 = vector.extract_strided_slice %15 {offsets = [0, 24], sizes = [8, 8], strides = [1, 1]} : vector<8x32xbf16> to vector<8x8xbf16>
    %cst_38 = arith.constant dense<0.000000e+00> : vector<8x8xf32>
    %101 = tpu.matmul %99, %100, %cst_38 {dimension_numbers = #tpu.dot_dimension_numbers<[1], [0], [0], [1], [0, 0, 1, 1], [], []>} : vector<8x8xbf16>, vector<8x8xbf16>, vector<8x8xf32> -> vector<8x8xf32>
    %c0_39 = arith.constant 0 : index
    %c24 = arith.constant 24 : index
    %102 = vector.load %arg11[%c0_39, %c24] : memref<8x32xf32, #tpu.memory_space<vmem>>, vector<8x8xf32>
    tpu.vector_store %arg11[%c0_39, %c24], %101 {strides = array<i32>} : memref<8x32xf32, #tpu.memory_space<vmem>>, vector<8x8xf32>,
    %c0_40 = arith.constant 0 : index
    %c0_41 = arith.constant 0 : index
    %103 = vector.load %arg11[%c0_40, %c0_41] : memref<8x32xf32, #tpu.memory_space<vmem>>, vector<8x32xf32>
    %104 = arith.truncf %103 : vector<8x32xf32> to vector<8x32xbf16>
    %c0_42 = arith.constant 0 : index
    %c0_43 = arith.constant 0 : index
    %105 = vector.load %arg6[%c0_42, %c0_43] : memref<32x32xbf16, #tpu.memory_space<vmem>>, vector<32x32xbf16>
    %cst_44 = arith.constant dense<0.000000e+00> : vector<8x32xf32>
    %106 = tpu.matmul %104, %105, %cst_44 {dimension_numbers = #tpu.dot_dimension_numbers<[1], [0], [0], [1], [0, 0, 1, 1], [], []>} : vector<8x32xbf16>, vector<32x32xbf16>, vector<8x32xf32> -> vector<8x32xf32>
    %c0_45 = arith.constant 0 : index
    %c0_46 = arith.constant 0 : index
    %107 = vector.load %arg7[%c0_45, %c0_46] : memref<1x32xf32, #tpu.memory_space<vmem>>, vector<1x32xf32>
    %108 = vector.broadcast %107 : vector<1x32xf32> to vector<8x32xf32>
    %109 = arith.addf %106, %108 : vector<8x32xf32>
    %110 = arith.addf %1, %109 : vector<8x32xf32>
    %c0_47 = arith.constant 0 : index
    %c0_48 = arith.constant 0 : index
    %111 = vector.load %arg8[%c0_47, %c0_48] : memref<1x32xf32, #tpu.memory_space<vmem>>, vector<1x32xf32>
    %c0_49 = arith.constant 0 : index
    %c0_50 = arith.constant 0 : index
    %112 = vector.load %arg9[%c0_49, %c0_50] : memref<1x32xf32, #tpu.memory_space<vmem>>, vector<1x32xf32>
    %cst_51 = arith.constant dense<0.000000e+00> : vector<8xf32>
    %113 = vector.multi_reduction <add>, %110, %cst_51 [1] : vector<8x32xf32> to vector<8xf32>
    %114 = vector.shape_cast %113 : vector<8xf32> to vector<8x1xf32>
    %cst_52 = arith.constant 3.200000e+01 : f32
    %115 = vector.broadcast %cst_52 : f32 to vector<8x1xf32>
    %116 = arith.divf %114, %115 : vector<8x1xf32>
    %117 = vector.broadcast %116 : vector<8x1xf32> to vector<8x32xf32>
    %118 = arith.subf %110, %117 : vector<8x32xf32>
    %119 = arith.mulf %118, %118 : vector<8x32xf32>
    %cst_53 = arith.constant dense<0.000000e+00> : vector<8xf32>
    %120 = vector.multi_reduction <add>, %119, %cst_53 [1] : vector<8x32xf32> to vector<8xf32>
    %121 = vector.shape_cast %120 : vector<8xf32> to vector<8x1xf32>
    %cst_54 = arith.constant 3.200000e+01 : f32
    %122 = vector.broadcast %cst_54 : f32 to vector<8x1xf32>
    %123 = arith.divf %121, %122 : vector<8x1xf32>
    %124 = vector.broadcast %116 : vector<8x1xf32> to vector<8x32xf32>
    %125 = arith.subf %110, %124 : vector<8x32xf32>
    %cst_55 = arith.constant 9.99999974E-6 : f32
    %126 = vector.broadcast %cst_55 : f32 to vector<8x1xf32>
    %127 = arith.addf %123, %126 : vector<8x1xf32>
    %128 = math.rsqrt %127 : vector<8x1xf32>
    %129 = vector.broadcast %128 : vector<8x1xf32> to vector<8x32xf32>
    %130 = arith.mulf %125, %129 : vector<8x32xf32>
    %131 = vector.broadcast %111 : vector<1x32xf32> to vector<8x32xf32>
    %132 = arith.mulf %130, %131 : vector<8x32xf32>
    %133 = vector.broadcast %112 : vector<1x32xf32> to vector<8x32xf32>
    %134 = arith.addf %132, %133 : vector<8x32xf32>
    %c0_56 = arith.constant 0 : index
    %c0_57 = arith.constant 0 : index
    %c0_58 = arith.constant 0 : index
    %135 = vector.load %arg10[%c0_56, %c0_57, %c0_58] : memref<1x8x32xf32, #tpu.memory_space<vmem>>, vector<1x8x32xf32>
    %136 = vector.shape_cast %135 : vector<1x8x32xf32> to vector<8x32xf32>
    %137 = vector.shape_cast %134 : vector<8x32xf32> to vector<1x8x32xf32>
    tpu.vector_store %arg10[%c0_56, %c0_57, %c0_58], %137 {strides = array<i32>} : memref<1x8x32xf32, #tpu.memory_space<vmem>>, vector<1x8x32xf32>,
    return
  }
  func.func @transform_0(%arg0: i32) -> (i32, i32, i32) {
    %c0_i32 = arith.constant 0 : i32
    %c0_i32_0 = arith.constant 0 : i32
    %c0_i32_1 = arith.constant 0 : i32
    return %arg0, %c0_i32, %c0_i32_0 : i32, i32, i32
  }
  func.func @transform_1(%arg0: i32) -> (i32, i32, i32) {
    %c0_i32 = arith.constant 0 : i32
    %c0_i32_0 = arith.constant 0 : i32
    %c0_i32_1 = arith.constant 0 : i32
    return %arg0, %c0_i32, %c0_i32_0 : i32, i32, i32
  }
  func.func @transform_2(%arg0: i32) -> (i32, i32, i32) {
    %c0_i32 = arith.constant 0 : i32
    %c0_i32_0 = arith.constant 0 : i32
    %c0_i32_1 = arith.constant 0 : i32
    return %arg0, %c0_i32, %c0_i32_0 : i32, i32, i32
  }
  func.func @transform_3(%arg0: i32) -> (i32, i32) {
    %c0_i32 = arith.constant 0 : i32
    %c0_i32_0 = arith.constant 0 : i32
    %c0_i32_1 = arith.constant 0 : i32
    return %c0_i32, %c0_i32_0 : i32, i32
  }
  func.func @transform_4(%arg0: i32) -> (i32, i32) {
    %c0_i32 = arith.constant 0 : i32
    %c0_i32_0 = arith.constant 0 : i32
    %c0_i32_1 = arith.constant 0 : i32
    return %c0_i32, %c0_i32_0 : i32, i32
  }
  func.func @transform_5(%arg0: i32) -> (i32, i32) {
    %c0_i32 = arith.constant 0 : i32
    %c0_i32_0 = arith.constant 0 : i32
    %c0_i32_1 = arith.constant 0 : i32
    return %c0_i32, %c0_i32_0 : i32, i32
  }
  func.func @transform_6(%arg0: i32) -> (i32, i32) {
    %c0_i32 = arith.constant 0 : i32
    %c0_i32_0 = arith.constant 0 : i32
    %c0_i32_1 = arith.constant 0 : i32
    return %c0_i32, %c0_i32_0 : i32, i32
  }
  func.func @transform_7(%arg0: i32) -> (i32, i32) {
    %c0_i32 = arith.constant 0 : i32
    %c0_i32_0 = arith.constant 0 : i32
    %c0_i32_1 = arith.constant 0 : i32
    return %c0_i32, %c0_i32_0 : i32, i32
  }
  func.func @transform_8(%arg0: i32) -> (i32, i32) {
    %c0_i32 = arith.constant 0 : i32
    %c0_i32_0 = arith.constant 0 : i32
    %c0_i32_1 = arith.constant 0 : i32
    return %c0_i32, %c0_i32_0 : i32, i32
  }
  func.func @transform_9(%arg0: i32) -> (i32, i32, i32) {
    %c0_i32 = arith.constant 0 : i32
    %c0_i32_0 = arith.constant 0 : i32
    %c0_i32_1 = arith.constant 0 : i32
    return %arg0, %c0_i32, %c0_i32_0 : i32, i32, i32
  }
}

module attributes {stable_mosaic.version = 11 : i64} {
  func.func @_ffn_addnorm_kernel(%arg0: i32, %arg1: i32, %arg2: memref<16x32xf32, #tpu.memory_space<vmem>>, %arg3: memref<32x64xbf16, #tpu.memory_space<vmem>>, %arg4: memref<1x64xf32, #tpu.memory_space<vmem>>, %arg5: memref<64x32xbf16, #tpu.memory_space<vmem>>, %arg6: memref<1x32xf32, #tpu.memory_space<vmem>>, %arg7: memref<1x32xf32, #tpu.memory_space<vmem>>, %arg8: memref<1x32xf32, #tpu.memory_space<vmem>>, %arg9: memref<16x32xf32, #tpu.memory_space<vmem>>, %arg10: memref<16x32xf32, #tpu.memory_space<vmem>>) attributes {dimension_semantics = [#tpu.dimension_semantics<parallel>, #tpu.dimension_semantics<arbitrary>], iteration_bounds = array<i64: 1, 1>, scalar_prefetch = 0 : i64, scratch_operands = 1 : i64, tpu.core_type = #tpu.core_type<tc>, window_params = [{transform_indices = @transform_0, window_bounds = array<i64: 16, 32>}, {transform_indices = @transform_1, window_bounds = array<i64: 32, 64>}, {transform_indices = @transform_2, window_bounds = array<i64: 1, 64>}, {transform_indices = @transform_3, window_bounds = array<i64: 64, 32>}, {pipeline_mode = #tpu.pipeline_mode<synchronous>, transform_indices = @transform_4, window_bounds = array<i64: 1, 32>}, {pipeline_mode = #tpu.pipeline_mode<synchronous>, transform_indices = @transform_5, window_bounds = array<i64: 1, 32>}, {pipeline_mode = #tpu.pipeline_mode<synchronous>, transform_indices = @transform_6, window_bounds = array<i64: 1, 32>}, {transform_indices = @transform_7, window_bounds = array<i64: 16, 32>}]} {
    %c0_i32 = arith.constant 0 : i32
    %0 = arith.cmpi eq, %arg1, %c0_i32 : i32
    %1 = arith.extui %0 : i1 to i32
    %c0_i32_0 = arith.constant 0 : i32
    %2 = arith.cmpi ne, %1, %c0_i32_0 : i32
    scf.if %2 {
      %cst_16 = arith.constant 0.000000e+00 : f32
      %21 = vector.broadcast %cst_16 : f32 to vector<16x32xf32>
      %c0_17 = arith.constant 0 : index
      %c0_18 = arith.constant 0 : index
      %22 = vector.load %arg10[%c0_17, %c0_18] : memref<16x32xf32, #tpu.memory_space<vmem>>, vector<16x32xf32>
      tpu.vector_store %arg10[%c0_17, %c0_18], %21 {strides = array<i32>} : memref<16x32xf32, #tpu.memory_space<vmem>>, vector<16x32xf32>,
    } else {
    }
    %c0 = arith.constant 0 : index
    %c0_1 = arith.constant 0 : index
    %3 = vector.load %arg2[%c0, %c0_1] : memref<16x32xf32, #tpu.memory_space<vmem>>, vector<16x32xf32>
    %4 = arith.truncf %3 : vector<16x32xf32> to vector<16x32xbf16>
    %c0_2 = arith.constant 0 : index
    %c0_3 = arith.constant 0 : index
    %5 = vector.load %arg3[%c0_2, %c0_3] : memref<32x64xbf16, #tpu.memory_space<vmem>>, vector<32x64xbf16>
    %cst = arith.constant dense<0.000000e+00> : vector<16x64xf32>
    %6 = tpu.matmul %4, %5, %cst {dimension_numbers = #tpu.dot_dimension_numbers<[1], [0], [0], [1], [0, 0, 1, 1], [], []>} : vector<16x32xbf16>, vector<32x64xbf16>, vector<16x64xf32> -> vector<16x64xf32>
    %c0_4 = arith.constant 0 : index
    %c0_5 = arith.constant 0 : index
    %7 = vector.load %arg4[%c0_4, %c0_5] : memref<1x64xf32, #tpu.memory_space<vmem>>, vector<1x64xf32>
    %8 = vector.broadcast %7 : vector<1x64xf32> to vector<16x64xf32>
    %9 = arith.addf %6, %8 : vector<16x64xf32>
    %cst_6 = arith.constant 0.000000e+00 : f32
    %10 = vector.broadcast %cst_6 : f32 to vector<16x64xf32>
    %11 = arith.maximumf %9, %10 : vector<16x64xf32>
    %c0_7 = arith.constant 0 : index
    %c0_8 = arith.constant 0 : index
    %12 = vector.load %arg10[%c0_7, %c0_8] : memref<16x32xf32, #tpu.memory_space<vmem>>, vector<16x32xf32>
    %13 = arith.truncf %11 : vector<16x64xf32> to vector<16x64xbf16>
    %c0_9 = arith.constant 0 : index
    %c0_10 = arith.constant 0 : index
    %14 = vector.load %arg5[%c0_9, %c0_10] : memref<64x32xbf16, #tpu.memory_space<vmem>>, vector<64x32xbf16>
    %cst_11 = arith.constant dense<0.000000e+00> : vector<16x32xf32>
    %15 = tpu.matmul %13, %14, %cst_11 {dimension_numbers = #tpu.dot_dimension_numbers<[1], [0], [0], [1], [0, 0, 1, 1], [], []>} : vector<16x64xbf16>, vector<64x32xbf16>, vector<16x32xf32> -> vector<16x32xf32>
    %16 = arith.addf %12, %15 : vector<16x32xf32>
    %c0_12 = arith.constant 0 : index
    %c0_13 = arith.constant 0 : index
    %17 = vector.load %arg10[%c0_12, %c0_13] : memref<16x32xf32, #tpu.memory_space<vmem>>, vector<16x32xf32>
    tpu.vector_store %arg10[%c0_12, %c0_13], %16 {strides = array<i32>} : memref<16x32xf32, #tpu.memory_space<vmem>>, vector<16x32xf32>,
    %c0_i32_14 = arith.constant 0 : i32
    %18 = arith.cmpi eq, %arg1, %c0_i32_14 : i32
    %19 = arith.extui %18 : i1 to i32
    %c0_i32_15 = arith.constant 0 : i32
    %20 = arith.cmpi ne, %19, %c0_i32_15 : i32
    scf.if %20 {
      %c0_16 = arith.constant 0 : index
      %c0_17 = arith.constant 0 : index
      %21 = vector.load %arg10[%c0_16, %c0_17] : memref<16x32xf32, #tpu.memory_space<vmem>>, vector<16x32xf32>
      %22 = arith.addf %3, %21 : vector<16x32xf32>
      %c0_18 = arith.constant 0 : index
      %c0_19 = arith.constant 0 : index
      %23 = vector.load %arg6[%c0_18, %c0_19] : memref<1x32xf32, #tpu.memory_space<vmem>>, vector<1x32xf32>
      %24 = vector.broadcast %23 : vector<1x32xf32> to vector<16x32xf32>
      %25 = arith.addf %22, %24 : vector<16x32xf32>
      %c0_20 = arith.constant 0 : index
      %c0_21 = arith.constant 0 : index
      %26 = vector.load %arg7[%c0_20, %c0_21] : memref<1x32xf32, #tpu.memory_space<vmem>>, vector<1x32xf32>
      %c0_22 = arith.constant 0 : index
      %c0_23 = arith.constant 0 : index
      %27 = vector.load %arg8[%c0_22, %c0_23] : memref<1x32xf32, #tpu.memory_space<vmem>>, vector<1x32xf32>
      %cst_24 = arith.constant dense<0.000000e+00> : vector<16xf32>
      %28 = vector.multi_reduction <add>, %25, %cst_24 [1] : vector<16x32xf32> to vector<16xf32>
      %29 = vector.shape_cast %28 : vector<16xf32> to vector<16x1xf32>
      %cst_25 = arith.constant 3.200000e+01 : f32
      %30 = vector.broadcast %cst_25 : f32 to vector<16x1xf32>
      %31 = arith.divf %29, %30 : vector<16x1xf32>
      %32 = vector.broadcast %31 : vector<16x1xf32> to vector<16x32xf32>
      %33 = arith.subf %25, %32 : vector<16x32xf32>
      %34 = arith.mulf %33, %33 : vector<16x32xf32>
      %cst_26 = arith.constant dense<0.000000e+00> : vector<16xf32>
      %35 = vector.multi_reduction <add>, %34, %cst_26 [1] : vector<16x32xf32> to vector<16xf32>
      %36 = vector.shape_cast %35 : vector<16xf32> to vector<16x1xf32>
      %cst_27 = arith.constant 3.200000e+01 : f32
      %37 = vector.broadcast %cst_27 : f32 to vector<16x1xf32>
      %38 = arith.divf %36, %37 : vector<16x1xf32>
      %39 = vector.broadcast %31 : vector<16x1xf32> to vector<16x32xf32>
      %40 = arith.subf %25, %39 : vector<16x32xf32>
      %cst_28 = arith.constant 9.99999974E-6 : f32
      %41 = vector.broadcast %cst_28 : f32 to vector<16x1xf32>
      %42 = arith.addf %38, %41 : vector<16x1xf32>
      %43 = math.rsqrt %42 : vector<16x1xf32>
      %44 = vector.broadcast %43 : vector<16x1xf32> to vector<16x32xf32>
      %45 = arith.mulf %40, %44 : vector<16x32xf32>
      %46 = vector.broadcast %26 : vector<1x32xf32> to vector<16x32xf32>
      %47 = arith.mulf %45, %46 : vector<16x32xf32>
      %48 = vector.broadcast %27 : vector<1x32xf32> to vector<16x32xf32>
      %49 = arith.addf %47, %48 : vector<16x32xf32>
      %c0_29 = arith.constant 0 : index
      %c0_30 = arith.constant 0 : index
      %50 = vector.load %arg9[%c0_29, %c0_30] : memref<16x32xf32, #tpu.memory_space<vmem>>, vector<16x32xf32>
      tpu.vector_store %arg9[%c0_29, %c0_30], %49 {strides = array<i32>} : memref<16x32xf32, #tpu.memory_space<vmem>>, vector<16x32xf32>,
    } else {
    }
    return
  }
  func.func @transform_0(%arg0: i32, %arg1: i32) -> (i32, i32) {
    %c0_i32 = arith.constant 0 : i32
    %c0_i32_0 = arith.constant 0 : i32
    return %arg0, %c0_i32 : i32, i32
  }
  func.func @transform_1(%arg0: i32, %arg1: i32) -> (i32, i32) {
    %c0_i32 = arith.constant 0 : i32
    %c0_i32_0 = arith.constant 0 : i32
    return %c0_i32, %arg1 : i32, i32
  }
  func.func @transform_2(%arg0: i32, %arg1: i32) -> (i32, i32) {
    %c0_i32 = arith.constant 0 : i32
    %c0_i32_0 = arith.constant 0 : i32
    return %c0_i32, %arg1 : i32, i32
  }
  func.func @transform_3(%arg0: i32, %arg1: i32) -> (i32, i32) {
    %c0_i32 = arith.constant 0 : i32
    %c0_i32_0 = arith.constant 0 : i32
    return %arg1, %c0_i32 : i32, i32
  }
  func.func @transform_4(%arg0: i32, %arg1: i32) -> (i32, i32) {
    %c0_i32 = arith.constant 0 : i32
    %c0_i32_0 = arith.constant 0 : i32
    %c0_i32_1 = arith.constant 0 : i32
    return %c0_i32, %c0_i32_0 : i32, i32
  }
  func.func @transform_5(%arg0: i32, %arg1: i32) -> (i32, i32) {
    %c0_i32 = arith.constant 0 : i32
    %c0_i32_0 = arith.constant 0 : i32
    %c0_i32_1 = arith.constant 0 : i32
    return %c0_i32, %c0_i32_0 : i32, i32
  }
  func.func @transform_6(%arg0: i32, %arg1: i32) -> (i32, i32) {
    %c0_i32 = arith.constant 0 : i32
    %c0_i32_0 = arith.constant 0 : i32
    %c0_i32_1 = arith.constant 0 : i32
    return %c0_i32, %c0_i32_0 : i32, i32
  }
  func.func @transform_7(%arg0: i32, %arg1: i32) -> (i32, i32) {
    %c0_i32 = arith.constant 0 : i32
    %c0_i32_0 = arith.constant 0 : i32
    return %arg0, %c0_i32 : i32, i32
  }
}

module attributes {stable_mosaic.version = 11 : i64} {
  func.func @_mha_addnorm_kernel(%arg0: i32, %arg1: i32, %arg2: memref<1x8x32xf32, #tpu.memory_space<vmem>>, %arg3: memref<1x8x32xf32, #tpu.memory_space<vmem>>, %arg4: memref<1x8x1xf32, #tpu.memory_space<vmem>>, %arg5: memref<1x1x8xf32, #tpu.memory_space<vmem>>, %arg6: memref<32x96xbf16, #tpu.memory_space<vmem>>, %arg7: memref<1x96xf32, #tpu.memory_space<vmem>>, %arg8: memref<32x32xbf16, #tpu.memory_space<vmem>>, %arg9: memref<1x32xf32, #tpu.memory_space<vmem>>, %arg10: memref<1x32xf32, #tpu.memory_space<vmem>>, %arg11: memref<1x32xf32, #tpu.memory_space<vmem>>, %arg12: memref<1x8x32xf32, #tpu.memory_space<vmem>>, %arg13: memref<8x32xf32, #tpu.memory_space<vmem>>) attributes {dimension_semantics = [#tpu.dimension_semantics<parallel>, #tpu.dimension_semantics<parallel>], iteration_bounds = array<i64: 2, 1>, scalar_prefetch = 0 : i64, scratch_operands = 1 : i64, tpu.core_type = #tpu.core_type<tc>, window_params = [{transform_indices = @transform_0, window_bounds = array<i64: 1, 8, 32>}, {transform_indices = @transform_1, window_bounds = array<i64: 1, 8, 32>}, {transform_indices = @transform_2, window_bounds = array<i64: 1, 8, 1>}, {transform_indices = @transform_3, window_bounds = array<i64: 1, 1, 8>}, {pipeline_mode = #tpu.pipeline_mode<synchronous>, transform_indices = @transform_4, window_bounds = array<i64: 32, 96>}, {pipeline_mode = #tpu.pipeline_mode<synchronous>, transform_indices = @transform_5, window_bounds = array<i64: 1, 96>}, {pipeline_mode = #tpu.pipeline_mode<synchronous>, transform_indices = @transform_6, window_bounds = array<i64: 32, 32>}, {pipeline_mode = #tpu.pipeline_mode<synchronous>, transform_indices = @transform_7, window_bounds = array<i64: 1, 32>}, {pipeline_mode = #tpu.pipeline_mode<synchronous>, transform_indices = @transform_8, window_bounds = array<i64: 1, 32>}, {pipeline_mode = #tpu.pipeline_mode<synchronous>, transform_indices = @transform_9, window_bounds = array<i64: 1, 32>}, {transform_indices = @transform_10, window_bounds = array<i64: 1, 8, 32>}]} {
    %c0 = arith.constant 0 : index
    %c0_0 = arith.constant 0 : index
    %c0_1 = arith.constant 0 : index
    %0 = vector.load %arg2[%c0, %c0_0, %c0_1] : memref<1x8x32xf32, #tpu.memory_space<vmem>>, vector<1x8x32xf32>
    %1 = vector.shape_cast %0 : vector<1x8x32xf32> to vector<8x32xf32>
    %c0_2 = arith.constant 0 : index
    %c0_3 = arith.constant 0 : index
    %2 = vector.load %arg6[%c0_2, %c0_3] : memref<32x96xbf16, #tpu.memory_space<vmem>>, vector<32x96xbf16>
    %c0_4 = arith.constant 0 : index
    %c0_5 = arith.constant 0 : index
    %3 = vector.load %arg7[%c0_4, %c0_5] : memref<1x96xf32, #tpu.memory_space<vmem>>, vector<1x96xf32>
    %c0_6 = arith.constant 0 : index
    %c0_7 = arith.constant 0 : index
    %c0_8 = arith.constant 0 : index
    %4 = vector.load %arg3[%c0_6, %c0_7, %c0_8] : memref<1x8x32xf32, #tpu.memory_space<vmem>>, vector<1x8x32xf32>
    %5 = vector.shape_cast %4 : vector<1x8x32xf32> to vector<8x32xf32>
    %6 = arith.truncf %1 : vector<8x32xf32> to vector<8x32xbf16>
    %7 = vector.extract_strided_slice %2 {offsets = [0, 0], sizes = [32, 32], strides = [1, 1]} : vector<32x96xbf16> to vector<32x32xbf16>
    %cst = arith.constant dense<0.000000e+00> : vector<8x32xf32>
    %8 = tpu.matmul %6, %7, %cst {dimension_numbers = #tpu.dot_dimension_numbers<[1], [0], [0], [1], [0, 0, 1, 1], [], []>} : vector<8x32xbf16>, vector<32x32xbf16>, vector<8x32xf32> -> vector<8x32xf32>
    %9 = vector.extract_strided_slice %3 {offsets = [0, 0], sizes = [1, 32], strides = [1, 1]} : vector<1x96xf32> to vector<1x32xf32>
    %10 = vector.broadcast %9 : vector<1x32xf32> to vector<8x32xf32>
    %11 = arith.addf %8, %10 : vector<8x32xf32>
    %cst_9 = arith.constant 0.353553385 : f32
    %12 = vector.broadcast %cst_9 : f32 to vector<8x32xf32>
    %13 = arith.mulf %11, %12 : vector<8x32xf32>
    %14 = arith.truncf %5 : vector<8x32xf32> to vector<8x32xbf16>
    %15 = vector.extract_strided_slice %2 {offsets = [0, 32], sizes = [32, 64], strides = [1, 1]} : vector<32x96xbf16> to vector<32x64xbf16>
    %cst_10 = arith.constant dense<0.000000e+00> : vector<8x64xf32>
    %16 = tpu.matmul %14, %15, %cst_10 {dimension_numbers = #tpu.dot_dimension_numbers<[1], [0], [0], [1], [0, 0, 1, 1], [], []>} : vector<8x32xbf16>, vector<32x64xbf16>, vector<8x64xf32> -> vector<8x64xf32>
    %17 = vector.extract_strided_slice %3 {offsets = [0, 32], sizes = [1, 64], strides = [1, 1]} : vector<1x96xf32> to vector<1x64xf32>
    %18 = vector.broadcast %17 : vector<1x64xf32> to vector<8x64xf32>
    %19 = arith.addf %16, %18 : vector<8x64xf32>
    %20 = vector.extract_strided_slice %19 {offsets = [0, 0], sizes = [8, 32], strides = [1, 1]} : vector<8x64xf32> to vector<8x32xf32>
    %21 = vector.extract_strided_slice %19 {offsets = [0, 32], sizes = [8, 32], strides = [1, 1]} : vector<8x64xf32> to vector<8x32xf32>
    %22 = arith.truncf %13 : vector<8x32xf32> to vector<8x32xbf16>
    %23 = arith.truncf %20 : vector<8x32xf32> to vector<8x32xbf16>
    %24 = arith.truncf %21 : vector<8x32xf32> to vector<8x32xbf16>
    %c0_11 = arith.constant 0 : index
    %c0_12 = arith.constant 0 : index
    %c0_13 = arith.constant 0 : index
    %25 = vector.load %arg5[%c0_11, %c0_12, %c0_13] : memref<1x1x8xf32, #tpu.memory_space<vmem>>, vector<1x1x8xf32>
    %26 = vector.shape_cast %25 : vector<1x1x8xf32> to vector<1x8xf32>
    %cst_14 = arith.constant 5.000000e-01 : f32
    %27 = vector.broadcast %cst_14 : f32 to vector<1x8xf32>
    %28 = arith.cmpf ogt, %26, %27 : vector<1x8xf32>
    %c0_15 = arith.constant 0 : index
    %c0_16 = arith.constant 0 : index
    %c0_17 = arith.constant 0 : index
    %29 = vector.load %arg4[%c0_15, %c0_16, %c0_17] : memref<1x8x1xf32, #tpu.memory_space<vmem>>, vector<1x8x1xf32>
    %30 = vector.shape_cast %29 : vector<1x8x1xf32> to vector<8x1xf32>
    %cst_18 = arith.constant 5.000000e-01 : f32
    %31 = vector.broadcast %cst_18 : f32 to vector<8x1xf32>
    %32 = arith.cmpf ogt, %30, %31 : vector<8x1xf32>
    %33 = vector.broadcast %32 : vector<8x1xi1> to vector<8x8xi1>
    %34 = vector.broadcast %28 : vector<1x8xi1> to vector<8x8xi1>
    %35 = arith.andi %33, %34 : vector<8x8xi1>
    %36 = vector.extract_strided_slice %22 {offsets = [0, 0], sizes = [8, 8], strides = [1, 1]} : vector<8x32xbf16> to vector<8x8xbf16>
    %37 = vector.extract_strided_slice %23 {offsets = [0, 0], sizes = [8, 8], strides = [1, 1]} : vector<8x32xbf16> to vector<8x8xbf16>
    %cst_19 = arith.constant dense<0.000000e+00> : vector<8x8xf32>
    %38 = tpu.matmul %36, %37, %cst_19 {dimension_numbers = #tpu.dot_dimension_numbers<[1], [1], [0], [0], [0, 0, 1, 0], [], []>} : vector<8x8xbf16>, vector<8x8xbf16>, vector<8x8xf32> -> vector<8x8xf32>
    %cst_20 = arith.constant -1.000000e+09 : f32
    %39 = vector.broadcast %cst_20 : f32 to vector<8x8xf32>
    %40 = arith.select %35, %38, %39 : vector<8x8xi1>, vector<8x8xf32>
    %cst_21 = arith.constant dense<0xFF800000> : vector<8xf32>
    %41 = vector.multi_reduction <maximumf>, %40, %cst_21 [1] : vector<8x8xf32> to vector<8xf32>
    %42 = vector.shape_cast %41 : vector<8xf32> to vector<8x1xf32>
    %43 = vector.broadcast %42 : vector<8x1xf32> to vector<8x8xf32>
    %44 = arith.subf %40, %43 : vector<8x8xf32>
    %45 = math.exp %44 : vector<8x8xf32>
    %cst_22 = arith.constant dense<0.000000e+00> : vector<8xf32>
    %46 = vector.multi_reduction <add>, %45, %cst_22 [1] : vector<8x8xf32> to vector<8xf32>
    %47 = vector.shape_cast %46 : vector<8xf32> to vector<8x1xf32>
    %48 = tpu.reciprocal %47 {approx = true} : vector<8x1xf32> -> vector<8x1xf32>
    %49 = vector.broadcast %48 : vector<8x1xf32> to vector<8x8xf32>
    %50 = arith.mulf %45, %49 : vector<8x8xf32>
    %51 = arith.truncf %50 : vector<8x8xf32> to vector<8x8xbf16>
    %52 = vector.extract_strided_slice %24 {offsets = [0, 0], sizes = [8, 8], strides = [1, 1]} : vector<8x32xbf16> to vector<8x8xbf16>
    %cst_23 = arith.constant dense<0.000000e+00> : vector<8x8xf32>
    %53 = tpu.matmul %51, %52, %cst_23 {dimension_numbers = #tpu.dot_dimension_numbers<[1], [0], [0], [1], [0, 0, 1, 1], [], []>} : vector<8x8xbf16>, vector<8x8xbf16>, vector<8x8xf32> -> vector<8x8xf32>
    %c0_24 = arith.constant 0 : index
    %c0_25 = arith.constant 0 : index
    %54 = vector.load %arg13[%c0_24, %c0_25] : memref<8x32xf32, #tpu.memory_space<vmem>>, vector<8x8xf32>
    tpu.vector_store %arg13[%c0_24, %c0_25], %53 {strides = array<i32>} : memref<8x32xf32, #tpu.memory_space<vmem>>, vector<8x8xf32>,
    %55 = vector.extract_strided_slice %22 {offsets = [0, 8], sizes = [8, 8], strides = [1, 1]} : vector<8x32xbf16> to vector<8x8xbf16>
    %56 = vector.extract_strided_slice %23 {offsets = [0, 8], sizes = [8, 8], strides = [1, 1]} : vector<8x32xbf16> to vector<8x8xbf16>
    %cst_26 = arith.constant dense<0.000000e+00> : vector<8x8xf32>
    %57 = tpu.matmul %55, %56, %cst_26 {dimension_numbers = #tpu.dot_dimension_numbers<[1], [1], [0], [0], [0, 0, 1, 0], [], []>} : vector<8x8xbf16>, vector<8x8xbf16>, vector<8x8xf32> -> vector<8x8xf32>
    %cst_27 = arith.constant -1.000000e+09 : f32
    %58 = vector.broadcast %cst_27 : f32 to vector<8x8xf32>
    %59 = arith.select %35, %57, %58 : vector<8x8xi1>, vector<8x8xf32>
    %cst_28 = arith.constant dense<0xFF800000> : vector<8xf32>
    %60 = vector.multi_reduction <maximumf>, %59, %cst_28 [1] : vector<8x8xf32> to vector<8xf32>
    %61 = vector.shape_cast %60 : vector<8xf32> to vector<8x1xf32>
    %62 = vector.broadcast %61 : vector<8x1xf32> to vector<8x8xf32>
    %63 = arith.subf %59, %62 : vector<8x8xf32>
    %64 = math.exp %63 : vector<8x8xf32>
    %cst_29 = arith.constant dense<0.000000e+00> : vector<8xf32>
    %65 = vector.multi_reduction <add>, %64, %cst_29 [1] : vector<8x8xf32> to vector<8xf32>
    %66 = vector.shape_cast %65 : vector<8xf32> to vector<8x1xf32>
    %67 = tpu.reciprocal %66 {approx = true} : vector<8x1xf32> -> vector<8x1xf32>
    %68 = vector.broadcast %67 : vector<8x1xf32> to vector<8x8xf32>
    %69 = arith.mulf %64, %68 : vector<8x8xf32>
    %70 = arith.truncf %69 : vector<8x8xf32> to vector<8x8xbf16>
    %71 = vector.extract_strided_slice %24 {offsets = [0, 8], sizes = [8, 8], strides = [1, 1]} : vector<8x32xbf16> to vector<8x8xbf16>
    %cst_30 = arith.constant dense<0.000000e+00> : vector<8x8xf32>
    %72 = tpu.matmul %70, %71, %cst_30 {dimension_numbers = #tpu.dot_dimension_numbers<[1], [0], [0], [1], [0, 0, 1, 1], [], []>} : vector<8x8xbf16>, vector<8x8xbf16>, vector<8x8xf32> -> vector<8x8xf32>
    %c0_31 = arith.constant 0 : index
    %c8 = arith.constant 8 : index
    %73 = vector.load %arg13[%c0_31, %c8] : memref<8x32xf32, #tpu.memory_space<vmem>>, vector<8x8xf32>
    tpu.vector_store %arg13[%c0_31, %c8], %72 {strides = array<i32>} : memref<8x32xf32, #tpu.memory_space<vmem>>, vector<8x8xf32>,
    %74 = vector.extract_strided_slice %22 {offsets = [0, 16], sizes = [8, 8], strides = [1, 1]} : vector<8x32xbf16> to vector<8x8xbf16>
    %75 = vector.extract_strided_slice %23 {offsets = [0, 16], sizes = [8, 8], strides = [1, 1]} : vector<8x32xbf16> to vector<8x8xbf16>
    %cst_32 = arith.constant dense<0.000000e+00> : vector<8x8xf32>
    %76 = tpu.matmul %74, %75, %cst_32 {dimension_numbers = #tpu.dot_dimension_numbers<[1], [1], [0], [0], [0, 0, 1, 0], [], []>} : vector<8x8xbf16>, vector<8x8xbf16>, vector<8x8xf32> -> vector<8x8xf32>
    %cst_33 = arith.constant -1.000000e+09 : f32
    %77 = vector.broadcast %cst_33 : f32 to vector<8x8xf32>
    %78 = arith.select %35, %76, %77 : vector<8x8xi1>, vector<8x8xf32>
    %cst_34 = arith.constant dense<0xFF800000> : vector<8xf32>
    %79 = vector.multi_reduction <maximumf>, %78, %cst_34 [1] : vector<8x8xf32> to vector<8xf32>
    %80 = vector.shape_cast %79 : vector<8xf32> to vector<8x1xf32>
    %81 = vector.broadcast %80 : vector<8x1xf32> to vector<8x8xf32>
    %82 = arith.subf %78, %81 : vector<8x8xf32>
    %83 = math.exp %82 : vector<8x8xf32>
    %cst_35 = arith.constant dense<0.000000e+00> : vector<8xf32>
    %84 = vector.multi_reduction <add>, %83, %cst_35 [1] : vector<8x8xf32> to vector<8xf32>
    %85 = vector.shape_cast %84 : vector<8xf32> to vector<8x1xf32>
    %86 = tpu.reciprocal %85 {approx = true} : vector<8x1xf32> -> vector<8x1xf32>
    %87 = vector.broadcast %86 : vector<8x1xf32> to vector<8x8xf32>
    %88 = arith.mulf %83, %87 : vector<8x8xf32>
    %89 = arith.truncf %88 : vector<8x8xf32> to vector<8x8xbf16>
    %90 = vector.extract_strided_slice %24 {offsets = [0, 16], sizes = [8, 8], strides = [1, 1]} : vector<8x32xbf16> to vector<8x8xbf16>
    %cst_36 = arith.constant dense<0.000000e+00> : vector<8x8xf32>
    %91 = tpu.matmul %89, %90, %cst_36 {dimension_numbers = #tpu.dot_dimension_numbers<[1], [0], [0], [1], [0, 0, 1, 1], [], []>} : vector<8x8xbf16>, vector<8x8xbf16>, vector<8x8xf32> -> vector<8x8xf32>
    %c0_37 = arith.constant 0 : index
    %c16 = arith.constant 16 : index
    %92 = vector.load %arg13[%c0_37, %c16] : memref<8x32xf32, #tpu.memory_space<vmem>>, vector<8x8xf32>
    tpu.vector_store %arg13[%c0_37, %c16], %91 {strides = array<i32>} : memref<8x32xf32, #tpu.memory_space<vmem>>, vector<8x8xf32>,
    %93 = vector.extract_strided_slice %22 {offsets = [0, 24], sizes = [8, 8], strides = [1, 1]} : vector<8x32xbf16> to vector<8x8xbf16>
    %94 = vector.extract_strided_slice %23 {offsets = [0, 24], sizes = [8, 8], strides = [1, 1]} : vector<8x32xbf16> to vector<8x8xbf16>
    %cst_38 = arith.constant dense<0.000000e+00> : vector<8x8xf32>
    %95 = tpu.matmul %93, %94, %cst_38 {dimension_numbers = #tpu.dot_dimension_numbers<[1], [1], [0], [0], [0, 0, 1, 0], [], []>} : vector<8x8xbf16>, vector<8x8xbf16>, vector<8x8xf32> -> vector<8x8xf32>
    %cst_39 = arith.constant -1.000000e+09 : f32
    %96 = vector.broadcast %cst_39 : f32 to vector<8x8xf32>
    %97 = arith.select %35, %95, %96 : vector<8x8xi1>, vector<8x8xf32>
    %cst_40 = arith.constant dense<0xFF800000> : vector<8xf32>
    %98 = vector.multi_reduction <maximumf>, %97, %cst_40 [1] : vector<8x8xf32> to vector<8xf32>
    %99 = vector.shape_cast %98 : vector<8xf32> to vector<8x1xf32>
    %100 = vector.broadcast %99 : vector<8x1xf32> to vector<8x8xf32>
    %101 = arith.subf %97, %100 : vector<8x8xf32>
    %102 = math.exp %101 : vector<8x8xf32>
    %cst_41 = arith.constant dense<0.000000e+00> : vector<8xf32>
    %103 = vector.multi_reduction <add>, %102, %cst_41 [1] : vector<8x8xf32> to vector<8xf32>
    %104 = vector.shape_cast %103 : vector<8xf32> to vector<8x1xf32>
    %105 = tpu.reciprocal %104 {approx = true} : vector<8x1xf32> -> vector<8x1xf32>
    %106 = vector.broadcast %105 : vector<8x1xf32> to vector<8x8xf32>
    %107 = arith.mulf %102, %106 : vector<8x8xf32>
    %108 = arith.truncf %107 : vector<8x8xf32> to vector<8x8xbf16>
    %109 = vector.extract_strided_slice %24 {offsets = [0, 24], sizes = [8, 8], strides = [1, 1]} : vector<8x32xbf16> to vector<8x8xbf16>
    %cst_42 = arith.constant dense<0.000000e+00> : vector<8x8xf32>
    %110 = tpu.matmul %108, %109, %cst_42 {dimension_numbers = #tpu.dot_dimension_numbers<[1], [0], [0], [1], [0, 0, 1, 1], [], []>} : vector<8x8xbf16>, vector<8x8xbf16>, vector<8x8xf32> -> vector<8x8xf32>
    %c0_43 = arith.constant 0 : index
    %c24 = arith.constant 24 : index
    %111 = vector.load %arg13[%c0_43, %c24] : memref<8x32xf32, #tpu.memory_space<vmem>>, vector<8x8xf32>
    tpu.vector_store %arg13[%c0_43, %c24], %110 {strides = array<i32>} : memref<8x32xf32, #tpu.memory_space<vmem>>, vector<8x8xf32>,
    %c0_44 = arith.constant 0 : index
    %c0_45 = arith.constant 0 : index
    %112 = vector.load %arg13[%c0_44, %c0_45] : memref<8x32xf32, #tpu.memory_space<vmem>>, vector<8x32xf32>
    %113 = arith.truncf %112 : vector<8x32xf32> to vector<8x32xbf16>
    %c0_46 = arith.constant 0 : index
    %c0_47 = arith.constant 0 : index
    %114 = vector.load %arg8[%c0_46, %c0_47] : memref<32x32xbf16, #tpu.memory_space<vmem>>, vector<32x32xbf16>
    %cst_48 = arith.constant dense<0.000000e+00> : vector<8x32xf32>
    %115 = tpu.matmul %113, %114, %cst_48 {dimension_numbers = #tpu.dot_dimension_numbers<[1], [0], [0], [1], [0, 0, 1, 1], [], []>} : vector<8x32xbf16>, vector<32x32xbf16>, vector<8x32xf32> -> vector<8x32xf32>
    %c0_49 = arith.constant 0 : index
    %c0_50 = arith.constant 0 : index
    %116 = vector.load %arg9[%c0_49, %c0_50] : memref<1x32xf32, #tpu.memory_space<vmem>>, vector<1x32xf32>
    %117 = vector.broadcast %116 : vector<1x32xf32> to vector<8x32xf32>
    %118 = arith.addf %115, %117 : vector<8x32xf32>
    %119 = arith.addf %1, %118 : vector<8x32xf32>
    %c0_51 = arith.constant 0 : index
    %c0_52 = arith.constant 0 : index
    %120 = vector.load %arg10[%c0_51, %c0_52] : memref<1x32xf32, #tpu.memory_space<vmem>>, vector<1x32xf32>
    %c0_53 = arith.constant 0 : index
    %c0_54 = arith.constant 0 : index
    %121 = vector.load %arg11[%c0_53, %c0_54] : memref<1x32xf32, #tpu.memory_space<vmem>>, vector<1x32xf32>
    %cst_55 = arith.constant dense<0.000000e+00> : vector<8xf32>
    %122 = vector.multi_reduction <add>, %119, %cst_55 [1] : vector<8x32xf32> to vector<8xf32>
    %123 = vector.shape_cast %122 : vector<8xf32> to vector<8x1xf32>
    %cst_56 = arith.constant 3.200000e+01 : f32
    %124 = vector.broadcast %cst_56 : f32 to vector<8x1xf32>
    %125 = arith.divf %123, %124 : vector<8x1xf32>
    %126 = vector.broadcast %125 : vector<8x1xf32> to vector<8x32xf32>
    %127 = arith.subf %119, %126 : vector<8x32xf32>
    %128 = arith.mulf %127, %127 : vector<8x32xf32>
    %cst_57 = arith.constant dense<0.000000e+00> : vector<8xf32>
    %129 = vector.multi_reduction <add>, %128, %cst_57 [1] : vector<8x32xf32> to vector<8xf32>
    %130 = vector.shape_cast %129 : vector<8xf32> to vector<8x1xf32>
    %cst_58 = arith.constant 3.200000e+01 : f32
    %131 = vector.broadcast %cst_58 : f32 to vector<8x1xf32>
    %132 = arith.divf %130, %131 : vector<8x1xf32>
    %133 = vector.broadcast %125 : vector<8x1xf32> to vector<8x32xf32>
    %134 = arith.subf %119, %133 : vector<8x32xf32>
    %cst_59 = arith.constant 9.99999974E-6 : f32
    %135 = vector.broadcast %cst_59 : f32 to vector<8x1xf32>
    %136 = arith.addf %132, %135 : vector<8x1xf32>
    %137 = math.rsqrt %136 : vector<8x1xf32>
    %138 = vector.broadcast %137 : vector<8x1xf32> to vector<8x32xf32>
    %139 = arith.mulf %134, %138 : vector<8x32xf32>
    %140 = vector.broadcast %120 : vector<1x32xf32> to vector<8x32xf32>
    %141 = arith.mulf %139, %140 : vector<8x32xf32>
    %142 = vector.broadcast %121 : vector<1x32xf32> to vector<8x32xf32>
    %143 = arith.addf %141, %142 : vector<8x32xf32>
    %c0_60 = arith.constant 0 : index
    %c0_61 = arith.constant 0 : index
    %c0_62 = arith.constant 0 : index
    %144 = vector.load %arg12[%c0_60, %c0_61, %c0_62] : memref<1x8x32xf32, #tpu.memory_space<vmem>>, vector<1x8x32xf32>
    %145 = vector.shape_cast %144 : vector<1x8x32xf32> to vector<8x32xf32>
    %146 = vector.shape_cast %143 : vector<8x32xf32> to vector<1x8x32xf32>
    tpu.vector_store %arg12[%c0_60, %c0_61, %c0_62], %146 {strides = array<i32>} : memref<1x8x32xf32, #tpu.memory_space<vmem>>, vector<1x8x32xf32>,
    return
  }
  func.func @transform_0(%arg0: i32, %arg1: i32) -> (i32, i32, i32) {
    %c0_i32 = arith.constant 0 : i32
    %c0_i32_0 = arith.constant 0 : i32
    return %arg0, %arg1, %c0_i32 : i32, i32, i32
  }
  func.func @transform_1(%arg0: i32, %arg1: i32) -> (i32, i32, i32) {
    %c0_i32 = arith.constant 0 : i32
    %c0_i32_0 = arith.constant 0 : i32
    %c0_i32_1 = arith.constant 0 : i32
    return %arg0, %c0_i32, %c0_i32_0 : i32, i32, i32
  }
  func.func @transform_2(%arg0: i32, %arg1: i32) -> (i32, i32, i32) {
    %c0_i32 = arith.constant 0 : i32
    %c0_i32_0 = arith.constant 0 : i32
    return %arg0, %arg1, %c0_i32 : i32, i32, i32
  }
  func.func @transform_3(%arg0: i32, %arg1: i32) -> (i32, i32, i32) {
    %c0_i32 = arith.constant 0 : i32
    %c0_i32_0 = arith.constant 0 : i32
    %c0_i32_1 = arith.constant 0 : i32
    return %arg0, %c0_i32, %c0_i32_0 : i32, i32, i32
  }
  func.func @transform_4(%arg0: i32, %arg1: i32) -> (i32, i32) {
    %c0_i32 = arith.constant 0 : i32
    %c0_i32_0 = arith.constant 0 : i32
    %c0_i32_1 = arith.constant 0 : i32
    return %c0_i32, %c0_i32_0 : i32, i32
  }
  func.func @transform_5(%arg0: i32, %arg1: i32) -> (i32, i32) {
    %c0_i32 = arith.constant 0 : i32
    %c0_i32_0 = arith.constant 0 : i32
    %c0_i32_1 = arith.constant 0 : i32
    return %c0_i32, %c0_i32_0 : i32, i32
  }
  func.func @transform_6(%arg0: i32, %arg1: i32) -> (i32, i32) {
    %c0_i32 = arith.constant 0 : i32
    %c0_i32_0 = arith.constant 0 : i32
    %c0_i32_1 = arith.constant 0 : i32
    return %c0_i32, %c0_i32_0 : i32, i32
  }
  func.func @transform_7(%arg0: i32, %arg1: i32) -> (i32, i32) {
    %c0_i32 = arith.constant 0 : i32
    %c0_i32_0 = arith.constant 0 : i32
    %c0_i32_1 = arith.constant 0 : i32
    return %c0_i32, %c0_i32_0 : i32, i32
  }
  func.func @transform_8(%arg0: i32, %arg1: i32) -> (i32, i32) {
    %c0_i32 = arith.constant 0 : i32
    %c0_i32_0 = arith.constant 0 : i32
    %c0_i32_1 = arith.constant 0 : i32
    return %c0_i32, %c0_i32_0 : i32, i32
  }
  func.func @transform_9(%arg0: i32, %arg1: i32) -> (i32, i32) {
    %c0_i32 = arith.constant 0 : i32
    %c0_i32_0 = arith.constant 0 : i32
    %c0_i32_1 = arith.constant 0 : i32
    return %c0_i32, %c0_i32_0 : i32, i32
  }
  func.func @transform_10(%arg0: i32, %arg1: i32) -> (i32, i32, i32) {
    %c0_i32 = arith.constant 0 : i32
    %c0_i32_0 = arith.constant 0 : i32
    return %arg0, %arg1, %c0_i32 : i32, i32, i32
  }
}

module attributes {stable_mosaic.version = 11 : i64} {
  func.func @_mha_addnorm_kernel(%arg0: i32, %arg1: memref<1x8x32xf32, #tpu.memory_space<vmem>>, %arg2: memref<1x8x1xf32, #tpu.memory_space<vmem>>, %arg3: memref<1x1x8xf32, #tpu.memory_space<vmem>>, %arg4: memref<32x96xbf16, #tpu.memory_space<vmem>>, %arg5: memref<1x96xf32, #tpu.memory_space<vmem>>, %arg6: memref<32x32xbf16, #tpu.memory_space<vmem>>, %arg7: memref<1x32xf32, #tpu.memory_space<vmem>>, %arg8: memref<1x32xf32, #tpu.memory_space<vmem>>, %arg9: memref<1x32xf32, #tpu.memory_space<vmem>>, %arg10: memref<1x8x32xf32, #tpu.memory_space<vmem>>, %arg11: memref<8x32xf32, #tpu.memory_space<vmem>>) attributes {dimension_semantics = [#tpu.dimension_semantics<parallel>], iteration_bounds = array<i64: 2>, scalar_prefetch = 0 : i64, scratch_operands = 1 : i64, tpu.core_type = #tpu.core_type<tc>, window_params = [{transform_indices = @transform_0, window_bounds = array<i64: 1, 8, 32>}, {transform_indices = @transform_1, window_bounds = array<i64: 1, 8, 1>}, {transform_indices = @transform_2, window_bounds = array<i64: 1, 1, 8>}, {pipeline_mode = #tpu.pipeline_mode<synchronous>, transform_indices = @transform_3, window_bounds = array<i64: 32, 96>}, {pipeline_mode = #tpu.pipeline_mode<synchronous>, transform_indices = @transform_4, window_bounds = array<i64: 1, 96>}, {pipeline_mode = #tpu.pipeline_mode<synchronous>, transform_indices = @transform_5, window_bounds = array<i64: 32, 32>}, {pipeline_mode = #tpu.pipeline_mode<synchronous>, transform_indices = @transform_6, window_bounds = array<i64: 1, 32>}, {pipeline_mode = #tpu.pipeline_mode<synchronous>, transform_indices = @transform_7, window_bounds = array<i64: 1, 32>}, {pipeline_mode = #tpu.pipeline_mode<synchronous>, transform_indices = @transform_8, window_bounds = array<i64: 1, 32>}, {transform_indices = @transform_9, window_bounds = array<i64: 1, 8, 32>}]} {
    %c0 = arith.constant 0 : index
    %c0_0 = arith.constant 0 : index
    %c0_1 = arith.constant 0 : index
    %0 = vector.load %arg1[%c0, %c0_0, %c0_1] : memref<1x8x32xf32, #tpu.memory_space<vmem>>, vector<1x8x32xf32>
    %1 = vector.shape_cast %0 : vector<1x8x32xf32> to vector<8x32xf32>
    %c0_2 = arith.constant 0 : index
    %c0_3 = arith.constant 0 : index
    %2 = vector.load %arg4[%c0_2, %c0_3] : memref<32x96xbf16, #tpu.memory_space<vmem>>, vector<32x96xbf16>
    %c0_4 = arith.constant 0 : index
    %c0_5 = arith.constant 0 : index
    %3 = vector.load %arg5[%c0_4, %c0_5] : memref<1x96xf32, #tpu.memory_space<vmem>>, vector<1x96xf32>
    %4 = arith.truncf %1 : vector<8x32xf32> to vector<8x32xbf16>
    %cst = arith.constant dense<0.000000e+00> : vector<8x96xf32>
    %5 = tpu.matmul %4, %2, %cst {dimension_numbers = #tpu.dot_dimension_numbers<[1], [0], [0], [1], [0, 0, 1, 1], [], []>} : vector<8x32xbf16>, vector<32x96xbf16>, vector<8x96xf32> -> vector<8x96xf32>
    %6 = vector.broadcast %3 : vector<1x96xf32> to vector<8x96xf32>
    %7 = arith.addf %5, %6 : vector<8x96xf32>
    %8 = vector.extract_strided_slice %7 {offsets = [0, 0], sizes = [8, 32], strides = [1, 1]} : vector<8x96xf32> to vector<8x32xf32>
    %cst_6 = arith.constant 0.353553385 : f32
    %9 = vector.broadcast %cst_6 : f32 to vector<8x32xf32>
    %10 = arith.mulf %8, %9 : vector<8x32xf32>
    %11 = vector.extract_strided_slice %7 {offsets = [0, 32], sizes = [8, 32], strides = [1, 1]} : vector<8x96xf32> to vector<8x32xf32>
    %12 = vector.extract_strided_slice %7 {offsets = [0, 64], sizes = [8, 32], strides = [1, 1]} : vector<8x96xf32> to vector<8x32xf32>
    %13 = arith.truncf %10 : vector<8x32xf32> to vector<8x32xbf16>
    %14 = arith.truncf %11 : vector<8x32xf32> to vector<8x32xbf16>
    %15 = arith.truncf %12 : vector<8x32xf32> to vector<8x32xbf16>
    %c0_7 = arith.constant 0 : index
    %c0_8 = arith.constant 0 : index
    %c0_9 = arith.constant 0 : index
    %16 = vector.load %arg3[%c0_7, %c0_8, %c0_9] : memref<1x1x8xf32, #tpu.memory_space<vmem>>, vector<1x1x8xf32>
    %17 = vector.shape_cast %16 : vector<1x1x8xf32> to vector<1x8xf32>
    %cst_10 = arith.constant 5.000000e-01 : f32
    %18 = vector.broadcast %cst_10 : f32 to vector<1x8xf32>
    %19 = arith.cmpf ogt, %17, %18 : vector<1x8xf32>
    %c0_11 = arith.constant 0 : index
    %c0_12 = arith.constant 0 : index
    %c0_13 = arith.constant 0 : index
    %20 = vector.load %arg2[%c0_11, %c0_12, %c0_13] : memref<1x8x1xf32, #tpu.memory_space<vmem>>, vector<1x8x1xf32>
    %21 = vector.shape_cast %20 : vector<1x8x1xf32> to vector<8x1xf32>
    %cst_14 = arith.constant 5.000000e-01 : f32
    %22 = vector.broadcast %cst_14 : f32 to vector<8x1xf32>
    %23 = arith.cmpf ogt, %21, %22 : vector<8x1xf32>
    %24 = vector.broadcast %23 : vector<8x1xi1> to vector<8x8xi1>
    %25 = vector.broadcast %19 : vector<1x8xi1> to vector<8x8xi1>
    %26 = arith.andi %24, %25 : vector<8x8xi1>
    %27 = tpu.iota {dimensions = array<i32: 0>} : vector<8x8xi32>
    %c0_i32 = arith.constant 0 : i32
    %28 = vector.broadcast %c0_i32 : i32 to vector<8x8xi32>
    %29 = arith.addi %27, %28 : vector<8x8xi32>
    %30 = tpu.iota {dimensions = array<i32: 1>} : vector<8x8xi32>
    %31 = arith.cmpi sle, %30, %29 : vector<8x8xi32>
    %32 = arith.andi %26, %31 : vector<8x8xi1>
    %33 = vector.extract_strided_slice %13 {offsets = [0, 0], sizes = [8, 8], strides = [1, 1]} : vector<8x32xbf16> to vector<8x8xbf16>
    %34 = vector.extract_strided_slice %14 {offsets = [0, 0], sizes = [8, 8], strides = [1, 1]} : vector<8x32xbf16> to vector<8x8xbf16>
    %cst_15 = arith.constant dense<0.000000e+00> : vector<8x8xf32>
    %35 = tpu.matmul %33, %34, %cst_15 {dimension_numbers = #tpu.dot_dimension_numbers<[1], [1], [0], [0], [0, 0, 1, 0], [], []>} : vector<8x8xbf16>, vector<8x8xbf16>, vector<8x8xf32> -> vector<8x8xf32>
    %cst_16 = arith.constant -1.000000e+09 : f32
    %36 = vector.broadcast %cst_16 : f32 to vector<8x8xf32>
    %37 = arith.select %32, %35, %36 : vector<8x8xi1>, vector<8x8xf32>
    %cst_17 = arith.constant dense<0xFF800000> : vector<8xf32>
    %38 = vector.multi_reduction <maximumf>, %37, %cst_17 [1] : vector<8x8xf32> to vector<8xf32>
    %39 = vector.shape_cast %38 : vector<8xf32> to vector<8x1xf32>
    %40 = vector.broadcast %39 : vector<8x1xf32> to vector<8x8xf32>
    %41 = arith.subf %37, %40 : vector<8x8xf32>
    %42 = math.exp %41 : vector<8x8xf32>
    %cst_18 = arith.constant dense<0.000000e+00> : vector<8xf32>
    %43 = vector.multi_reduction <add>, %42, %cst_18 [1] : vector<8x8xf32> to vector<8xf32>
    %44 = vector.shape_cast %43 : vector<8xf32> to vector<8x1xf32>
    %45 = tpu.reciprocal %44 {approx = true} : vector<8x1xf32> -> vector<8x1xf32>
    %46 = vector.broadcast %45 : vector<8x1xf32> to vector<8x8xf32>
    %47 = arith.mulf %42, %46 : vector<8x8xf32>
    %48 = arith.truncf %47 : vector<8x8xf32> to vector<8x8xbf16>
    %49 = vector.extract_strided_slice %15 {offsets = [0, 0], sizes = [8, 8], strides = [1, 1]} : vector<8x32xbf16> to vector<8x8xbf16>
    %cst_19 = arith.constant dense<0.000000e+00> : vector<8x8xf32>
    %50 = tpu.matmul %48, %49, %cst_19 {dimension_numbers = #tpu.dot_dimension_numbers<[1], [0], [0], [1], [0, 0, 1, 1], [], []>} : vector<8x8xbf16>, vector<8x8xbf16>, vector<8x8xf32> -> vector<8x8xf32>
    %c0_20 = arith.constant 0 : index
    %c0_21 = arith.constant 0 : index
    %51 = vector.load %arg11[%c0_20, %c0_21] : memref<8x32xf32, #tpu.memory_space<vmem>>, vector<8x8xf32>
    tpu.vector_store %arg11[%c0_20, %c0_21], %50 {strides = array<i32>} : memref<8x32xf32, #tpu.memory_space<vmem>>, vector<8x8xf32>,
    %52 = vector.extract_strided_slice %13 {offsets = [0, 8], sizes = [8, 8], strides = [1, 1]} : vector<8x32xbf16> to vector<8x8xbf16>
    %53 = vector.extract_strided_slice %14 {offsets = [0, 8], sizes = [8, 8], strides = [1, 1]} : vector<8x32xbf16> to vector<8x8xbf16>
    %cst_22 = arith.constant dense<0.000000e+00> : vector<8x8xf32>
    %54 = tpu.matmul %52, %53, %cst_22 {dimension_numbers = #tpu.dot_dimension_numbers<[1], [1], [0], [0], [0, 0, 1, 0], [], []>} : vector<8x8xbf16>, vector<8x8xbf16>, vector<8x8xf32> -> vector<8x8xf32>
    %cst_23 = arith.constant -1.000000e+09 : f32
    %55 = vector.broadcast %cst_23 : f32 to vector<8x8xf32>
    %56 = arith.select %32, %54, %55 : vector<8x8xi1>, vector<8x8xf32>
    %cst_24 = arith.constant dense<0xFF800000> : vector<8xf32>
    %57 = vector.multi_reduction <maximumf>, %56, %cst_24 [1] : vector<8x8xf32> to vector<8xf32>
    %58 = vector.shape_cast %57 : vector<8xf32> to vector<8x1xf32>
    %59 = vector.broadcast %58 : vector<8x1xf32> to vector<8x8xf32>
    %60 = arith.subf %56, %59 : vector<8x8xf32>
    %61 = math.exp %60 : vector<8x8xf32>
    %cst_25 = arith.constant dense<0.000000e+00> : vector<8xf32>
    %62 = vector.multi_reduction <add>, %61, %cst_25 [1] : vector<8x8xf32> to vector<8xf32>
    %63 = vector.shape_cast %62 : vector<8xf32> to vector<8x1xf32>
    %64 = tpu.reciprocal %63 {approx = true} : vector<8x1xf32> -> vector<8x1xf32>
    %65 = vector.broadcast %64 : vector<8x1xf32> to vector<8x8xf32>
    %66 = arith.mulf %61, %65 : vector<8x8xf32>
    %67 = arith.truncf %66 : vector<8x8xf32> to vector<8x8xbf16>
    %68 = vector.extract_strided_slice %15 {offsets = [0, 8], sizes = [8, 8], strides = [1, 1]} : vector<8x32xbf16> to vector<8x8xbf16>
    %cst_26 = arith.constant dense<0.000000e+00> : vector<8x8xf32>
    %69 = tpu.matmul %67, %68, %cst_26 {dimension_numbers = #tpu.dot_dimension_numbers<[1], [0], [0], [1], [0, 0, 1, 1], [], []>} : vector<8x8xbf16>, vector<8x8xbf16>, vector<8x8xf32> -> vector<8x8xf32>
    %c0_27 = arith.constant 0 : index
    %c8 = arith.constant 8 : index
    %70 = vector.load %arg11[%c0_27, %c8] : memref<8x32xf32, #tpu.memory_space<vmem>>, vector<8x8xf32>
    tpu.vector_store %arg11[%c0_27, %c8], %69 {strides = array<i32>} : memref<8x32xf32, #tpu.memory_space<vmem>>, vector<8x8xf32>,
    %71 = vector.extract_strided_slice %13 {offsets = [0, 16], sizes = [8, 8], strides = [1, 1]} : vector<8x32xbf16> to vector<8x8xbf16>
    %72 = vector.extract_strided_slice %14 {offsets = [0, 16], sizes = [8, 8], strides = [1, 1]} : vector<8x32xbf16> to vector<8x8xbf16>
    %cst_28 = arith.constant dense<0.000000e+00> : vector<8x8xf32>
    %73 = tpu.matmul %71, %72, %cst_28 {dimension_numbers = #tpu.dot_dimension_numbers<[1], [1], [0], [0], [0, 0, 1, 0], [], []>} : vector<8x8xbf16>, vector<8x8xbf16>, vector<8x8xf32> -> vector<8x8xf32>
    %cst_29 = arith.constant -1.000000e+09 : f32
    %74 = vector.broadcast %cst_29 : f32 to vector<8x8xf32>
    %75 = arith.select %32, %73, %74 : vector<8x8xi1>, vector<8x8xf32>
    %cst_30 = arith.constant dense<0xFF800000> : vector<8xf32>
    %76 = vector.multi_reduction <maximumf>, %75, %cst_30 [1] : vector<8x8xf32> to vector<8xf32>
    %77 = vector.shape_cast %76 : vector<8xf32> to vector<8x1xf32>
    %78 = vector.broadcast %77 : vector<8x1xf32> to vector<8x8xf32>
    %79 = arith.subf %75, %78 : vector<8x8xf32>
    %80 = math.exp %79 : vector<8x8xf32>
    %cst_31 = arith.constant dense<0.000000e+00> : vector<8xf32>
    %81 = vector.multi_reduction <add>, %80, %cst_31 [1] : vector<8x8xf32> to vector<8xf32>
    %82 = vector.shape_cast %81 : vector<8xf32> to vector<8x1xf32>
    %83 = tpu.reciprocal %82 {approx = true} : vector<8x1xf32> -> vector<8x1xf32>
    %84 = vector.broadcast %83 : vector<8x1xf32> to vector<8x8xf32>
    %85 = arith.mulf %80, %84 : vector<8x8xf32>
    %86 = arith.truncf %85 : vector<8x8xf32> to vector<8x8xbf16>
    %87 = vector.extract_strided_slice %15 {offsets = [0, 16], sizes = [8, 8], strides = [1, 1]} : vector<8x32xbf16> to vector<8x8xbf16>
    %cst_32 = arith.constant dense<0.000000e+00> : vector<8x8xf32>
    %88 = tpu.matmul %86, %87, %cst_32 {dimension_numbers = #tpu.dot_dimension_numbers<[1], [0], [0], [1], [0, 0, 1, 1], [], []>} : vector<8x8xbf16>, vector<8x8xbf16>, vector<8x8xf32> -> vector<8x8xf32>
    %c0_33 = arith.constant 0 : index
    %c16 = arith.constant 16 : index
    %89 = vector.load %arg11[%c0_33, %c16] : memref<8x32xf32, #tpu.memory_space<vmem>>, vector<8x8xf32>
    tpu.vector_store %arg11[%c0_33, %c16], %88 {strides = array<i32>} : memref<8x32xf32, #tpu.memory_space<vmem>>, vector<8x8xf32>,
    %90 = vector.extract_strided_slice %13 {offsets = [0, 24], sizes = [8, 8], strides = [1, 1]} : vector<8x32xbf16> to vector<8x8xbf16>
    %91 = vector.extract_strided_slice %14 {offsets = [0, 24], sizes = [8, 8], strides = [1, 1]} : vector<8x32xbf16> to vector<8x8xbf16>
    %cst_34 = arith.constant dense<0.000000e+00> : vector<8x8xf32>
    %92 = tpu.matmul %90, %91, %cst_34 {dimension_numbers = #tpu.dot_dimension_numbers<[1], [1], [0], [0], [0, 0, 1, 0], [], []>} : vector<8x8xbf16>, vector<8x8xbf16>, vector<8x8xf32> -> vector<8x8xf32>
    %cst_35 = arith.constant -1.000000e+09 : f32
    %93 = vector.broadcast %cst_35 : f32 to vector<8x8xf32>
    %94 = arith.select %32, %92, %93 : vector<8x8xi1>, vector<8x8xf32>
    %cst_36 = arith.constant dense<0xFF800000> : vector<8xf32>
    %95 = vector.multi_reduction <maximumf>, %94, %cst_36 [1] : vector<8x8xf32> to vector<8xf32>
    %96 = vector.shape_cast %95 : vector<8xf32> to vector<8x1xf32>
    %97 = vector.broadcast %96 : vector<8x1xf32> to vector<8x8xf32>
    %98 = arith.subf %94, %97 : vector<8x8xf32>
    %99 = math.exp %98 : vector<8x8xf32>
    %cst_37 = arith.constant dense<0.000000e+00> : vector<8xf32>
    %100 = vector.multi_reduction <add>, %99, %cst_37 [1] : vector<8x8xf32> to vector<8xf32>
    %101 = vector.shape_cast %100 : vector<8xf32> to vector<8x1xf32>
    %102 = tpu.reciprocal %101 {approx = true} : vector<8x1xf32> -> vector<8x1xf32>
    %103 = vector.broadcast %102 : vector<8x1xf32> to vector<8x8xf32>
    %104 = arith.mulf %99, %103 : vector<8x8xf32>
    %105 = arith.truncf %104 : vector<8x8xf32> to vector<8x8xbf16>
    %106 = vector.extract_strided_slice %15 {offsets = [0, 24], sizes = [8, 8], strides = [1, 1]} : vector<8x32xbf16> to vector<8x8xbf16>
    %cst_38 = arith.constant dense<0.000000e+00> : vector<8x8xf32>
    %107 = tpu.matmul %105, %106, %cst_38 {dimension_numbers = #tpu.dot_dimension_numbers<[1], [0], [0], [1], [0, 0, 1, 1], [], []>} : vector<8x8xbf16>, vector<8x8xbf16>, vector<8x8xf32> -> vector<8x8xf32>
    %c0_39 = arith.constant 0 : index
    %c24 = arith.constant 24 : index
    %108 = vector.load %arg11[%c0_39, %c24] : memref<8x32xf32, #tpu.memory_space<vmem>>, vector<8x8xf32>
    tpu.vector_store %arg11[%c0_39, %c24], %107 {strides = array<i32>} : memref<8x32xf32, #tpu.memory_space<vmem>>, vector<8x8xf32>,
    %c0_40 = arith.constant 0 : index
    %c0_41 = arith.constant 0 : index
    %109 = vector.load %arg11[%c0_40, %c0_41] : memref<8x32xf32, #tpu.memory_space<vmem>>, vector<8x32xf32>
    %110 = arith.truncf %109 : vector<8x32xf32> to vector<8x32xbf16>
    %c0_42 = arith.constant 0 : index
    %c0_43 = arith.constant 0 : index
    %111 = vector.load %arg6[%c0_42, %c0_43] : memref<32x32xbf16, #tpu.memory_space<vmem>>, vector<32x32xbf16>
    %cst_44 = arith.constant dense<0.000000e+00> : vector<8x32xf32>
    %112 = tpu.matmul %110, %111, %cst_44 {dimension_numbers = #tpu.dot_dimension_numbers<[1], [0], [0], [1], [0, 0, 1, 1], [], []>} : vector<8x32xbf16>, vector<32x32xbf16>, vector<8x32xf32> -> vector<8x32xf32>
    %c0_45 = arith.constant 0 : index
    %c0_46 = arith.constant 0 : index
    %113 = vector.load %arg7[%c0_45, %c0_46] : memref<1x32xf32, #tpu.memory_space<vmem>>, vector<1x32xf32>
    %114 = vector.broadcast %113 : vector<1x32xf32> to vector<8x32xf32>
    %115 = arith.addf %112, %114 : vector<8x32xf32>
    %116 = arith.addf %1, %115 : vector<8x32xf32>
    %c0_47 = arith.constant 0 : index
    %c0_48 = arith.constant 0 : index
    %117 = vector.load %arg8[%c0_47, %c0_48] : memref<1x32xf32, #tpu.memory_space<vmem>>, vector<1x32xf32>
    %c0_49 = arith.constant 0 : index
    %c0_50 = arith.constant 0 : index
    %118 = vector.load %arg9[%c0_49, %c0_50] : memref<1x32xf32, #tpu.memory_space<vmem>>, vector<1x32xf32>
    %cst_51 = arith.constant dense<0.000000e+00> : vector<8xf32>
    %119 = vector.multi_reduction <add>, %116, %cst_51 [1] : vector<8x32xf32> to vector<8xf32>
    %120 = vector.shape_cast %119 : vector<8xf32> to vector<8x1xf32>
    %cst_52 = arith.constant 3.200000e+01 : f32
    %121 = vector.broadcast %cst_52 : f32 to vector<8x1xf32>
    %122 = arith.divf %120, %121 : vector<8x1xf32>
    %123 = vector.broadcast %122 : vector<8x1xf32> to vector<8x32xf32>
    %124 = arith.subf %116, %123 : vector<8x32xf32>
    %125 = arith.mulf %124, %124 : vector<8x32xf32>
    %cst_53 = arith.constant dense<0.000000e+00> : vector<8xf32>
    %126 = vector.multi_reduction <add>, %125, %cst_53 [1] : vector<8x32xf32> to vector<8xf32>
    %127 = vector.shape_cast %126 : vector<8xf32> to vector<8x1xf32>
    %cst_54 = arith.constant 3.200000e+01 : f32
    %128 = vector.broadcast %cst_54 : f32 to vector<8x1xf32>
    %129 = arith.divf %127, %128 : vector<8x1xf32>
    %130 = vector.broadcast %122 : vector<8x1xf32> to vector<8x32xf32>
    %131 = arith.subf %116, %130 : vector<8x32xf32>
    %cst_55 = arith.constant 9.99999974E-6 : f32
    %132 = vector.broadcast %cst_55 : f32 to vector<8x1xf32>
    %133 = arith.addf %129, %132 : vector<8x1xf32>
    %134 = math.rsqrt %133 : vector<8x1xf32>
    %135 = vector.broadcast %134 : vector<8x1xf32> to vector<8x32xf32>
    %136 = arith.mulf %131, %135 : vector<8x32xf32>
    %137 = vector.broadcast %117 : vector<1x32xf32> to vector<8x32xf32>
    %138 = arith.mulf %136, %137 : vector<8x32xf32>
    %139 = vector.broadcast %118 : vector<1x32xf32> to vector<8x32xf32>
    %140 = arith.addf %138, %139 : vector<8x32xf32>
    %c0_56 = arith.constant 0 : index
    %c0_57 = arith.constant 0 : index
    %c0_58 = arith.constant 0 : index
    %141 = vector.load %arg10[%c0_56, %c0_57, %c0_58] : memref<1x8x32xf32, #tpu.memory_space<vmem>>, vector<1x8x32xf32>
    %142 = vector.shape_cast %141 : vector<1x8x32xf32> to vector<8x32xf32>
    %143 = vector.shape_cast %140 : vector<8x32xf32> to vector<1x8x32xf32>
    tpu.vector_store %arg10[%c0_56, %c0_57, %c0_58], %143 {strides = array<i32>} : memref<1x8x32xf32, #tpu.memory_space<vmem>>, vector<1x8x32xf32>,
    return
  }
  func.func @transform_0(%arg0: i32) -> (i32, i32, i32) {
    %c0_i32 = arith.constant 0 : i32
    %c0_i32_0 = arith.constant 0 : i32
    %c0_i32_1 = arith.constant 0 : i32
    return %arg0, %c0_i32, %c0_i32_0 : i32, i32, i32
  }
  func.func @transform_1(%arg0: i32) -> (i32, i32, i32) {
    %c0_i32 = arith.constant 0 : i32
    %c0_i32_0 = arith.constant 0 : i32
    %c0_i32_1 = arith.constant 0 : i32
    return %arg0, %c0_i32, %c0_i32_0 : i32, i32, i32
  }
  func.func @transform_2(%arg0: i32) -> (i32, i32, i32) {
    %c0_i32 = arith.constant 0 : i32
    %c0_i32_0 = arith.constant 0 : i32
    %c0_i32_1 = arith.constant 0 : i32
    return %arg0, %c0_i32, %c0_i32_0 : i32, i32, i32
  }
  func.func @transform_3(%arg0: i32) -> (i32, i32) {
    %c0_i32 = arith.constant 0 : i32
    %c0_i32_0 = arith.constant 0 : i32
    %c0_i32_1 = arith.constant 0 : i32
    return %c0_i32, %c0_i32_0 : i32, i32
  }
  func.func @transform_4(%arg0: i32) -> (i32, i32) {
    %c0_i32 = arith.constant 0 : i32
    %c0_i32_0 = arith.constant 0 : i32
    %c0_i32_1 = arith.constant 0 : i32
    return %c0_i32, %c0_i32_0 : i32, i32
  }
  func.func @transform_5(%arg0: i32) -> (i32, i32) {
    %c0_i32 = arith.constant 0 : i32
    %c0_i32_0 = arith.constant 0 : i32
    %c0_i32_1 = arith.constant 0 : i32
    return %c0_i32, %c0_i32_0 : i32, i32
  }
  func.func @transform_6(%arg0: i32) -> (i32, i32) {
    %c0_i32 = arith.constant 0 : i32
    %c0_i32_0 = arith.constant 0 : i32
    %c0_i32_1 = arith.constant 0 : i32
    return %c0_i32, %c0_i32_0 : i32, i32
  }
  func.func @transform_7(%arg0: i32) -> (i32, i32) {
    %c0_i32 = arith.constant 0 : i32
    %c0_i32_0 = arith.constant 0 : i32
    %c0_i32_1 = arith.constant 0 : i32
    return %c0_i32, %c0_i32_0 : i32, i32
  }
  func.func @transform_8(%arg0: i32) -> (i32, i32) {
    %c0_i32 = arith.constant 0 : i32
    %c0_i32_0 = arith.constant 0 : i32
    %c0_i32_1 = arith.constant 0 : i32
    return %c0_i32, %c0_i32_0 : i32, i32
  }
  func.func @transform_9(%arg0: i32) -> (i32, i32, i32) {
    %c0_i32 = arith.constant 0 : i32
    %c0_i32_0 = arith.constant 0 : i32
    %c0_i32_1 = arith.constant 0 : i32
    return %arg0, %c0_i32, %c0_i32_0 : i32, i32, i32
  }
}

module attributes {stable_mosaic.version = 11 : i64} {
  func.func @_linear_kernel(%arg0: i32, %arg1: i32, %arg2: memref<16x32xf32, #tpu.memory_space<vmem>>, %arg3: memref<32x128xbf16, #tpu.memory_space<vmem>>, %arg4: memref<1x128xf32, #tpu.memory_space<vmem>>, %arg5: memref<16x128xf32, #tpu.memory_space<vmem>>) attributes {dimension_semantics = [#tpu.dimension_semantics<parallel>, #tpu.dimension_semantics<parallel>], iteration_bounds = array<i64: 1, 1>, scalar_prefetch = 0 : i64, scratch_operands = 0 : i64, tpu.core_type = #tpu.core_type<tc>, window_params = [{transform_indices = @transform_0, window_bounds = array<i64: 16, 32>}, {transform_indices = @transform_1, window_bounds = array<i64: 32, 128>}, {transform_indices = @transform_2, window_bounds = array<i64: 1, 128>}, {transform_indices = @transform_3, window_bounds = array<i64: 16, 128>}]} {
    %c0 = arith.constant 0 : index
    %c0_0 = arith.constant 0 : index
    %0 = vector.load %arg2[%c0, %c0_0] : memref<16x32xf32, #tpu.memory_space<vmem>>, vector<16x32xf32>
    %1 = arith.truncf %0 : vector<16x32xf32> to vector<16x32xbf16>
    %c0_1 = arith.constant 0 : index
    %c0_2 = arith.constant 0 : index
    %2 = vector.load %arg3[%c0_1, %c0_2] : memref<32x128xbf16, #tpu.memory_space<vmem>>, vector<32x128xbf16>
    %cst = arith.constant dense<0.000000e+00> : vector<16x128xf32>
    %3 = tpu.matmul %1, %2, %cst {dimension_numbers = #tpu.dot_dimension_numbers<[1], [0], [0], [1], [0, 0, 1, 1], [], []>} : vector<16x32xbf16>, vector<32x128xbf16>, vector<16x128xf32> -> vector<16x128xf32>
    %c0_3 = arith.constant 0 : index
    %c0_4 = arith.constant 0 : index
    %4 = vector.load %arg4[%c0_3, %c0_4] : memref<1x128xf32, #tpu.memory_space<vmem>>, vector<1x128xf32>
    %5 = vector.broadcast %4 : vector<1x128xf32> to vector<16x128xf32>
    %6 = arith.addf %3, %5 : vector<16x128xf32>
    %c0_5 = arith.constant 0 : index
    %c0_6 = arith.constant 0 : index
    %7 = vector.load %arg5[%c0_5, %c0_6] : memref<16x128xf32, #tpu.memory_space<vmem>>, vector<16x128xf32>
    tpu.vector_store %arg5[%c0_5, %c0_6], %6 {strides = array<i32>} : memref<16x128xf32, #tpu.memory_space<vmem>>, vector<16x128xf32>,
    return
  }
  func.func @transform_0(%arg0: i32, %arg1: i32) -> (i32, i32) {
    %c0_i32 = arith.constant 0 : i32
    %c0_i32_0 = arith.constant 0 : i32
    return %arg0, %c0_i32 : i32, i32
  }
  func.func @transform_1(%arg0: i32, %arg1: i32) -> (i32, i32) {
    %c0_i32 = arith.constant 0 : i32
    %c0_i32_0 = arith.constant 0 : i32
    return %c0_i32, %arg1 : i32, i32
  }
  func.func @transform_2(%arg0: i32, %arg1: i32) -> (i32, i32) {
    %c0_i32 = arith.constant 0 : i32
    %c0_i32_0 = arith.constant 0 : i32
    return %c0_i32, %arg1 : i32, i32
  }
  func.func @transform_3(%arg0: i32, %arg1: i32) -> (i32, i32) {
    %c0_i32 = arith.constant 0 : i32
    return %arg0, %arg1 : i32, i32
  }
}

</mosaic_0001>

<bundles_post_ra>
// kernel: transformer_forward.12
= control target key start
LH: loop header
LB: loop body
LE: loop exit
PB: predicated region body
PF: predicated region fallthrough
CT: control target
= control target key end

     0   :  { %vm31_vm0 = vcmask 261120   ;;  %v310_v0 = vmov 0.0   ;;  %vm311_vm1 = vmmov 0   ;;  %vm142_vm2 = vcmask 523264   ;;  %s405_s1 = inlined_call_operand.vmem [shape: bf16[32,64], index: 1, kind: input, shape index: {}]   ;;  %s406_s0 = inlined_call_operand.vmem [shape: f32[16,32], index: 0, kind: input, shape index: {}]   ;;  %s407_s3 = inlined_call_operand.vmem [shape: bf16[64,32], index: 3, kind: input, shape index: {}]   ;;  %s408_s2 = inlined_call_operand.vmem [shape: f32[1,64], index: 2, kind: input, shape index: {}]   ;;  %s409_s4 = inlined_call_operand.vmem [shape: f32[1,32], index: 4, kind: input, shape index: {}]   ;;  %s410_s5 = inlined_call_operand.vmem [shape: f32[1,32], index: 5, kind: input, shape index: {}]   ;;  %s411_s6 = inlined_call_operand.vmem [shape: f32[1,32], index: 6, kind: input, shape index: {}]   ;;  %s412_s7 = inlined_call_operand.vmem [shape: f32[16,32], index: 7, kind: output, shape index: {}]  }
   0x1   :  { %278 = vmatprep.subr.bf16.mxu0 %v310_v0  ;;  %v300_v1 = vld [vmem:[%s405_s1] sm:$0xff]   ;;  %282 = vmatprep.mubr.msk.bf16.mxu0 %vm311_vm1, %v310_v0  ;;  %32 = vst.msk [vmem:[#allocation2] sm:$0xff] %vm31_vm0, %v310_v0  ;;  %33 = vst.msk [vmem:[#allocation2 + $0x8] sm:$0xff] %vm31_vm0, %v310_v0  ;;  %v301_v2 = vld [vmem:[%s405_s1 + $0x8] sm:$0xff]  }
   0x2   :  { %286 = vmatprep.subr.bf16.mxu1 %v310_v0  ;;  %294 = vmatprep.mubr.msk.bf16.mxu1 %vm311_vm1, %v310_v0  ;;  %v34_v3 = vld [vmem:[%s406_s0] sm:$0xff]  ;;  %v35_v4 = vld [vmem:[%s406_s0 + $0x8] sm:$0xff]  ;;  %v304_v8 = vld [vmem:[%s407_s3 + $0x10] sm:$0xff]  }
   0x3   :  { %279 = vmatpush3.bf16.msra.mxu0 %v300_v1  ;;  %v302_v5 = vld [vmem:[%s407_s3] sm:$0xff]   ;;  %v303_v6 = vld [vmem:[%s407_s3 + $0x8] sm:$0xff]   ;;  %v36_v7 = vpack.c.bf16 %v35_v4, %v34_v3  ;;  %v305_v9 = vld [vmem:[%s407_s3 + $0x18] sm:$0xff]  }
   0x4   :  { %280 = vmatprep.subr.bf16.mxu0 %v310_v0  ;;  %287 = vmatpush3.bf16.msra.mxu1 %v302_v5  ;;  %v258_v10 = vld [vmem:[%s408_s2] ss:$0 sm:$0xff] }
   0x5   :  { %288 = vmatprep.subr.bf16.mxu1 %v310_v0  ;;  %v267_v29 = vld [vmem:[%s409_s4] ss:$0 sm:$0xff] }
   0x6   :  { %v268_v54 = vld [vmem:[%s410_s5] ss:$0 sm:$0xff] }
   0x7   :  { %281 = vmatpush3.bf16.msra.mxu0 %v301_v2  ;;  %v269_v56 = vld [vmem:[%s411_s6] ss:$0 sm:$0xff] }
   0x8   :  { %289 = vmatpush3.bf16.msra.mxu1 %v303_v6  ;;  %v107_v20 = vld [vmem:[#allocation2] sm:$0xff]  ;;  %v108_v22 = vld [vmem:[#allocation2 + $0x8] sm:$0xff] }
   0x9   :  { %290 = vmatprep.subr.bf16.mxu1 %v310_v0 }
   0xa   :  { %283 = vmatmul.mubr.msk.bf16.vlgmr.msra.gmra.mrb[0].mxu0 %vm31_vm0, %v36_v7 }
   0xc   :  { %291 = vmatpush3.bf16.msra.mxu1 %v304_v8 }
   0xd   :  { %292 = vmatprep.subr.bf16.mxu1 %v310_v0 }
  0x10   :  { %293 = vmatpush3.bf16.msra.mxu1 %v305_v9 }
  0xdd   :  { %v98_v11 = vpop.f32.mrb[0].mxu0 }
  0xde   :  { %v99_v12 = vadd.f32 %v258_v10, %v98_v11  ;;  %v284_v13 = vpop.f32.mrb[1].mxu0 }
  0xdf   :  { %v101_v14 = vpop.f32.mrb[2].mxu0 }
  0xe0   :  { %v102_v15 = vadd.f32 %v258_v10, %v101_v14  ;;  %v285_v16 = vpop.f32.mrb[3].mxu0  ;;  %v105_v17 = vmax.f32 %v99_v12, 0.0 }
  0xe2   :  { %v106_v18 = vmax.f32 %v102_v15, 0.0 }
  0xe4   :  { %v109_v19 = vpack.c.bf16 %v106_v18, %v105_v17 }
  0xe6   :  { %295 = vmatmul.mubr.msk.bf16.vlgmr.msra.gmra.mrb[0].mxu1 %vm142_vm2, %v109_v19 }
 0x1b9   :  { %v180_v21 = vpop.f32.mrb[0].mxu1 }
 0x1ba   :  { %v187_v23 = vadd.f32 %v180_v21, %v107_v20  ;;  %v296_v24 = vpop.f32.mrb[1].mxu1 }
 0x1bb   :  { %v183_v25 = vpop.f32.mrb[2].mxu1 }
 0x1bc   :  { %189 = vst.msk [vmem:[#allocation2] sm:$0xff] %vm31_vm0, %v187_v23  ;;  %v188_v26 = vadd.f32 %v183_v25, %v108_v22  ;;  %v297_v27 = vpop.f32.mrb[3].mxu1 }
 0x1be   :  { %190 = vst.msk [vmem:[#allocation2 + $0x8] sm:$0xff] %vm31_vm0, %v188_v26 }
 0x1c3   :  { %v194_v28 = vld [vmem:[#allocation2] sm:$0xff] }
 0x1c4   :  { %v196_v30 = vadd.f32 %v194_v28, %v34_v3 }
 0x1c5   :  { %v195_v31 = vld [vmem:[#allocation2 + $0x8] sm:$0xff] }
 0x1c6   :  { %v205_v32 = vadd.f32 %v267_v29, %v196_v30  ;;  %v197_v33 = vadd.f32 %v195_v31, %v35_v4 }
 0x1c8   :  { %v209_v34 = vsel %vm31_vm0, %v205_v32, 0.0  ;;  %v206_v35 = vadd.f32 %v267_v29, %v197_v33 }
 0x1c9   :  { %210 = vadd.xlane.f32.xlu0 %v209_v34 }
 0x1ca   :  { %v212_v36 = vsel %vm31_vm0, %v206_v35, 0.0 }
 0x1cd   :  { %213 = vadd.xlane.f32.xlu0 %v212_v36 }
 0x256   :  { %v211_v37 = vpop.xlane.xlu0 %210 }
 0x257   :  { %v216_v38 = vmul.f32 0.03125, %v211_v37 }
 0x259   :  { %v218_v39 = vsub.f32 %v205_v32, %v216_v38 }
 0x25a   :  { %v214_v40 = vpop.xlane.xlu0 %213 }
 0x25b   :  { %v217_v41 = vmul.f32 0.03125, %v214_v40  ;;  %v220_v42 = vmul.f32 %v218_v39, %v218_v39 }
 0x25d   :  { %v219_v43 = vsub.f32 %v206_v35, %v217_v41  ;;  %v222_v44 = vsel %vm31_vm0, %v220_v42, 0.0 }
 0x25e   :  { %223 = vadd.xlane.f32.xlu1 %v222_v44 }
 0x25f   :  { %v221_v45 = vmul.f32 %v219_v43, %v219_v43 }
 0x261   :  { %v225_v46 = vsel %vm31_vm0, %v221_v45, 0.0 }
 0x262   :  { %226 = vadd.xlane.f32.xlu1 %v225_v46 }
 0x2eb   :  { %v224_v47 = vpop.xlane.xlu1 %223 }
 0x2ec   :  { %v228_v48 = vmul.f32 0.03125, %v224_v47 }
 0x2ee   :  { %v230_v49 = vadd.f32 1e-05, %v228_v48 }
 0x2ef   :  { %v227_v50 = vpop.xlane.xlu1 %226 }
 0x2f0   :  { %306 = vrsqrt.f32 %v230_v49  ;;  %v229_v51 = vmul.f32 0.03125, %v227_v50 }
 0x2f2   :  { %v231_v52 = vadd.f32 1e-05, %v229_v51 }
 0x2f4   :  { %308 = vrsqrt.f32 %v231_v52 }
 0x2fa   :  { %v307_v53 = vpop.eup %306 }
 0x2fb   :  { %v234_v55 = vmul.f32 %v307_v53, %v218_v39 }
 0x2fd   :  { %v242_v57 = vmul.f32 %v268_v54, %v234_v55 }
 0x2fe   :  { %v309_v58 = vpop.eup %308 }
 0x2ff   :  { %v250_v59 = vadd.f32 %v269_v56, %v242_v57  ;;  %v235_v60 = vmul.f32 %v309_v58, %v219_v43 }
 0x301   :  { %252 = vst.msk [vmem:[%s412_s7] sm:$0xff] %vm31_vm0, %v250_v59  ;;  %v243_v61 = vmul.f32 %v268_v54, %v235_v60 }
 0x303   :  { %v251_v62 = vadd.f32 %v269_v56, %v243_v61 }
 0x305   :  { %253 = vst.msk [vmem:[%s412_s7 + $0x8] sm:$0xff] %vm31_vm0, %v251_v62 }

// kernel: transformer_forward.16
= control target key start
LH: loop header
LB: loop body
LE: loop exit
PB: predicated region body
PF: predicated region fallthrough
CT: control target
= control target key end

     0   :  { %s1541_s13 = smov 0   ;;  %s1543_s14 = smov 0   ;;  %s1719_s0 = inlined_call_operand.vmem [shape: f32[2,8,32], index: 0, kind: input, shape index: {}]   ;;  %s1720_s1 = inlined_call_operand.vmem [shape: f32[2,8,32], index: 1, kind: input, shape index: {}]   ;;  %s1721_s2 = inlined_call_operand.vmem [shape: f32[2,8,1], index: 2, kind: input, shape index: {}]   ;;  %s1722_s3 = inlined_call_operand.vmem [shape: f32[2,1,8], index: 3, kind: input, shape index: {}]   ;;  %s1723_s4 = inlined_call_operand.vmem [shape: bf16[32,96], index: 4, kind: input, shape index: {}]   ;;  %s1724_s5 = inlined_call_operand.vmem [shape: f32[1,96], index: 5, kind: input, shape index: {}]   ;;  %s1725_s6 = inlined_call_operand.vmem [shape: bf16[32,32], index: 6, kind: input, shape index: {}]   ;;  %s1726_s7 = inlined_call_operand.vmem [shape: f32[1,32], index: 7, kind: input, shape index: {}]   ;;  %s1727_s8 = inlined_call_operand.vmem [shape: f32[1,32], index: 8, kind: input, shape index: {}]   ;;  %s1728_s9 = inlined_call_operand.vmem [shape: f32[1,32], index: 9, kind: input, shape index: {}]   ;;  %s1729_s10 = inlined_call_operand.vmem [shape: f32[2,8,32], index: 10, kind: output, shape index: {}]  }
   0x1   :  { %s1545_s15 = smov 0  }
   0x2 LB: > { %s32_s16 = sadd.s32 1, %s1467_s14  ;;  %p1265_p0 = scmp.ge.s32.totalorder %s1471_s15, 1  ;;  %s1471_s15 = sphi %s1545_s15, %s20_s15   ;;  %s1467_s14 = sphi %s1543_s14, %s1733_s14   ;;  %s1463_s13 = sphi %s1541_s13, %s1732_s13  }
   0x3   : > { %p34_p1 = scmp.ge.s32.totalorder %s32_s16, 2  ;;  %p361_p2 = scmp.lt.s32.totalorder %s1471_s15, 3 }
   0x5   : > { %s1735_s16 = smov (%p34_p1, %s32_s16), 0  ;;  %p362_p3 = pnand %p1265_p0, %p361_p2 }
   0x6   : > { %v1427_v0 = vld [vmem:[%s1723_s4] sm:$0xff] (!%p362_p3)   ;;  %s1473_s19 = smov (!%p362_p3), 96   ;;  %v1428_v1 = vld [vmem:[%s1723_s4 + $0x8] sm:$0xff] (!%p362_p3)   ;;  %v1474_v2 = vmov (!%p362_p3), 0.0   ;;  %p417_p4 = scmp.lt.s32.totalorder (!%p362_p3), %s1463_s13, 1  ;;  %vm1475_vm0 = vmmov (!%p362_p3), 0   ;;  %v582_v37 = vlaneseq (!%p362_p3) }
   0x7   : > { %365 = sbr.rel (%p362_p3) target bundleno = 1889 (0x761), region = 60  ;;  %518 = vrot.lane.b32.xlu0 (!%p362_p3), %v1427_v0, %s1473_s19  ;;  %1316 = vmatprep.subr.bf16.mxu0 (!%p362_p3), %v1474_v2  ;;  %v1270_v3 = vld [vmem:[%s1724_s5] ss:$0 sm:$0xff] (!%p362_p3)  ;;  %vm472_vm1 = vcmask (!%p362_p3), 261120   ;;  %v1476_v10 = vmov (!%p362_p3), 0   ;;  %s1477_s11 = smov (!%p362_p3), 120  }
   0x8   : > { %1317 = vmatpush3.bf16.msra.mxu0 (!%p362_p3), %v1427_v0  ;;  %1324 = vmatprep.subr.bf16.mxu1 (!%p362_p3), %v1474_v2  ;;  %s1478_s12 = smov (!%p362_p3), 112   ;;  %s1479_s17 = smov (!%p362_p3), 104   ;;  %vm588_vm2 = vcmask (!%p362_p3), 64512   ;;  %v583_v39 = vshrl.u32 (!%p362_p3), %v582_v37, 7  ;;  %vm654_vm8 = vcmask (!%p362_p3), 1043456   ;;  %vm815_vm9 = vcmask (!%p362_p3), 130112  }
   0x9   : > { %1318 = vmatprep.subr.bf16.mxu0 (!%p362_p3), %v1474_v2  ;;  %1320 = vmatprep.mubr.msk.bf16.mxu0 (!%p362_p3), %vm1475_vm0, %v1474_v2  ;;  %s1482_s26 = smov (!%p362_p3), 88   ;;  %vm932_vm10 = vcmask (!%p362_p3), 195712   ;;  %vm1049_vm11 = vcmask (!%p362_p3), 261312  }
   0xa   : > { %1328 = vmatprep.mubr.msk.bf16.mxu1 (!%p362_p3), %vm1475_vm0, %v1474_v2  ;;  %524 = vrot.lane.b32.xlu1 (!%p362_p3), %v1270_v3, %s1473_s19  ;;  %v584_v40 = vsub.s32 (!%p362_p3), 0, %v583_v39 }
   0xb   : > { %520 = vrot.lane.b32.xlu0 (!%p362_p3), %v1428_v1, %s1473_s19  ;;  %1425 = vset.pattern.permute.xlu1 (!%p362_p3), %v1476_v10 }
   0xc   : > { %1319 = vmatpush3.bf16.msra.mxu0 (!%p362_p3), %v1428_v1  ;;  %1426 = vset.pattern.permute.xlu0 (!%p362_p3), %v1476_v10 }
   0xd   : > { %1332 = vmatprep.subr.bf16.mxu0 (!%p362_p3), %v1474_v2 }
   0xe   : > { %s1737_s13 = smov (!%p417_p4, %s1463_s13), 1 }
   0xf   : > { %s1581_s24 = sshll.u32 %s1737_s13, 3  ;;  %s437_s25 = scalar_lea.vmem %s1722_s3, %s1737_s13 }
  0x10   : > { %s423_s27 = scalar_lea.vmem %s1719_s0, %s1581_s24  ;;  %s427_s30 = scalar_lea.vmem %s1720_s1, %s1581_s24  ;;  %v572_v38 = vld [vmem:[%s437_s25] sm:$0x1] }
  0x11   : > { %v1587_v4 = vld [vmem:[%s423_s27] sm:$0xff]  ;;  %s434_s21 = scalar_lea.vmem %s1721_s2, %s1581_s24  ;;  %vm573_vm4 = vcmp.gt.f32.partialorder %v572_v38, 0.5  ;;  %s1480_s13 = smov 80  }
  0x12   : > { %v453_v5 = vpack.c.bf16 %v1587_v4, %v1587_v4  ;;  %v452_v7 = vld [vmem:[%s427_s30] sm:$0xff]  ;;  %v581_v41 = vsel %vm573_vm4, 1, %v1476_v10  ;;  %s1483_s27 = smov 8  }
  0x13   : > { %v517_v9 = vpack.c.bf16 %v452_v7, %v452_v7  ;;  %v574_v26 = vld [vmem:[%s434_s21] sm:$0xff]  ;;  %v585_v42 = vrot.slane %v581_v41, %v584_v40 }
  0x14   : > { %1321 = vmatmul.mubr.msk.bf16.vlgmr.msra.gmra.mrb[0].mxu0 %vm472_vm1, %v453_v5  ;;  %vm575_vm3 = vcmp.gt.f32.partialorder %v574_v26, 0.5 }
  0x15   : > { %1334 = vmatprep.mubr.msk.bf16.mxu0 %vm1475_vm0, %v1474_v2  ;;  %v576_v27 = vsel %vm575_vm3, 1, %v1476_v10  ;;  %vm586_vm5 = vcmp.eq.s32.totalorder %v585_v42, 1 }
  0x79   : > { %v519_v6 = vpop.permute.xlu0 %518 }
  0x7a   : > { %1325 = vmatpush3.bf16.msra.mxu1 %v519_v6 }
  0x7b   : > { %1326 = vmatprep.subr.bf16.mxu1 %v1474_v2 }
  0x7c   : > { %v525_v18 = vpop.permute.xlu1 %524 }
  0x7d   : > { %v521_v8 = vpop.permute.xlu0 %520 }
  0x7e   : > { %1327 = vmatpush3.bf16.msra.mxu1 %v521_v8 }
  0x7f   : > { %1338 = vmatprep.subr.bf16.mxu1 %v1474_v2 }
  0x81   : > { %1329 = vmatmul.mubr.msk.bf16.vlgmr.msra.gmra.mrb[0].mxu1 %vm472_vm1, %v517_v9 }
  0x82   : > { %1340 = vmatprep.mubr.msk.bf16.mxu1 %vm1475_vm0, %v1474_v2 }
  0xe7   : > { %v510_v11 = vpop.f32.mrb[0].mxu0 }
  0xe8   : > { %v511_v12 = vadd.f32 %v1270_v3, %v510_v11  ;;  %v1322_v13 = vpop.f32.mrb[1].mxu0 }
  0xe9   : > { %v513_v14 = vpop.f32.mrb[2].mxu0 }
  0xea   : > { %v516_v15 = vmul.f32 0.35355338, %v511_v12  ;;  %v1323_v16 = vpop.f32.mrb[3].mxu0 }
  0xec   : > { %v570_v17 = vpack.c.bf16 %v516_v15, %v516_v15 }
  0xee   : > { %700 = vrot.lane.b32.xlu0 %v570_v17, %s1477_s11 }
  0xf2   : > { %817 = vrot.lane.b32.xlu0 %v570_v17, %s1478_s12 }
  0xf6   : > { %934 = vrot.lane.b32.xlu0 %v570_v17, %s1479_s17 }
 0x154   : > { %v564_v19 = vpop.f32.mrb[0].mxu1 }
 0x155   : > { %v565_v20 = vadd.f32 %v564_v19, %v525_v18  ;;  %v1330_v21 = vpop.f32.mrb[1].mxu1 }
 0x156   : > { %v567_v22 = vpop.f32.mrb[2].mxu1 }
 0x157   : > { %v1606_v23 = vpack.c.bf16 %v565_v20, %v565_v20  ;;  %v1331_v24 = vpop.f32.mrb[3].mxu1 }
 0x159   : > { %702 = vrot.lane.b32.xlu1 %v1606_v23, %s1477_s11  ;;  %v593_v25 = vsel %vm588_vm2, %v1606_v23, 0 }
 0x15a   : > { %1333 = vmatpush3.bf16.xpose.msra.mxu0 %v593_v25 }
 0x15b   : > { %1344 = vmatprep.subr.bf16.mxu0 %v1474_v2 }
 0x15d   : > { %819 = vrot.lane.b32.xlu1 %v1606_v23, %s1478_s12  ;;  %s1484_s12 = smov 16  }
 0x160   : > { %v701_v31 = vpop.permute.xlu0 %700 }
 0x161   : > { %936 = vrot.lane.b32.xlu1 %v1606_v23, %s1479_s17  ;;  %1335 = vmatmul.mubr.msk.bf16.vlgmr.msra.gmra.mrb[4].mxu0 %vm588_vm2, %v570_v17  ;;  %s1485_s17 = smov 24  }
 0x162   : > { %1346 = vmatprep.mubr.msk.bf16.mxu0 %vm1475_vm0, %v1474_v2 }
 0x164   : > { %v818_v34 = vpop.permute.xlu0 %817 }
 0x165   : > { %578 = vperm.xlu1 %1425, %v576_v27  }
 0x168   : > { %v935_v36 = vpop.permute.xlu0 %934 }
 0x1cb   : > { %v703_v28 = vpop.permute.xlu1 %702 }
 0x1cc   : > { %v708_v29 = vsel %vm588_vm2, %v703_v28, 0 }
 0x1cd   : > { %1345 = vmatpush3.bf16.xpose.msra.mxu0 %v708_v29 }
 0x1ce   : > { %1356 = vmatprep.subr.bf16.mxu0 %v1474_v2 }
 0x1cf   : > { %v820_v30 = vpop.permute.xlu1 %819 }
 0x1d0   : > { %v825_v32 = vsel %vm588_vm2, %v820_v30, 0 }
 0x1d3   : > { %v937_v33 = vpop.permute.xlu1 %936 }
 0x1d4   : > { %1347 = vmatmul.mubr.msk.bf16.vlgmr.msra.gmra.mrb[8].mxu0 %vm588_vm2, %v701_v31  ;;  %v942_v35 = vsel %vm588_vm2, %v937_v33, 0 }
 0x1d5   : > { %1357 = vmatpush3.bf16.xpose.msra.mxu0 %v825_v32  ;;  %1358 = vmatprep.mubr.msk.bf16.mxu0 %vm1475_vm0, %v1474_v2 }
 0x1d6   : > { %1368 = vmatprep.subr.bf16.mxu0 %v1474_v2 }
 0x1dc   : > { %1359 = vmatmul.mubr.msk.bf16.vlgmr.msra.gmra.mrb[12].mxu0 %vm588_vm2, %v818_v34 }
 0x1dd   : > { %1369 = vmatpush3.bf16.xpose.msra.mxu0 %v942_v35  ;;  %1370 = vmatprep.mubr.msk.bf16.mxu0 %vm1475_vm0, %v1474_v2 }
 0x1de   : > { %1380 = vmatprep.subr.bf16.mxu0 %v1474_v2 }
 0x1e4   : > { %1371 = vmatmul.mubr.msk.bf16.vlgmr.msra.gmra.mrb[16].mxu0 %vm588_vm2, %v935_v36  ;;  %v579_v43 = vpop.permute.xlu1 %578 }
 0x1e5   : > { %1384 = vmatprep.mubr.msk.bf16.mxu0 %vm1475_vm0, %v1474_v2  ;;  %vm580_vm6 = vcmp.eq.s32.totalorder %v579_v43, 1 }
 0x1e6   : > { %vm1642_vm7 = vmand %vm580_vm6, %vm586_vm5 }
 0x234   : > { %v629_v45 = vpop.f32.mrb[4].mxu0 }
 0x235   : > { %v635_v46 = vsel %vm1642_vm7, %v629_v45, -1e+09  ;;  %v1336_v47 = vpop.f32.mrb[5].mxu0 }
 0x236   : > { %v632_v48 = vpop.f32.mrb[6].mxu0  ;;  %v636_v49 = vsel %vm588_vm2, %v635_v46, -inf }
 0x237   : > { %637 = vmax.xlane.f32.xlu0 %v636_v49  ;;  %v1337_v50 = vpop.f32.mrb[7].mxu0 }
 0x2a7   : > { %v744_v51 = vpop.f32.mrb[8].mxu0 }
 0x2a8   : > { %v750_v52 = vsel %vm1642_vm7, %v744_v51, -1e+09  ;;  %v1348_v53 = vpop.f32.mrb[9].mxu0 }
 0x2a9   : > { %v747_v54 = vpop.f32.mrb[10].mxu0  ;;  %v751_v55 = vsel %vm588_vm2, %v750_v52, -inf }
 0x2aa   : > { %752 = vmax.xlane.f32.xlu1 %v751_v55  ;;  %v1349_v56 = vpop.f32.mrb[11].mxu0 }
 0x2af   : > { %v861_v57 = vpop.f32.mrb[12].mxu0 }
 0x2b0   : > { %v867_v58 = vsel %vm1642_vm7, %v861_v57, -1e+09  ;;  %v1360_v59 = vpop.f32.mrb[13].mxu0 }
 0x2b1   : > { %v864_v60 = vpop.f32.mrb[14].mxu0  ;;  %v868_v61 = vsel %vm588_vm2, %v867_v58, -inf  ;;  %v1429_v59 = vld [vmem:[%s1725_s6] sm:$0xff]  }
 0x2b2   : > { %869 = vmax.xlane.f32.xlu0 %v868_v61  ;;  %v1361_v62 = vpop.f32.mrb[15].mxu0  ;;  %1381 = vmatpush3.bf16.msra.mxu0 %v1429_v59  ;;  %v1430_v60 = vld [vmem:[%s1725_s6 + $0x8] sm:$0xff]  }
 0x2b3   : > { %1382 = vmatprep.subr.bf16.mxu0 %v1474_v2 }
 0x2b6   : > { %1383 = vmatpush3.bf16.msra.mxu0 %v1430_v60 }
 0x2b7   : > { %v978_v63 = vpop.f32.mrb[16].mxu0 }
 0x2b8   : > { %v984_v0 = vsel %vm1642_vm7, %v978_v63, -1e+09  ;;  %v1372_v1 = vpop.f32.mrb[17].mxu0 }
 0x2b9   : > { %v981_v3 = vpop.f32.mrb[18].mxu0  ;;  %v985_v5 = vsel %vm588_vm2, %v984_v0, -inf }
 0x2ba   : > { %986 = vmax.xlane.f32.xlu0 %v985_v5  ;;  %v1373_v6 = vpop.f32.mrb[19].mxu0 }
 0x2c4   : > { %v638_v7 = vpop.xlane.xlu0 %637 }
 0x2c5   : > { %v639_v8 = vsub.f32 %v635_v46, %v638_v7 }
 0x2c7   : > { %v640_v9 = vmul.f32 1.442695, %v639_v8 }
 0x2c9   : > { %1431 = vpow2.f32 %v640_v9 }
 0x2d3   : > { %v1432_v10 = vpop.eup %1431 }
 0x2d4   : > { %v642_v11 = vsel %vm588_vm2, %v1432_v10, 0.0 }
 0x2d5   : > { %643 = vadd.xlane.f32.xlu1 %v642_v11  ;;  %v1283_v11 = vld [vmem:[%s1726_s7] ss:$0 sm:$0xff] }
 0x2e6   : > { %649 = vrot.lane.b32.xlu1 %v1606_v23, %s1473_s19  ;;  %s1481_s19 = smov 72  }
 0x337   : > { %v753_v12 = vpop.xlane.xlu1 %752 }
 0x338   : > { %v754_v13 = vsub.f32 %v750_v52, %v753_v12 }
 0x33a   : > { %v755_v14 = vmul.f32 1.442695, %v754_v13 }
 0x33c   : > { %1433 = vpow2.f32 %v755_v14 }
 0x33f   : > { %v870_v15 = vpop.xlane.xlu0 %869 }
 0x340   : > { %v871_v16 = vsub.f32 %v867_v58, %v870_v15 }
 0x342   : > { %v872_v17 = vmul.f32 1.442695, %v871_v16 }
 0x344   : > { %1435 = vpow2.f32 %v872_v17 }
 0x346   : > { %v1434_v18 = vpop.eup %1433 }
 0x347   : > { %v987_v19 = vpop.xlane.xlu0 %986  ;;  %v757_v20 = vsel %vm588_vm2, %v1434_v18, 0.0 }
 0x348   : > { %v988_v21 = vsub.f32 %v984_v0, %v987_v19  ;;  %758 = vadd.xlane.f32.xlu0 %v757_v20 }
 0x34a   : > { %v989_v22 = vmul.f32 1.442695, %v988_v21 }
 0x34c   : > { %1437 = vpow2.f32 %v989_v22 }
 0x34e   : > { %v1436_v24 = vpop.eup %1435 }
 0x34f   : > { %v874_v25 = vsel %vm588_vm2, %v1436_v24, 0.0 }
 0x350   : > { %875 = vadd.xlane.f32.xlu1 %v874_v25 }
 0x356   : > { %v1438_v26 = vpop.eup %1437 }
 0x357   : > { %v991_v27 = vsel %vm588_vm2, %v1438_v26, 0.0 }
 0x358   : > { %992 = vadd.xlane.f32.xlu0 %v991_v27 }
 0x361   : > { %880 = vrot.lane.b32.xlu1 %v1606_v23, %s1480_s13 }
 0x362   : > { %v644_v28 = vpop.xlane.xlu1 %643 }
 0x363   : > { %1439 = vrcp.f32 %v644_v28 }
 0x365   : > { %997 = vrot.lane.b32.xlu1 %v1606_v23, %s1481_s19 }
 0x366   : > { %v650_v29 = vpop.permute.xlu1 %649 }
 0x367   : > { %v656_v30 = vsel %vm654_vm8, %v650_v29, 0 }
 0x368   : > { %1339 = vmatpush3.bf16.msra.mxu1 %v656_v30  ;;  %v1288_v30 = vld [vmem:[%s1728_s9] ss:$0 sm:$0xff] }
 0x369   : > { %1350 = vmatprep.subr.bf16.mxu1 %v1474_v2 }
 0x36d   : > { %v1440_v31 = vpop.eup %1439 }
 0x36e   : > { %v646_v32 = vmul.f32 %v1440_v31, %v1432_v10  ;;  %763 = vrot.lane.b32.xlu0 %v1606_v23, %s1482_s26  ;;  %s444_s26 = scalar_lea.vmem %s1729_s10, %s1581_s24 }
 0x370   : > { %v647_v33 = vpack.c.bf16 %v646_v32, %v646_v32 }
 0x372   : > { %1341 = vmatmul.mubr.msk.bf16.vlgmr.msra.gmra.mrb[4].mxu1 %vm588_vm2, %v647_v33 }
 0x373   : > { %1352 = vmatprep.mubr.msk.bf16.mxu1 %vm1475_vm0, %v1474_v2 }
 0x3d5   : > { %v759_v34 = vpop.xlane.xlu0 %758 }
 0x3d6   : > { %1441 = vrcp.f32 %v759_v34 }
 0x3dd   : > { %v876_v35 = vpop.xlane.xlu1 %875 }
 0x3de   : > { %1443 = vrcp.f32 %v876_v35 }
 0x3e0   : > { %v1442_v36 = vpop.eup %1441 }
 0x3e1   : > { %v761_v38 = vmul.f32 %v1442_v36, %v1434_v18  ;;  %v881_v41 = vpop.permute.xlu1 %880 }
 0x3e2   : > { %v886_v43 = vsel %vm654_vm8, %v881_v41, 0 }
 0x3e3   : > { %v762_v23 = vpack.c.bf16 %v761_v38, %v761_v38 }
 0x3e5   : > { %v993_v37 = vpop.xlane.xlu0 %992  ;;  %v998_v45 = vpop.permute.xlu1 %997 }
 0x3e6   : > { %1445 = vrcp.f32 %v993_v37  ;;  %v1003_v48 = vsel %vm654_vm8, %v998_v45, 0 }
 0x3e8   : > { %v1444_v42 = vpop.eup %1443 }
 0x3e9   : > { %v764_v39 = vpop.permute.xlu0 %763  ;;  %v878_v44 = vmul.f32 %v1444_v42, %v1436_v24 }
 0x3ea   : > { %v769_v40 = vsel %vm654_vm8, %v764_v39, 0 }
 0x3eb   : > { %1351 = vmatpush3.bf16.msra.mxu1 %v769_v40  ;;  %v879_v46 = vpack.c.bf16 %v878_v44, %v878_v44 }
 0x3ec   : > { %1362 = vmatprep.subr.bf16.mxu1 %v1474_v2 }
 0x3ee   : > { %1353 = vmatmul.mubr.msk.bf16.vlgmr.msra.gmra.mrb[8].mxu1 %vm588_vm2, %v762_v23 }
 0x3ef   : > { %1363 = vmatpush3.bf16.msra.mxu1 %v886_v43  ;;  %1364 = vmatprep.mubr.msk.bf16.mxu1 %vm1475_vm0, %v1474_v2 }
 0x3f0   : > { %1374 = vmatprep.subr.bf16.mxu1 %v1474_v2  ;;  %v1446_v47 = vpop.eup %1445 }
 0x3f1   : > { %v995_v49 = vmul.f32 %v1446_v47, %v1438_v26 }
 0x3f3   : > { %v996_v50 = vpack.c.bf16 %v995_v49, %v995_v49 }
 0x3f6   : > { %1365 = vmatmul.mubr.msk.bf16.vlgmr.msra.gmra.mrb[12].mxu1 %vm588_vm2, %v879_v46 }
 0x3f7   : > { %1375 = vmatpush3.bf16.msra.mxu1 %v1003_v48  ;;  %1376 = vmatprep.mubr.msk.bf16.mxu1 %vm1475_vm0, %v1474_v2 }
 0x3fe   : > { %1377 = vmatmul.mubr.msk.bf16.vlgmr.msra.gmra.mrb[16].mxu1 %vm588_vm2, %v996_v50 }
 0x445   : > { %v692_v51 = vpop.f32.mrb[4].mxu1 }
 0x446   : > { %698 = vst.msk [vmem:[#allocation2] sm:$0xff] %vm588_vm2, %v692_v51  ;;  %v1342_v52 = vpop.f32.mrb[5].mxu1 }
 0x447   : > { %v695_v53 = vpop.f32.mrb[6].mxu1 }
 0x448   : > { %v1343_v54 = vpop.f32.mrb[7].mxu1 }
 0x4c1   : > { %v805_v55 = vpop.f32.mrb[8].mxu1 }
 0x4c2   : > { %812 = vrot.lane.b32.xlu0 %v805_v55, %s1483_s27  ;;  %v1354_v56 = vpop.f32.mrb[9].mxu1 }
 0x4c3   : > { %v808_v57 = vpop.f32.mrb[10].mxu1 }
 0x4c4   : > { %v1355_v58 = vpop.f32.mrb[11].mxu1 }
 0x4c9   : > { %v922_v61 = vpop.f32.mrb[12].mxu1 }
 0x4ca   : > { %929 = vrot.lane.b32.xlu1 %v922_v61, %s1484_s12  ;;  %v1366_v62 = vpop.f32.mrb[13].mxu1 }
 0x4cb   : > { %v925_v63 = vpop.f32.mrb[14].mxu1 }
 0x4cc   : > { %v1367_v0 = vpop.f32.mrb[15].mxu1 }
 0x4d1   : > { %v1039_v1 = vpop.f32.mrb[16].mxu1 }
 0x4d2   : > { %1046 = vrot.lane.b32.xlu0 %v1039_v1, %s1485_s17  ;;  %v1378_v3 = vpop.f32.mrb[17].mxu1 }
 0x4d3   : > { %v1042_v5 = vpop.f32.mrb[18].mxu1 }
 0x4d4   : > { %v1379_v6 = vpop.f32.mrb[19].mxu1 }
 0x534   : > { %v813_v7 = vpop.permute.xlu0 %812 }
 0x535   : > { %816 = vst.msk [vmem:[#allocation2] sm:$0xff] %vm815_vm9, %v813_v7 }
 0x53c   : > { %v930_v8 = vpop.permute.xlu1 %929 }
 0x53d   : > { %933 = vst.msk [vmem:[#allocation2] sm:$0xff] %vm932_vm10, %v930_v8 }
 0x544   : > { %v1047_v2 = vpop.permute.xlu0 %1046 }
 0x545   : > { %1050 = vst.msk [vmem:[#allocation2] sm:$0xff] %vm1049_vm11, %v1047_v2 }
 0x54c   : > { %v1051_v9 = vld [vmem:[#allocation2] sm:$0xff] }
 0x54d   : > { %v1052_v10 = vpack.c.bf16 %v1051_v9, %v1051_v9 }
 0x54f   : > { %1385 = vmatmul.mubr.msk.bf16.vlgmr.msra.gmra.mrb[20].mxu0 %vm472_vm1, %v1052_v10 }
 0x622   : > { %v1113_v12 = vpop.f32.mrb[20].mxu0 }
 0x623   : > { %v1114_v13 = vadd.f32 %v1283_v11, %v1113_v12  ;;  %v1386_v14 = vpop.f32.mrb[21].mxu0 }
 0x624   : > { %v1116_v15 = vpop.f32.mrb[22].mxu0 }
 0x625   : > { %v1387_v16 = vpop.f32.mrb[23].mxu0  ;;  %v1119_v17 = vadd.f32 %v1114_v13, %v1587_v4  ;;  %v1287_v4 = vld [vmem:[%s1727_s8] ss:$0 sm:$0xff] }
 0x627   : > { %v1122_v18 = vsel %vm472_vm1, %v1119_v17, 0.0 }
 0x628   : > { %1123 = vadd.xlane.f32.xlu1 %v1122_v18 }
 0x6b5   : > { %v1124_v19 = vpop.xlane.xlu1 %1123 }
 0x6b6   : > { %v1126_v20 = vmul.f32 0.03125, %v1124_v19 }
 0x6b8   : > { %v1127_v21 = vsub.f32 %v1119_v17, %v1126_v20 }
 0x6ba   : > { %v1128_v22 = vmul.f32 %v1127_v21, %v1127_v21 }
 0x6bc   : > { %v1129_v24 = vsel %vm472_vm1, %v1128_v22, 0.0 }
 0x6bd   : > { %1130 = vadd.xlane.f32.xlu0 %v1129_v24 }
 0x74a   : > { %v1131_v25 = vpop.xlane.xlu0 %1130 }
 0x74b   : > { %v1132_v26 = vmul.f32 0.03125, %v1131_v25 }
 0x74d   : > { %v1133_v27 = vadd.f32 1e-05, %v1132_v26 }
 0x74f   : > { %1447 = vrsqrt.f32 %v1133_v27 }
 0x759   : > { %v1448_v28 = vpop.eup %1447 }
 0x75a   : > { %v1135_v29 = vmul.f32 %v1448_v28, %v1127_v21 }
 0x75c   : > { %v1142_v31 = vmul.f32 %v1287_v4, %v1135_v29 }
 0x75e   : > { %v1149_v32 = vadd.f32 %v1288_v30, %v1142_v31 }
 0x760   : > { %1150 = vst.msk [vmem:[%s444_s26] sm:$0xff] %vm472_vm1, %v1149_v32 }
 0x761 PF: > { %s20_s15 = sadd.s32 1, %s1471_s15   ;;  %s1732_s13 = smov %s1467_s14 }
 0x762   : > { %p17_p5 = scmp.ge.s32.totalorder %s20_s15, 4   ;;  %s1733_s14 = smov %s1735_s16 }
 0x764   :  { %19 = sbr.rel (!%p17_p5) target bundleno = 2 (0x2), region = 99 }

// kernel: transformer_forward.11
= control target key start
LH: loop header
LB: loop body
LE: loop exit
PB: predicated region body
PF: predicated region fallthrough
CT: control target
= control target key end

     0   :  { %s1325_s30 = smov 0   ;;  %s1470_s0 = inlined_call_operand.vmem [shape: f32[2,8,32], index: 0, kind: input, shape index: {}]   ;;  %s1471_s1 = inlined_call_operand.vmem [shape: f32[2,8,1], index: 1, kind: input, shape index: {}]   ;;  %s1472_s2 = inlined_call_operand.vmem [shape: f32[2,1,8], index: 2, kind: input, shape index: {}]   ;;  %s1473_s3 = inlined_call_operand.vmem [shape: bf16[32,96], index: 3, kind: input, shape index: {}]   ;;  %s1474_s4 = inlined_call_operand.vmem [shape: f32[1,96], index: 4, kind: input, shape index: {}]   ;;  %s1475_s5 = inlined_call_operand.vmem [shape: bf16[32,32], index: 5, kind: input, shape index: {}]   ;;  %s1476_s6 = inlined_call_operand.vmem [shape: f32[1,32], index: 6, kind: input, shape index: {}]   ;;  %s1477_s7 = inlined_call_operand.vmem [shape: f32[1,32], index: 7, kind: input, shape index: {}]   ;;  %s1478_s8 = inlined_call_operand.vmem [shape: f32[1,32], index: 8, kind: input, shape index: {}]   ;;  %s1479_s9 = inlined_call_operand.vmem [shape: f32[2,8,32], index: 9, kind: output, shape index: {}]  }
   0x1 LB: > { %s1087_s10 = sadd.s32 4294967295, %s1256_s30   ;;  %p1091_p0 = scmp.ge.s32.totalorder %s1256_s30, 1  ;;  %s1256_s30 = sphi %s1325_s30, %s19_s30  }
   0x2   : > { %p303_p1 = scmp.lt.s32.totalorder %s1256_s30, 3 }
   0x4   : > { %p304_p2 = pnand %p1091_p0, %p303_p1 }
   0x5   : > { %v1228_v0 = vld [vmem:[%s1473_s3] sm:$0xff] (!%p304_p2)   ;;  %v1258_v1 = vmov (!%p304_p2), 0.0   ;;  %v1229_v2 = vld [vmem:[%s1473_s3 + $0x8] sm:$0xff] (!%p304_p2)   ;;  %vm1259_vm0 = vmmov (!%p304_p2), 0   ;;  %p344_p3 = scmp.lt.s32.totalorder (!%p304_p2), %s1087_s10, 1  ;;  %vm385_vm1 = vcmask (!%p304_p2), 261120   ;;  %v442_v28 = vlaneseq (!%p304_p2) }
   0x6   : > { %307 = sbr.rel (%p304_p2) target bundleno = 1815 (0x717), region = 56  ;;  %1137 = vmatprep.subr.bf16.mxu0 (!%p304_p2), %v1258_v1  ;;  %1145 = vmatprep.subr.bf16.mxu1 (!%p304_p2), %v1258_v1  ;;  %v1095_v5 = vld [vmem:[%s1474_s4] ss:$0 sm:$0xff] (!%p304_p2)  ;;  %s1260_s21 = smov (!%p304_p2), 96   ;;  %v1267_v14 = vmov (!%p304_p2), 0   ;;  %vm451_vm3 = vcmask (!%p304_p2), 64512  }
   0x7   : > { %1138 = vmatpush3.bf16.msra.mxu0 (!%p304_p2), %v1228_v0  ;;  %1141 = vmatprep.mubr.msk.bf16.mxu0 (!%p304_p2), %vm1259_vm0, %v1258_v1  ;;  %s1261_s22 = smov (!%p304_p2), 120   ;;  %s1262_s23 = smov (!%p304_p2), 88   ;;  %v443_v30 = vshrl.u32 (!%p304_p2), %v442_v28, 7  ;;  %vm516_vm8 = vcmask (!%p304_p2), 1043456   ;;  %vm677_vm9 = vcmask (!%p304_p2), 130112   ;;  %vm794_vm10 = vcmask (!%p304_p2), 195712  }
   0x8   : > { %1139 = vmatprep.subr.bf16.mxu0 (!%p304_p2), %v1258_v1  ;;  %1147 = vmatprep.mubr.msk.bf16.mxu1 (!%p304_p2), %vm1259_vm0, %v1258_v1  ;;  %s1263_s24 = smov (!%p304_p2), 80   ;;  %s1264_s25 = smov (!%p304_p2), 112   ;;  %vm911_vm11 = vcmask (!%p304_p2), 261312  }
   0x9   : > { %s1265_s26 = smov (!%p304_p2), 72   ;;  %s1266_s27 = smov (!%p304_p2), 104   ;;  %1226 = vset.pattern.permute.xlu1 (!%p304_p2), %v1267_v14  ;;  %1227 = vset.pattern.permute.xlu0 (!%p304_p2), %v1267_v14  ;;  %v444_v31 = vsub.s32 (!%p304_p2), 0, %v443_v30 }
   0xa   : > { %s1269_s16 = smov (!%p304_p2), 56   ;;  %s1270_s17 = smov (!%p304_p2), 48  }
   0xb   : > { %1140 = vmatpush3.bf16.msra.mxu0 (!%p304_p2), %v1229_v2  ;;  %s1272_s19 = smov (!%p304_p2), 8  }
   0xc   : > { %1151 = vmatprep.subr.bf16.mxu0 (!%p304_p2), %v1258_v1 }
   0xd   : > { %s1483_s10 = smov (!%p344_p3, %s1087_s10), 1 }
   0xe   : > { %s1349_s15 = sshll.u32 %s1483_s10, 3  ;;  %s354_s14 = scalar_lea.vmem %s1472_s2, %s1483_s10 }
   0xf   : > { %s347_s18 = scalar_lea.vmem %s1470_s0, %s1349_s15  ;;  %s351_s11 = scalar_lea.vmem %s1471_s1, %s1349_s15  ;;  %v432_v29 = vld [vmem:[%s354_s14] sm:$0x1] }
  0x10   : > { %v1356_v3 = vld [vmem:[%s347_s18] sm:$0xff]  ;;  %vm433_vm4 = vcmp.gt.f32.partialorder %v432_v29, 0.5  ;;  %s1268_s10 = smov 64   ;;  %s1271_s18 = smov 40  }
  0x11   : > { %v366_v4 = vpack.c.bf16 %v1356_v3, %v1356_v3  ;;  %v434_v15 = vld [vmem:[%s351_s11] sm:$0xff]  ;;  %v441_v32 = vsel %vm433_vm4, 1, %v1267_v14 }
  0x12   : > { %vm435_vm2 = vcmp.gt.f32.partialorder %v434_v15, 0.5  ;;  %v445_v33 = vrot.slane %v441_v32, %v444_v31 }
  0x13   : > { %1142 = vmatmul.mubr.msk.bf16.vlgmr.msra.gmra.mrb[0].mxu0 %vm385_vm1, %v366_v4  ;;  %v436_v16 = vsel %vm435_vm2, 1, %v1267_v14 }
  0x14   : > { %1153 = vmatprep.mubr.msk.bf16.mxu0 %vm1259_vm0, %v1258_v1  ;;  %vm446_vm5 = vcmp.eq.s32.totalorder %v445_v33, 1 }
  0xe6   : > { %v423_v6 = vpop.f32.mrb[0].mxu0 }
  0xe7   : > { %v424_v7 = vadd.f32 %v1095_v5, %v423_v6  ;;  %v1143_v8 = vpop.f32.mrb[1].mxu0 }
  0xe8   : > { %v426_v9 = vpop.f32.mrb[2].mxu0 }
  0xe9   : > { %v429_v10 = vmul.f32 0.35355338, %v424_v7  ;;  %v1366_v11 = vpack.c.bf16 %v424_v7, %v424_v7  ;;  %v1144_v12 = vpop.f32.mrb[3].mxu0 }
  0xeb   : > { %v430_v13 = vpack.c.bf16 %v429_v10, %v429_v10  ;;  %449 = vrot.lane.b32.xlu0 %v1366_v11, %s1260_s21 }
  0xed   : > { %562 = vrot.lane.b32.xlu1 %v430_v13, %s1261_s22 }
  0xef   : > { %564 = vrot.lane.b32.xlu0 %v1366_v11, %s1262_s23 }
  0xf1   : > { %681 = vrot.lane.b32.xlu1 %v1366_v11, %s1263_s24  ;;  %s1273_s24 = smov 16  }
  0xf3   : > { %679 = vrot.lane.b32.xlu0 %v430_v13, %s1264_s25  ;;  %s1274_s25 = smov 24  }
  0xf5   : > { %798 = vrot.lane.b32.xlu1 %v1366_v11, %s1265_s26 }
  0xf7   : > { %796 = vrot.lane.b32.xlu0 %v430_v13, %s1266_s27 }
  0xf9   : > { %438 = vperm.xlu1 %1226, %v436_v16  }
 0x15d   : > { %v450_v17 = vpop.permute.xlu0 %449 }
 0x15e   : > { %v456_v18 = vsel %vm451_vm3, %v450_v17, 0 }
 0x15f   : > { %1146 = vmatpush3.bf16.xpose.msra.mxu1 %v456_v18  ;;  %v563_v20 = vpop.permute.xlu1 %562 }
 0x160   : > { %1157 = vmatprep.subr.bf16.mxu1 %v1258_v1 }
 0x161   : > { %v565_v19 = vpop.permute.xlu0 %564 }
 0x162   : > { %v570_v21 = vsel %vm451_vm3, %v565_v19, 0 }
 0x163   : > { %v682_v22 = vpop.permute.xlu1 %681 }
 0x164   : > { %v687_v23 = vsel %vm451_vm3, %v682_v22, 0 }
 0x165   : > { %v680_v25 = vpop.permute.xlu0 %679 }
 0x166   : > { %1148 = vmatmul.mubr.msk.bf16.vlgmr.msra.gmra.mrb[0].mxu1 %vm451_vm3, %v430_v13 }
 0x167   : > { %1158 = vmatpush3.bf16.xpose.msra.mxu1 %v570_v21  ;;  %1159 = vmatprep.mubr.msk.bf16.mxu1 %vm1259_vm0, %v1258_v1  ;;  %v799_v24 = vpop.permute.xlu1 %798 }
 0x168   : > { %1169 = vmatprep.subr.bf16.mxu1 %v1258_v1  ;;  %v804_v26 = vsel %vm451_vm3, %v799_v24, 0 }
 0x169   : > { %v797_v27 = vpop.permute.xlu0 %796 }
 0x16e   : > { %1160 = vmatmul.mubr.msk.bf16.vlgmr.msra.gmra.mrb[4].mxu1 %vm451_vm3, %v563_v20 }
 0x16f   : > { %1170 = vmatpush3.bf16.xpose.msra.mxu1 %v687_v23  ;;  %1171 = vmatprep.mubr.msk.bf16.mxu1 %vm1259_vm0, %v1258_v1 }
 0x170   : > { %1181 = vmatprep.subr.bf16.mxu1 %v1258_v1 }
 0x176   : > { %1172 = vmatmul.mubr.msk.bf16.vlgmr.msra.gmra.mrb[8].mxu1 %vm451_vm3, %v680_v25 }
 0x177   : > { %1182 = vmatpush3.bf16.xpose.msra.mxu1 %v804_v26  ;;  %1183 = vmatprep.mubr.msk.bf16.mxu1 %vm1259_vm0, %v1258_v1 }
 0x178   : > { %1193 = vmatprep.subr.bf16.mxu1 %v1258_v1  ;;  %v439_v34 = vpop.permute.xlu1 %438 }
 0x179   : > { %vm440_vm6 = vcmp.eq.s32.totalorder %v439_v34, 1 }
 0x17a   : > { %vm1400_vm7 = vmand %vm440_vm6, %vm446_vm5 }
 0x17e   : > { %1184 = vmatmul.mubr.msk.bf16.vlgmr.msra.gmra.mrb[12].mxu1 %vm451_vm3, %v797_v27 }
 0x17f   : > { %1197 = vmatprep.mubr.msk.bf16.mxu1 %vm1259_vm0, %v1258_v1 }
 0x239   : > { %v492_v36 = vpop.f32.mrb[0].mxu1 }
 0x23a   : > { %v498_v37 = vsel %vm1400_vm7, %v492_v36, -1e+09  ;;  %v1149_v38 = vpop.f32.mrb[1].mxu1 }
 0x23b   : > { %v495_v39 = vpop.f32.mrb[2].mxu1  ;;  %v499_v40 = vsel %vm451_vm3, %v498_v37, -inf }
 0x23c   : > { %500 = vmax.xlane.f32.xlu0 %v499_v40  ;;  %v1150_v41 = vpop.f32.mrb[3].mxu1 }
 0x241   : > { %v606_v42 = vpop.f32.mrb[4].mxu1 }
 0x242   : > { %v612_v43 = vsel %vm1400_vm7, %v606_v42, -1e+09  ;;  %v1161_v44 = vpop.f32.mrb[5].mxu1 }
 0x243   : > { %v609_v45 = vpop.f32.mrb[6].mxu1  ;;  %v613_v46 = vsel %vm451_vm3, %v612_v43, -inf }
 0x244   : > { %614 = vmax.xlane.f32.xlu1 %v613_v46  ;;  %v1162_v47 = vpop.f32.mrb[7].mxu1 }
 0x249   : > { %v723_v48 = vpop.f32.mrb[8].mxu1 }
 0x24a   : > { %v729_v49 = vsel %vm1400_vm7, %v723_v48, -1e+09  ;;  %v1173_v50 = vpop.f32.mrb[9].mxu1 }
 0x24b   : > { %v726_v51 = vpop.f32.mrb[10].mxu1  ;;  %v730_v52 = vsel %vm451_vm3, %v729_v49, -inf  ;;  %v1230_v50 = vld [vmem:[%s1475_s5] sm:$0xff]  }
 0x24c   : > { %731 = vmax.xlane.f32.xlu0 %v730_v52  ;;  %v1174_v53 = vpop.f32.mrb[11].mxu1  ;;  %1194 = vmatpush3.bf16.msra.mxu1 %v1230_v50  ;;  %v1231_v51 = vld [vmem:[%s1475_s5 + $0x8] sm:$0xff]  }
 0x24d   : > { %1195 = vmatprep.subr.bf16.mxu1 %v1258_v1 }
 0x250   : > { %1196 = vmatpush3.bf16.msra.mxu1 %v1231_v51 }
 0x251   : > { %v840_v54 = vpop.f32.mrb[12].mxu1 }
 0x252   : > { %v846_v55 = vsel %vm1400_vm7, %v840_v54, -1e+09  ;;  %v1185_v56 = vpop.f32.mrb[13].mxu1 }
 0x253   : > { %v843_v57 = vpop.f32.mrb[14].mxu1  ;;  %v847_v58 = vsel %vm451_vm3, %v846_v55, -inf }
 0x254   : > { %848 = vmax.xlane.f32.xlu0 %v847_v58  ;;  %v1186_v59 = vpop.f32.mrb[15].mxu1 }
 0x2c9   : > { %v501_v60 = vpop.xlane.xlu0 %500 }
 0x2ca   : > { %v502_v61 = vsub.f32 %v498_v37, %v501_v60 }
 0x2cc   : > { %v503_v62 = vmul.f32 1.442695, %v502_v61 }
 0x2ce   : > { %1232 = vpow2.f32 %v503_v62 }
 0x2d1   : > { %v615_v63 = vpop.xlane.xlu1 %614 }
 0x2d2   : > { %v616_v0 = vsub.f32 %v612_v43, %v615_v63 }
 0x2d4   : > { %v617_v2 = vmul.f32 1.442695, %v616_v0  ;;  %v1107_v0 = vld [vmem:[%s1476_s6] ss:$0 sm:$0xff] }
 0x2d6   : > { %1234 = vpow2.f32 %v617_v2 }
 0x2d8   : > { %v1233_v4 = vpop.eup %1232 }
 0x2d9   : > { %v505_v5 = vsel %vm451_vm3, %v1233_v4, 0.0  ;;  %v732_v6 = vpop.xlane.xlu0 %731 }
 0x2da   : > { %506 = vadd.xlane.f32.xlu1 %v505_v5  ;;  %v733_v15 = vsub.f32 %v729_v49, %v732_v6 }
 0x2dc   : > { %v734_v16 = vmul.f32 1.442695, %v733_v15 }
 0x2e0   : > { %v1235_v7 = vpop.eup %1234 }
 0x2e1   : > { %v849_v8 = vpop.xlane.xlu0 %848  ;;  %v619_v9 = vsel %vm451_vm3, %v1235_v7, 0.0 }
 0x2e2   : > { %v850_v10 = vsub.f32 %v846_v55, %v849_v8  ;;  %620 = vadd.xlane.f32.xlu0 %v619_v9 }
 0x2e4   : > { %v851_v12 = vmul.f32 1.442695, %v850_v10 }
 0x2e6   : > { %1236 = vpow2.f32 %v851_v12 }
 0x2e7   : > { %1238 = vpow2.f32 %v734_v16 }
 0x2eb   : > { %511 = vrot.lane.b32.xlu1 %v1366_v11, %s1268_s10  ;;  %s358_s10 = scalar_lea.vmem %s1479_s9, %s1349_s15 }
 0x2f0   : > { %v1237_v13 = vpop.eup %1236 }
 0x2f1   : > { %v853_v14 = vsel %vm451_vm3, %v1237_v13, 0.0  ;;  %v1239_v17 = vpop.eup %1238 }
 0x2f2   : > { %854 = vadd.xlane.f32.xlu0 %v853_v14  ;;  %v736_v18 = vsel %vm451_vm3, %v1239_v17, 0.0 }
 0x308   : > { %625 = vrot.lane.b32.xlu0 %v1366_v11, %s1269_s16 }
 0x30f   : > { %737 = vadd.xlane.f32.xlu1 %v736_v18 }
 0x320   : > { %742 = vrot.lane.b32.xlu1 %v1366_v11, %s1270_s17 }
 0x324   : > { %859 = vrot.lane.b32.xlu1 %v1366_v11, %s1271_s18 }
 0x367   : > { %v507_v19 = vpop.xlane.xlu1 %506 }
 0x368   : > { %1240 = vrcp.f32 %v507_v19 }
 0x36b   : > { %v512_v20 = vpop.permute.xlu1 %511 }
 0x36c   : > { %v518_v21 = vsel %vm516_vm8, %v512_v20, 0 }
 0x36d   : > { %1152 = vmatpush3.bf16.msra.mxu0 %v518_v21  ;;  %v1112_v21 = vld [vmem:[%s1478_s8] ss:$0 sm:$0xff] }
 0x36e   : > { %1163 = vmatprep.subr.bf16.mxu0 %v1258_v1 }
 0x36f   : > { %v621_v23 = vpop.xlane.xlu0 %620 }
 0x370   : > { %1242 = vrcp.f32 %v621_v23 }
 0x372   : > { %v1241_v22 = vpop.eup %1240 }
 0x373   : > { %v509_v24 = vmul.f32 %v1241_v22, %v1233_v4 }
 0x375   : > { %v510_v25 = vpack.c.bf16 %v509_v24, %v509_v24 }
 0x377   : > { %1154 = vmatmul.mubr.msk.bf16.vlgmr.msra.gmra.mrb[4].mxu0 %vm451_vm3, %v510_v25 }
 0x378   : > { %1165 = vmatprep.mubr.msk.bf16.mxu0 %vm1259_vm0, %v1258_v1 }
 0x37a   : > { %v1243_v11 = vpop.eup %1242 }
 0x37b   : > { %v623_v27 = vmul.f32 %v1243_v11, %v1235_v7 }
 0x37d   : > { %v624_v30 = vpack.c.bf16 %v623_v27, %v623_v27 }
 0x37f   : > { %v855_v26 = vpop.xlane.xlu0 %854 }
 0x383   : > { %v626_v28 = vpop.permute.xlu0 %625 }
 0x384   : > { %v631_v29 = vsel %vm516_vm8, %v626_v28, 0 }
 0x385   : > { %1164 = vmatpush3.bf16.msra.mxu0 %v631_v29 }
 0x386   : > { %1175 = vmatprep.subr.bf16.mxu0 %v1258_v1 }
 0x388   : > { %1166 = vmatmul.mubr.msk.bf16.vlgmr.msra.gmra.mrb[8].mxu0 %vm451_vm3, %v624_v30 }
 0x389   : > { %1177 = vmatprep.mubr.msk.bf16.mxu0 %vm1259_vm0, %v1258_v1 }
 0x39c   : > { %v738_v31 = vpop.xlane.xlu1 %737 }
 0x39d   : > { %1244 = vrcp.f32 %v738_v31 }
 0x39e   : > { %1246 = vrcp.f32 %v855_v26 }
 0x3a0   : > { %v743_v32 = vpop.permute.xlu1 %742 }
 0x3a1   : > { %v748_v33 = vsel %vm516_vm8, %v743_v32, 0 }
 0x3a2   : > { %1176 = vmatpush3.bf16.msra.mxu0 %v748_v33 }
 0x3a3   : > { %1187 = vmatprep.subr.bf16.mxu0 %v1258_v1 }
 0x3a4   : > { %v860_v36 = vpop.permute.xlu1 %859 }
 0x3a5   : > { %v865_v39 = vsel %vm516_vm8, %v860_v36, 0 }
 0x3a7   : > { %v1245_v34 = vpop.eup %1244 }
 0x3a8   : > { %v740_v35 = vmul.f32 %v1245_v34, %v1239_v17  ;;  %v1247_v38 = vpop.eup %1246 }
 0x3a9   : > { %v857_v40 = vmul.f32 %v1247_v38, %v1237_v13 }
 0x3aa   : > { %v741_v37 = vpack.c.bf16 %v740_v35, %v740_v35 }
 0x3ab   : > { %v858_v41 = vpack.c.bf16 %v857_v40, %v857_v40 }
 0x3ac   : > { %1178 = vmatmul.mubr.msk.bf16.vlgmr.msra.gmra.mrb[12].mxu0 %vm451_vm3, %v741_v37 }
 0x3ad   : > { %1188 = vmatpush3.bf16.msra.mxu0 %v865_v39  ;;  %1189 = vmatprep.mubr.msk.bf16.mxu0 %vm1259_vm0, %v1258_v1 }
 0x3b4   : > { %1190 = vmatmul.mubr.msk.bf16.vlgmr.msra.gmra.mrb[16].mxu0 %vm451_vm3, %v858_v41 }
 0x44a   : > { %v554_v42 = vpop.f32.mrb[4].mxu0 }
 0x44b   : > { %560 = vst.msk [vmem:[#allocation2] sm:$0xff] %vm451_vm3, %v554_v42  ;;  %v1155_v43 = vpop.f32.mrb[5].mxu0 }
 0x44c   : > { %v557_v44 = vpop.f32.mrb[6].mxu0 }
 0x44d   : > { %v1156_v45 = vpop.f32.mrb[7].mxu0 }
 0x45b   : > { %v667_v46 = vpop.f32.mrb[8].mxu0 }
 0x45c   : > { %674 = vrot.lane.b32.xlu0 %v667_v46, %s1272_s19  ;;  %v1167_v47 = vpop.f32.mrb[9].mxu0 }
 0x45d   : > { %v670_v48 = vpop.f32.mrb[10].mxu0 }
 0x45e   : > { %v1168_v49 = vpop.f32.mrb[11].mxu0 }
 0x47f   : > { %v784_v52 = vpop.f32.mrb[12].mxu0 }
 0x480   : > { %791 = vrot.lane.b32.xlu1 %v784_v52, %s1273_s24  ;;  %v1179_v53 = vpop.f32.mrb[13].mxu0 }
 0x481   : > { %v787_v54 = vpop.f32.mrb[14].mxu0 }
 0x482   : > { %v1180_v55 = vpop.f32.mrb[15].mxu0 }
 0x487   : > { %v901_v56 = vpop.f32.mrb[16].mxu0 }
 0x488   : > { %908 = vrot.lane.b32.xlu0 %v901_v56, %s1274_s25  ;;  %v1191_v57 = vpop.f32.mrb[17].mxu0 }
 0x489   : > { %v904_v58 = vpop.f32.mrb[18].mxu0 }
 0x48a   : > { %v1192_v59 = vpop.f32.mrb[19].mxu0 }
 0x4ce   : > { %v675_v60 = vpop.permute.xlu0 %674 }
 0x4cf   : > { %678 = vst.msk [vmem:[#allocation2] sm:$0xff] %vm677_vm9, %v675_v60 }
 0x4f2   : > { %v792_v61 = vpop.permute.xlu1 %791 }
 0x4f3   : > { %795 = vst.msk [vmem:[#allocation2] sm:$0xff] %vm794_vm10, %v792_v61 }
 0x4fa   : > { %v909_v1 = vpop.permute.xlu0 %908 }
 0x4fb   : > { %912 = vst.msk [vmem:[#allocation2] sm:$0xff] %vm911_vm11, %v909_v1 }
 0x502   : > { %v913_v62 = vld [vmem:[#allocation2] sm:$0xff] }
 0x503   : > { %v914_v63 = vpack.c.bf16 %v913_v62, %v913_v62 }
 0x505   : > { %1198 = vmatmul.mubr.msk.bf16.vlgmr.msra.gmra.mrb[16].mxu1 %vm385_vm1, %v914_v63 }
 0x5d8   : > { %v975_v2 = vpop.f32.mrb[16].mxu1 }
 0x5d9   : > { %v976_v4 = vadd.f32 %v1107_v0, %v975_v2  ;;  %v1199_v5 = vpop.f32.mrb[17].mxu1 }
 0x5da   : > { %v978_v6 = vpop.f32.mrb[18].mxu1 }
 0x5db   : > { %v1200_v7 = vpop.f32.mrb[19].mxu1  ;;  %v981_v8 = vadd.f32 %v976_v4, %v1356_v3  ;;  %v1111_v3 = vld [vmem:[%s1477_s7] ss:$0 sm:$0xff] }
 0x5dd   : > { %v984_v9 = vsel %vm385_vm1, %v981_v8, 0.0 }
 0x5de   : > { %985 = vadd.xlane.f32.xlu1 %v984_v9 }
 0x66b   : > { %v986_v10 = vpop.xlane.xlu1 %985 }
 0x66c   : > { %v988_v12 = vmul.f32 0.03125, %v986_v10 }
 0x66e   : > { %v989_v13 = vsub.f32 %v981_v8, %v988_v12 }
 0x670   : > { %v990_v14 = vmul.f32 %v989_v13, %v989_v13 }
 0x672   : > { %v991_v15 = vsel %vm385_vm1, %v990_v14, 0.0 }
 0x673   : > { %992 = vadd.xlane.f32.xlu0 %v991_v15 }
 0x700   : > { %v993_v16 = vpop.xlane.xlu0 %992 }
 0x701   : > { %v994_v17 = vmul.f32 0.03125, %v993_v16 }
 0x703   : > { %v995_v18 = vadd.f32 1e-05, %v994_v17 }
 0x705   : > { %1248 = vrsqrt.f32 %v995_v18 }
 0x70f   : > { %v1249_v19 = vpop.eup %1248 }
 0x710   : > { %v997_v20 = vmul.f32 %v1249_v19, %v989_v13 }
 0x712   : > { %v1004_v22 = vmul.f32 %v1111_v3, %v997_v20 }
 0x714   : > { %v1011_v23 = vadd.f32 %v1112_v21, %v1004_v22 }
 0x716   : > { %1012 = vst.msk [vmem:[%s358_s10] sm:$0xff] %vm385_vm1, %v1011_v23 }
 0x717 PF: > { %s19_s30 = sadd.s32 1, %s1256_s30  }
 0x718   : > { %p16_p4 = scmp.ge.s32.totalorder %s19_s30, 4  }
 0x71a   :  { %18 = sbr.rel (!%p16_p4) target bundleno = 1 (0x1), region = 92 }

// kernel: transformer_forward.15
= control target key start
LH: loop header
LB: loop body
LE: loop exit
PB: predicated region body
PF: predicated region fallthrough
CT: control target
= control target key end

     0   :  { %s1331_s30 = smov 0   ;;  %s1476_s0 = inlined_call_operand.vmem [shape: f32[2,8,32], index: 0, kind: input, shape index: {}]   ;;  %s1477_s1 = inlined_call_operand.vmem [shape: f32[2,8,1], index: 1, kind: input, shape index: {}]   ;;  %s1478_s2 = inlined_call_operand.vmem [shape: f32[2,1,8], index: 2, kind: input, shape index: {}]   ;;  %s1479_s3 = inlined_call_operand.vmem [shape: bf16[32,96], index: 3, kind: input, shape index: {}]   ;;  %s1480_s4 = inlined_call_operand.vmem [shape: f32[1,96], index: 4, kind: input, shape index: {}]   ;;  %s1481_s5 = inlined_call_operand.vmem [shape: bf16[32,32], index: 5, kind: input, shape index: {}]   ;;  %s1482_s6 = inlined_call_operand.vmem [shape: f32[1,32], index: 6, kind: input, shape index: {}]   ;;  %s1483_s7 = inlined_call_operand.vmem [shape: f32[1,32], index: 7, kind: input, shape index: {}]   ;;  %s1484_s8 = inlined_call_operand.vmem [shape: f32[1,32], index: 8, kind: input, shape index: {}]   ;;  %s1485_s9 = inlined_call_operand.vmem [shape: f32[2,8,32], index: 9, kind: output, shape index: {}]  }
   0x1 LB: > { %s1093_s10 = sadd.s32 4294967295, %s1262_s30   ;;  %p1097_p0 = scmp.ge.s32.totalorder %s1262_s30, 1  ;;  %s1262_s30 = sphi %s1331_s30, %s19_s30  }
   0x2   : > { %p303_p1 = scmp.lt.s32.totalorder %s1262_s30, 3 }
   0x4   : > { %p304_p2 = pnand %p1097_p0, %p303_p1 }
   0x5   : > { %v1234_v0 = vld [vmem:[%s1479_s3] sm:$0xff] (!%p304_p2)   ;;  %v1264_v1 = vmov (!%p304_p2), 0.0   ;;  %v1235_v2 = vld [vmem:[%s1479_s3 + $0x8] sm:$0xff] (!%p304_p2)   ;;  %vm1265_vm0 = vmmov (!%p304_p2), 0   ;;  %p344_p3 = scmp.lt.s32.totalorder (!%p304_p2), %s1093_s10, 1  ;;  %vm385_vm1 = vcmask (!%p304_p2), 261120   ;;  %v442_v28 = vlaneseq (!%p304_p2) }
   0x6   : > { %307 = sbr.rel (%p304_p2) target bundleno = 1815 (0x717), region = 56  ;;  %1143 = vmatprep.subr.bf16.mxu0 (!%p304_p2), %v1264_v1  ;;  %1151 = vmatprep.subr.bf16.mxu1 (!%p304_p2), %v1264_v1  ;;  %v1101_v5 = vld [vmem:[%s1480_s4] ss:$0 sm:$0xff] (!%p304_p2)  ;;  %s1266_s21 = smov (!%p304_p2), 96   ;;  %v1273_v14 = vmov (!%p304_p2), 0   ;;  %vm457_vm3 = vcmask (!%p304_p2), 64512  }
   0x7   : > { %1144 = vmatpush3.bf16.msra.mxu0 (!%p304_p2), %v1234_v0  ;;  %1147 = vmatprep.mubr.msk.bf16.mxu0 (!%p304_p2), %vm1265_vm0, %v1264_v1  ;;  %s1267_s22 = smov (!%p304_p2), 120   ;;  %s1268_s23 = smov (!%p304_p2), 88   ;;  %v443_v30 = vshrl.u32 (!%p304_p2), %v442_v28, 7  ;;  %v451_v35 = vand.u32 (!%p304_p2), 127, %v442_v28  ;;  %vm522_vm10 = vcmask (!%p304_p2), 1043456   ;;  %vm683_vm11 = vcmask (!%p304_p2), 130112  }
   0x8   : > { %1145 = vmatprep.subr.bf16.mxu0 (!%p304_p2), %v1264_v1  ;;  %1153 = vmatprep.mubr.msk.bf16.mxu1 (!%p304_p2), %vm1265_vm0, %v1264_v1  ;;  %s1269_s24 = smov (!%p304_p2), 80   ;;  %s1270_s25 = smov (!%p304_p2), 112   ;;  %vm800_vm12 = vcmask (!%p304_p2), 195712   ;;  %vm917_vm13 = vcmask (!%p304_p2), 261312  }
   0x9   : > { %s1271_s26 = smov (!%p304_p2), 72   ;;  %s1272_s27 = smov (!%p304_p2), 104   ;;  %1232 = vset.pattern.permute.xlu1 (!%p304_p2), %v1273_v14  ;;  %1233 = vset.pattern.permute.xlu0 (!%p304_p2), %v1273_v14  ;;  %v444_v31 = vsub.s32 (!%p304_p2), 0, %v443_v30  ;;  %vm452_vm7 = vcmp.le.s32.totalorder (!%p304_p2), %v451_v35, %v443_v30 }
   0xa   : > { %s1275_s16 = smov (!%p304_p2), 56   ;;  %s1276_s17 = smov (!%p304_p2), 48  }
   0xb   : > { %1146 = vmatpush3.bf16.msra.mxu0 (!%p304_p2), %v1235_v2  ;;  %s1278_s19 = smov (!%p304_p2), 8  }
   0xc   : > { %1157 = vmatprep.subr.bf16.mxu0 (!%p304_p2), %v1264_v1 }
   0xd   : > { %s1489_s10 = smov (!%p344_p3, %s1093_s10), 1 }
   0xe   : > { %s1355_s15 = sshll.u32 %s1489_s10, 3  ;;  %s354_s14 = scalar_lea.vmem %s1478_s2, %s1489_s10 }
   0xf   : > { %s347_s18 = scalar_lea.vmem %s1476_s0, %s1355_s15  ;;  %s351_s11 = scalar_lea.vmem %s1477_s1, %s1355_s15  ;;  %v432_v29 = vld [vmem:[%s354_s14] sm:$0x1] }
  0x10   : > { %v1362_v3 = vld [vmem:[%s347_s18] sm:$0xff]  ;;  %vm433_vm4 = vcmp.gt.f32.partialorder %v432_v29, 0.5  ;;  %s1274_s10 = smov 64   ;;  %s1277_s18 = smov 40  }
  0x11   : > { %v366_v4 = vpack.c.bf16 %v1362_v3, %v1362_v3  ;;  %v434_v15 = vld [vmem:[%s351_s11] sm:$0xff]  ;;  %v441_v32 = vsel %vm433_vm4, 1, %v1273_v14 }
  0x12   : > { %vm435_vm2 = vcmp.gt.f32.partialorder %v434_v15, 0.5  ;;  %v445_v33 = vrot.slane %v441_v32, %v444_v31 }
  0x13   : > { %1148 = vmatmul.mubr.msk.bf16.vlgmr.msra.gmra.mrb[0].mxu0 %vm385_vm1, %v366_v4  ;;  %v436_v16 = vsel %vm435_vm2, 1, %v1273_v14 }
  0x14   : > { %1159 = vmatprep.mubr.msk.bf16.mxu0 %vm1265_vm0, %v1264_v1  ;;  %vm446_vm5 = vcmp.eq.s32.totalorder %v445_v33, 1 }
  0xe6   : > { %v423_v6 = vpop.f32.mrb[0].mxu0 }
  0xe7   : > { %v424_v7 = vadd.f32 %v1101_v5, %v423_v6  ;;  %v1149_v8 = vpop.f32.mrb[1].mxu0 }
  0xe8   : > { %v426_v9 = vpop.f32.mrb[2].mxu0 }
  0xe9   : > { %v429_v10 = vmul.f32 0.35355338, %v424_v7  ;;  %v1372_v11 = vpack.c.bf16 %v424_v7, %v424_v7  ;;  %v1150_v12 = vpop.f32.mrb[3].mxu0 }
  0xeb   : > { %v430_v13 = vpack.c.bf16 %v429_v10, %v429_v10  ;;  %455 = vrot.lane.b32.xlu0 %v1372_v11, %s1266_s21 }
  0xed   : > { %568 = vrot.lane.b32.xlu1 %v430_v13, %s1267_s22 }
  0xef   : > { %570 = vrot.lane.b32.xlu0 %v1372_v11, %s1268_s23 }
  0xf1   : > { %687 = vrot.lane.b32.xlu1 %v1372_v11, %s1269_s24  ;;  %s1279_s24 = smov 16  }
  0xf3   : > { %685 = vrot.lane.b32.xlu0 %v430_v13, %s1270_s25  ;;  %s1280_s25 = smov 24  }
  0xf5   : > { %804 = vrot.lane.b32.xlu1 %v1372_v11, %s1271_s26 }
  0xf7   : > { %802 = vrot.lane.b32.xlu0 %v430_v13, %s1272_s27 }
  0xf9   : > { %438 = vperm.xlu1 %1232, %v436_v16  }
 0x15d   : > { %v456_v17 = vpop.permute.xlu0 %455 }
 0x15e   : > { %v462_v18 = vsel %vm457_vm3, %v456_v17, 0 }
 0x15f   : > { %1152 = vmatpush3.bf16.xpose.msra.mxu1 %v462_v18  ;;  %v569_v20 = vpop.permute.xlu1 %568 }
 0x160   : > { %1163 = vmatprep.subr.bf16.mxu1 %v1264_v1 }
 0x161   : > { %v571_v19 = vpop.permute.xlu0 %570 }
 0x162   : > { %v576_v21 = vsel %vm457_vm3, %v571_v19, 0 }
 0x163   : > { %v688_v22 = vpop.permute.xlu1 %687 }
 0x164   : > { %v693_v23 = vsel %vm457_vm3, %v688_v22, 0 }
 0x165   : > { %v686_v25 = vpop.permute.xlu0 %685 }
 0x166   : > { %1154 = vmatmul.mubr.msk.bf16.vlgmr.msra.gmra.mrb[0].mxu1 %vm457_vm3, %v430_v13 }
 0x167   : > { %1164 = vmatpush3.bf16.xpose.msra.mxu1 %v576_v21  ;;  %1165 = vmatprep.mubr.msk.bf16.mxu1 %vm1265_vm0, %v1264_v1  ;;  %v805_v24 = vpop.permute.xlu1 %804 }
 0x168   : > { %1175 = vmatprep.subr.bf16.mxu1 %v1264_v1  ;;  %v810_v26 = vsel %vm457_vm3, %v805_v24, 0 }
 0x169   : > { %v803_v27 = vpop.permute.xlu0 %802 }
 0x16e   : > { %1166 = vmatmul.mubr.msk.bf16.vlgmr.msra.gmra.mrb[4].mxu1 %vm457_vm3, %v569_v20 }
 0x16f   : > { %1176 = vmatpush3.bf16.xpose.msra.mxu1 %v693_v23  ;;  %1177 = vmatprep.mubr.msk.bf16.mxu1 %vm1265_vm0, %v1264_v1 }
 0x170   : > { %1187 = vmatprep.subr.bf16.mxu1 %v1264_v1 }
 0x176   : > { %1178 = vmatmul.mubr.msk.bf16.vlgmr.msra.gmra.mrb[8].mxu1 %vm457_vm3, %v686_v25 }
 0x177   : > { %1188 = vmatpush3.bf16.xpose.msra.mxu1 %v810_v26  ;;  %1189 = vmatprep.mubr.msk.bf16.mxu1 %vm1265_vm0, %v1264_v1 }
 0x178   : > { %1199 = vmatprep.subr.bf16.mxu1 %v1264_v1  ;;  %v439_v34 = vpop.permute.xlu1 %438 }
 0x179   : > { %vm440_vm6 = vcmp.eq.s32.totalorder %v439_v34, 1 }
 0x17a   : > { %vm447_vm8 = vmand %vm440_vm6, %vm446_vm5 }
 0x17b   : > { %vm1406_vm9 = vmand %vm447_vm8, %vm452_vm7 }
 0x17e   : > { %1190 = vmatmul.mubr.msk.bf16.vlgmr.msra.gmra.mrb[12].mxu1 %vm457_vm3, %v803_v27 }
 0x17f   : > { %1203 = vmatprep.mubr.msk.bf16.mxu1 %vm1265_vm0, %v1264_v1 }
 0x239   : > { %v498_v37 = vpop.f32.mrb[0].mxu1 }
 0x23a   : > { %v504_v38 = vsel %vm1406_vm9, %v498_v37, -1e+09  ;;  %v1155_v39 = vpop.f32.mrb[1].mxu1 }
 0x23b   : > { %v501_v40 = vpop.f32.mrb[2].mxu1  ;;  %v505_v41 = vsel %vm457_vm3, %v504_v38, -inf }
 0x23c   : > { %506 = vmax.xlane.f32.xlu0 %v505_v41  ;;  %v1156_v42 = vpop.f32.mrb[3].mxu1 }
 0x241   : > { %v612_v43 = vpop.f32.mrb[4].mxu1 }
 0x242   : > { %v618_v44 = vsel %vm1406_vm9, %v612_v43, -1e+09  ;;  %v1167_v45 = vpop.f32.mrb[5].mxu1 }
 0x243   : > { %v615_v46 = vpop.f32.mrb[6].mxu1  ;;  %v619_v47 = vsel %vm457_vm3, %v618_v44, -inf }
 0x244   : > { %620 = vmax.xlane.f32.xlu1 %v619_v47  ;;  %v1168_v48 = vpop.f32.mrb[7].mxu1 }
 0x249   : > { %v729_v49 = vpop.f32.mrb[8].mxu1 }
 0x24a   : > { %v735_v50 = vsel %vm1406_vm9, %v729_v49, -1e+09  ;;  %v1179_v51 = vpop.f32.mrb[9].mxu1 }
 0x24b   : > { %v732_v52 = vpop.f32.mrb[10].mxu1  ;;  %v736_v53 = vsel %vm457_vm3, %v735_v50, -inf  ;;  %v1236_v51 = vld [vmem:[%s1481_s5] sm:$0xff]  }
 0x24c   : > { %737 = vmax.xlane.f32.xlu0 %v736_v53  ;;  %v1180_v54 = vpop.f32.mrb[11].mxu1  ;;  %1200 = vmatpush3.bf16.msra.mxu1 %v1236_v51  ;;  %v1237_v52 = vld [vmem:[%s1481_s5 + $0x8] sm:$0xff]  }
 0x24d   : > { %1201 = vmatprep.subr.bf16.mxu1 %v1264_v1 }
 0x250   : > { %1202 = vmatpush3.bf16.msra.mxu1 %v1237_v52 }
 0x251   : > { %v846_v55 = vpop.f32.mrb[12].mxu1 }
 0x252   : > { %v852_v56 = vsel %vm1406_vm9, %v846_v55, -1e+09  ;;  %v1191_v57 = vpop.f32.mrb[13].mxu1 }
 0x253   : > { %v849_v58 = vpop.f32.mrb[14].mxu1  ;;  %v853_v59 = vsel %vm457_vm3, %v852_v56, -inf }
 0x254   : > { %854 = vmax.xlane.f32.xlu0 %v853_v59  ;;  %v1192_v60 = vpop.f32.mrb[15].mxu1 }
 0x2c9   : > { %v507_v61 = vpop.xlane.xlu0 %506 }
 0x2ca   : > { %v508_v62 = vsub.f32 %v504_v38, %v507_v61 }
 0x2cc   : > { %v509_v63 = vmul.f32 1.442695, %v508_v62 }
 0x2ce   : > { %1238 = vpow2.f32 %v509_v63 }
 0x2d1   : > { %v621_v0 = vpop.xlane.xlu1 %620 }
 0x2d2   : > { %v622_v2 = vsub.f32 %v618_v44, %v621_v0 }
 0x2d4   : > { %v623_v4 = vmul.f32 1.442695, %v622_v2  ;;  %v1113_v2 = vld [vmem:[%s1482_s6] ss:$0 sm:$0xff] }
 0x2d6   : > { %1240 = vpow2.f32 %v623_v4 }
 0x2d8   : > { %v1239_v5 = vpop.eup %1238 }
 0x2d9   : > { %v511_v6 = vsel %vm457_vm3, %v1239_v5, 0.0  ;;  %v738_v7 = vpop.xlane.xlu0 %737 }
 0x2da   : > { %512 = vadd.xlane.f32.xlu1 %v511_v6  ;;  %v739_v16 = vsub.f32 %v735_v50, %v738_v7 }
 0x2dc   : > { %v740_v17 = vmul.f32 1.442695, %v739_v16 }
 0x2e0   : > { %v1241_v8 = vpop.eup %1240 }
 0x2e1   : > { %v855_v9 = vpop.xlane.xlu0 %854  ;;  %v625_v10 = vsel %vm457_vm3, %v1241_v8, 0.0 }
 0x2e2   : > { %v856_v12 = vsub.f32 %v852_v56, %v855_v9  ;;  %626 = vadd.xlane.f32.xlu0 %v625_v10 }
 0x2e4   : > { %v857_v13 = vmul.f32 1.442695, %v856_v12 }
 0x2e6   : > { %1242 = vpow2.f32 %v857_v13 }
 0x2e7   : > { %1244 = vpow2.f32 %v740_v17 }
 0x2eb   : > { %517 = vrot.lane.b32.xlu1 %v1372_v11, %s1274_s10  ;;  %s358_s10 = scalar_lea.vmem %s1485_s9, %s1355_s15 }
 0x2f0   : > { %v1243_v14 = vpop.eup %1242 }
 0x2f1   : > { %v859_v15 = vsel %vm457_vm3, %v1243_v14, 0.0  ;;  %v1245_v18 = vpop.eup %1244 }
 0x2f2   : > { %860 = vadd.xlane.f32.xlu0 %v859_v15  ;;  %v742_v19 = vsel %vm457_vm3, %v1245_v18, 0.0 }
 0x308   : > { %631 = vrot.lane.b32.xlu0 %v1372_v11, %s1275_s16 }
 0x30f   : > { %743 = vadd.xlane.f32.xlu1 %v742_v19 }
 0x320   : > { %748 = vrot.lane.b32.xlu1 %v1372_v11, %s1276_s17 }
 0x324   : > { %865 = vrot.lane.b32.xlu1 %v1372_v11, %s1277_s18 }
 0x367   : > { %v513_v20 = vpop.xlane.xlu1 %512 }
 0x368   : > { %1246 = vrcp.f32 %v513_v20 }
 0x36b   : > { %v518_v21 = vpop.permute.xlu1 %517 }
 0x36c   : > { %v524_v22 = vsel %vm522_vm10, %v518_v21, 0 }
 0x36d   : > { %1158 = vmatpush3.bf16.msra.mxu0 %v524_v22  ;;  %v1118_v22 = vld [vmem:[%s1484_s8] ss:$0 sm:$0xff] }
 0x36e   : > { %1169 = vmatprep.subr.bf16.mxu0 %v1264_v1 }
 0x36f   : > { %v627_v24 = vpop.xlane.xlu0 %626 }
 0x370   : > { %1248 = vrcp.f32 %v627_v24 }
 0x372   : > { %v1247_v23 = vpop.eup %1246 }
 0x373   : > { %v515_v25 = vmul.f32 %v1247_v23, %v1239_v5 }
 0x375   : > { %v516_v26 = vpack.c.bf16 %v515_v25, %v515_v25 }
 0x377   : > { %1160 = vmatmul.mubr.msk.bf16.vlgmr.msra.gmra.mrb[4].mxu0 %vm457_vm3, %v516_v26 }
 0x378   : > { %1171 = vmatprep.mubr.msk.bf16.mxu0 %vm1265_vm0, %v1264_v1 }
 0x37a   : > { %v1249_v11 = vpop.eup %1248 }
 0x37b   : > { %v629_v28 = vmul.f32 %v1249_v11, %v1241_v8 }
 0x37d   : > { %v630_v31 = vpack.c.bf16 %v629_v28, %v629_v28 }
 0x37f   : > { %v861_v27 = vpop.xlane.xlu0 %860 }
 0x383   : > { %v632_v29 = vpop.permute.xlu0 %631 }
 0x384   : > { %v637_v30 = vsel %vm522_vm10, %v632_v29, 0 }
 0x385   : > { %1170 = vmatpush3.bf16.msra.mxu0 %v637_v30 }
 0x386   : > { %1181 = vmatprep.subr.bf16.mxu0 %v1264_v1 }
 0x388   : > { %1172 = vmatmul.mubr.msk.bf16.vlgmr.msra.gmra.mrb[8].mxu0 %vm457_vm3, %v630_v31 }
 0x389   : > { %1183 = vmatprep.mubr.msk.bf16.mxu0 %vm1265_vm0, %v1264_v1 }
 0x39c   : > { %v744_v32 = vpop.xlane.xlu1 %743 }
 0x39d   : > { %1250 = vrcp.f32 %v744_v32 }
 0x39e   : > { %1252 = vrcp.f32 %v861_v27 }
 0x3a0   : > { %v749_v33 = vpop.permute.xlu1 %748 }
 0x3a1   : > { %v754_v34 = vsel %vm522_vm10, %v749_v33, 0 }
 0x3a2   : > { %1182 = vmatpush3.bf16.msra.mxu0 %v754_v34 }
 0x3a3   : > { %1193 = vmatprep.subr.bf16.mxu0 %v1264_v1 }
 0x3a4   : > { %v866_v37 = vpop.permute.xlu1 %865 }
 0x3a5   : > { %v871_v40 = vsel %vm522_vm10, %v866_v37, 0 }
 0x3a7   : > { %v1251_v35 = vpop.eup %1250 }
 0x3a8   : > { %v746_v36 = vmul.f32 %v1251_v35, %v1245_v18  ;;  %v1253_v39 = vpop.eup %1252 }
 0x3a9   : > { %v863_v41 = vmul.f32 %v1253_v39, %v1243_v14 }
 0x3aa   : > { %v747_v38 = vpack.c.bf16 %v746_v36, %v746_v36 }
 0x3ab   : > { %v864_v42 = vpack.c.bf16 %v863_v41, %v863_v41 }
 0x3ac   : > { %1184 = vmatmul.mubr.msk.bf16.vlgmr.msra.gmra.mrb[12].mxu0 %vm457_vm3, %v747_v38 }
 0x3ad   : > { %1194 = vmatpush3.bf16.msra.mxu0 %v871_v40  ;;  %1195 = vmatprep.mubr.msk.bf16.mxu0 %vm1265_vm0, %v1264_v1 }
 0x3b4   : > { %1196 = vmatmul.mubr.msk.bf16.vlgmr.msra.gmra.mrb[16].mxu0 %vm457_vm3, %v864_v42 }
 0x44a   : > { %v560_v43 = vpop.f32.mrb[4].mxu0 }
 0x44b   : > { %566 = vst.msk [vmem:[#allocation2] sm:$0xff] %vm457_vm3, %v560_v43  ;;  %v1161_v44 = vpop.f32.mrb[5].mxu0 }
 0x44c   : > { %v563_v45 = vpop.f32.mrb[6].mxu0 }
 0x44d   : > { %v1162_v46 = vpop.f32.mrb[7].mxu0 }
 0x45b   : > { %v673_v47 = vpop.f32.mrb[8].mxu0 }
 0x45c   : > { %680 = vrot.lane.b32.xlu0 %v673_v47, %s1278_s19  ;;  %v1173_v48 = vpop.f32.mrb[9].mxu0 }
 0x45d   : > { %v676_v49 = vpop.f32.mrb[10].mxu0 }
 0x45e   : > { %v1174_v50 = vpop.f32.mrb[11].mxu0 }
 0x47f   : > { %v790_v53 = vpop.f32.mrb[12].mxu0 }
 0x480   : > { %797 = vrot.lane.b32.xlu1 %v790_v53, %s1279_s24  ;;  %v1185_v54 = vpop.f32.mrb[13].mxu0 }
 0x481   : > { %v793_v55 = vpop.f32.mrb[14].mxu0 }
 0x482   : > { %v1186_v56 = vpop.f32.mrb[15].mxu0 }
 0x487   : > { %v907_v57 = vpop.f32.mrb[16].mxu0 }
 0x488   : > { %914 = vrot.lane.b32.xlu0 %v907_v57, %s1280_s25  ;;  %v1197_v58 = vpop.f32.mrb[17].mxu0 }
 0x489   : > { %v910_v59 = vpop.f32.mrb[18].mxu0 }
 0x48a   : > { %v1198_v60 = vpop.f32.mrb[19].mxu0 }
 0x4ce   : > { %v681_v61 = vpop.permute.xlu0 %680 }
 0x4cf   : > { %684 = vst.msk [vmem:[#allocation2] sm:$0xff] %vm683_vm11, %v681_v61 }
 0x4f2   : > { %v798_v62 = vpop.permute.xlu1 %797 }
 0x4f3   : > { %801 = vst.msk [vmem:[#allocation2] sm:$0xff] %vm800_vm12, %v798_v62 }
 0x4fa   : > { %v915_v1 = vpop.permute.xlu0 %914 }
 0x4fb   : > { %918 = vst.msk [vmem:[#allocation2] sm:$0xff] %vm917_vm13, %v915_v1 }
 0x502   : > { %v919_v63 = vld [vmem:[#allocation2] sm:$0xff] }
 0x503   : > { %v920_v0 = vpack.c.bf16 %v919_v63, %v919_v63 }
 0x505   : > { %1204 = vmatmul.mubr.msk.bf16.vlgmr.msra.gmra.mrb[16].mxu1 %vm385_vm1, %v920_v0 }
 0x5d8   : > { %v981_v4 = vpop.f32.mrb[16].mxu1 }
 0x5d9   : > { %v982_v5 = vadd.f32 %v1113_v2, %v981_v4  ;;  %v1205_v6 = vpop.f32.mrb[17].mxu1 }
 0x5da   : > { %v984_v7 = vpop.f32.mrb[18].mxu1 }
 0x5db   : > { %v1206_v8 = vpop.f32.mrb[19].mxu1  ;;  %v987_v9 = vadd.f32 %v982_v5, %v1362_v3  ;;  %v1117_v3 = vld [vmem:[%s1483_s7] ss:$0 sm:$0xff] }
 0x5dd   : > { %v990_v10 = vsel %vm385_vm1, %v987_v9, 0.0 }
 0x5de   : > { %991 = vadd.xlane.f32.xlu1 %v990_v10 }
 0x66b   : > { %v992_v12 = vpop.xlane.xlu1 %991 }
 0x66c   : > { %v994_v13 = vmul.f32 0.03125, %v992_v12 }
 0x66e   : > { %v995_v14 = vsub.f32 %v987_v9, %v994_v13 }
 0x670   : > { %v996_v15 = vmul.f32 %v995_v14, %v995_v14 }
 0x672   : > { %v997_v16 = vsel %vm385_vm1, %v996_v15, 0.0 }
 0x673   : > { %998 = vadd.xlane.f32.xlu0 %v997_v16 }
 0x700   : > { %v999_v17 = vpop.xlane.xlu0 %998 }
 0x701   : > { %v1000_v18 = vmul.f32 0.03125, %v999_v17 }
 0x703   : > { %v1001_v19 = vadd.f32 1e-05, %v1000_v18 }
 0x705   : > { %1254 = vrsqrt.f32 %v1001_v19 }
 0x70f   : > { %v1255_v20 = vpop.eup %1254 }
 0x710   : > { %v1003_v21 = vmul.f32 %v1255_v20, %v995_v14 }
 0x712   : > { %v1010_v23 = vmul.f32 %v1117_v3, %v1003_v21 }
 0x714   : > { %v1017_v24 = vadd.f32 %v1118_v22, %v1010_v23 }
 0x716   : > { %1018 = vst.msk [vmem:[%s358_s10] sm:$0xff] %vm385_vm1, %v1017_v24 }
 0x717 PF: > { %s19_s30 = sadd.s32 1, %s1262_s30  }
 0x718   : > { %p16_p4 = scmp.ge.s32.totalorder %s19_s30, 4  }
 0x71a   :  { %18 = sbr.rel (!%p16_p4) target bundleno = 1 (0x1), region = 92 }

// kernel: transformer_forward.21
= control target key start
LH: loop header
LB: loop body
LE: loop exit
PB: predicated region body
PF: predicated region fallthrough
CT: control target
= control target key end

     0   :  { %v111_v0 = vmov 0.0   ;;  %vm112_vm0 = vmmov 0   ;;  %vm41_vm1 = vcmask 261120   ;;  %s154_s1 = inlined_call_operand.vmem [shape: bf16[32,128], index: 1, kind: input, shape index: {}]   ;;  %s155_s0 = inlined_call_operand.vmem [shape: f32[16,32], index: 0, kind: input, shape index: {}]   ;;  %s156_s2 = inlined_call_operand.vmem [shape: f32[1,128], index: 2, kind: input, shape index: {}]   ;;  %s157_s3 = inlined_call_operand.vmem [shape: f32[16,128], index: 3, kind: output, shape index: {}]  }
   0x1   :  { %99 = vmatprep.subr.bf16.mxu0 %v111_v0  ;;  %v109_v1 = vld [vmem:[%s154_s1] sm:$0xff]   ;;  %103 = vmatprep.mubr.msk.bf16.mxu0 %vm112_vm0, %v111_v0  ;;  %v110_v2 = vld [vmem:[%s154_s1 + $0x8] sm:$0xff]  }
   0x2   :  { %100 = vmatpush3.bf16.msra.mxu0 %v109_v1  ;;  %v15_v3 = vld [vmem:[%s155_s0] sm:$0xff]  ;;  %v16_v4 = vld [vmem:[%s155_s0 + $0x8] sm:$0xff] }
   0x3   :  { %101 = vmatprep.subr.bf16.mxu0 %v111_v0  ;;  %v17_v5 = vpack.c.bf16 %v16_v4, %v15_v3  ;;  %v92_v6 = vld [vmem:[%s156_s2] ss:$0 sm:$0xff] }
   0x6   :  { %102 = vmatpush3.bf16.msra.mxu0 %v110_v2 }
   0x9   :  { %104 = vmatmul.mubr.msk.bf16.vlgmr.msra.gmra.mrb[0].mxu0 %vm41_vm1, %v17_v5 }
  0xdc   :  { %v79_v7 = vpop.f32.mrb[0].mxu0 }
  0xdd   :  { %v80_v8 = vadd.f32 %v92_v6, %v79_v7  ;;  %v105_v9 = vpop.f32.mrb[1].mxu0 }
  0xde   :  { %v82_v10 = vpop.f32.mrb[2].mxu0 }
  0xdf   :  { %86 = vst [vmem:[%s157_s3] sm:$0xff] %v80_v8  ;;  %v83_v11 = vadd.f32 %v92_v6, %v82_v10  ;;  %v106_v12 = vpop.f32.mrb[3].mxu0 }
  0xe1   :  { %87 = vst [vmem:[%s157_s3 + $0x8] sm:$0xff] %v83_v11 }

</bundles_post_ra>
